<compile_context>
chip_gen: v6e
topology: v6e:2x2x1
jax: 0.10.0
libtpu: 0.0.40
codegen_flags: <defaults>
</compile_context>

<pallas_src>
import functools

import numpy as np
import jax
import jax.numpy as jnp
from jax.experimental import pallas as pl
from jax.experimental.pallas import tpu as pltpu

PATCH = 14                     # DINOv2 patch size
KRAW = PATCH * PATCH * 3       # 588 features per patch
KPAD = 640                     # zero-padded to a lane multiple (5 * 128)
LN_EPS = 1e-6

_CP = pltpu.CompilerParams(dimension_semantics=("parallel",),
                           vmem_limit_bytes=32 * 1024 * 1024)


# ------------------------------ Pallas kernel -------------------------------

def dino_forward_patch_kernel(
        xp_ref,                                    # (1, Tp, KPAD) bf16  im2col patches
        pe_w_ref, pe_b_ref, pos_ref, cls_ref,      # (KPAD,E) bf16, (1,E), (Tp,E), (1,E)
        ln1g_ref, ln1b_ref, wqkv_ref, bqkv_ref,    # stacked over depth D
        wproj_ref, bproj_ref, ln2g_ref, ln2b_ref,
        w1_ref, b1_ref, w2_ref, b2_ref,
        lnf_g_ref, lnf_b_ref,                      # (1, E) each
        o_ref,                                     # (1, Tp, E) f32
        *, depth, num_heads, head_dim, n_patch):
    f32, bf16 = jnp.float32, jnp.bfloat16
    E = o_ref.shape[-1]

    def layernorm(v, g, b):
        mu = jnp.mean(v, axis=-1, keepdims=True)
        var = jnp.maximum(jnp.mean(v * v, axis=-1, keepdims=True) - mu * mu, 0.0)
        return (v - mu) * jax.lax.rsqrt(var + LN_EPS) * g + b

    # Patch embedding (dinov2_normalize folded into pe_w / pe_b) + pos embed.
    y = jnp.dot(xp_ref[0], pe_w_ref[...], preferred_element_type=f32)
    y = y + pe_b_ref[...] + pos_ref[...]
    # CLS token appended as the LAST row (keeps patch-token stores lane/sublane aligned;
    # self-attention output for patch tokens is invariant to the CLS position).
    x = jnp.concatenate([y, cls_ref[...]], axis=0)          # (Tp + 1, E) f32

    scale = 1.0 / float(head_dim) ** 0.5
    for d in range(depth):                                   # static unroll
        # --- multi-head self-attention (pre-LN) ---
        h = layernorm(x, ln1g_ref[d], ln1b_ref[d])
        qkv = jnp.dot(h.astype(bf16), wqkv_ref[d],
                      preferred_element_type=f32) + bqkv_ref[d]
        heads = []
        for hd in range(num_heads):                          # static unroll
            q = qkv[:, hd * head_dim:(hd + 1) * head_dim]
            k = qkv[:, E + hd * head_dim:E + (hd + 1) * head_dim]
            v = qkv[:, 2 * E + hd * head_dim:2 * E + (hd + 1) * head_dim]
            s = jax.lax.dot_general(q.astype(bf16), k.astype(bf16),
                                    (((1,), (1,)), ((), ())),
                                    preferred_element_type=f32) * scale
            s = s - jnp.max(s, axis=-1, keepdims=True)
            p = jnp.exp(s)
            p = p / jnp.sum(p, axis=-1, keepdims=True)
            heads.append(jnp.dot(p.astype(bf16), v.astype(bf16),
                                 preferred_element_type=f32))
        attn = jnp.concatenate(heads, axis=-1)               # (T, E)
        x = x + jnp.dot(attn.astype(bf16), wproj_ref[d],
                        preferred_element_type=f32) + bproj_ref[d]

        # --- MLP (pre-LN) ---
        h2 = layernorm(x, ln2g_ref[d], ln2b_ref[d])
        m = jnp.dot(h2.astype(bf16), w1_ref[d],
                    preferred_element_type=f32) + b1_ref[d]
        m = jax.nn.gelu(m, approximate=True)
        x = x + jnp.dot(m.astype(bf16), w2_ref[d],
                        preferred_element_type=f32) + b2_ref[d]

    # Final LayerNorm on the patch tokens only (drop CLS row).
    o_ref[0] = layernorm(x[:n_patch, :], lnf_g_ref[...], lnf_b_ref[...])


# ------------------------------ parameters ----------------------------------

def init_params(key, *, embed_dim, depth, n_patch):
    E = embed_dim
    ks = iter(jax.random.split(key, 8 * depth + 16))

    def rnd(shape, scale=0.02):
        return scale * jax.random.normal(next(ks), shape, dtype=jnp.float32)

    p = {}

    # Patch-embed conv (14x14, stride 14) as a [588, E] matmul with the
    # dinov2_normalize affine ((x - mean) / std, ImageNet stats) folded in.
    mean = np.array([0.485, 0.456, 0.406], np.float32)
    std = np.array([0.229, 0.224, 0.225], np.float32)
    w0 = np.asarray(rnd((KRAW, E)))
    b0 = np.asarray(rnd((1, E)))
    cidx = np.tile(np.arange(3), PATCH * PATCH)              # channel of row r = r % 3
    w_fold = w0 / std[cidx][:, None]
    b_fold = b0 - (mean[cidx] / std[cidx])[None, :] @ w0
    w_pad = np.zeros((KPAD, E), np.float32)
    w_pad[:KRAW] = w_fold
    p['pe_w'] = jnp.asarray(w_pad, jnp.bfloat16)
    p['pe_b'] = jnp.asarray(b_fold)
    p['pos'] = rnd((n_patch, E))                             # interpolated pos-embed (patch rows)
    p['cls'] = rnd((1, E))                                   # cls token + its pos-embed, combined

    def stack(shape, scale=0.02):
        return jnp.stack([rnd(shape, scale) for _ in range(depth)])

    p['ln1_g'] = jnp.ones((depth, 1, E), jnp.float32)
    p['ln1_b'] = jnp.zeros((depth, 1, E), jnp.float32)
    p['w_qkv'] = stack((E, 3 * E)).astype(jnp.bfloat16)
    p['b_qkv'] = stack((1, 3 * E))
    p['w_proj'] = stack((E, E)).astype(jnp.bfloat16)
    p['b_proj'] = stack((1, E))
    p['ln2_g'] = jnp.ones((depth, 1, E), jnp.float32)
    p['ln2_b'] = jnp.zeros((depth, 1, E), jnp.float32)
    p['w_fc1'] = stack((E, 4 * E)).astype(jnp.bfloat16)
    p['b_fc1'] = stack((1, 4 * E))
    p['w_fc2'] = stack((4 * E, E)).astype(jnp.bfloat16)
    p['b_fc2'] = stack((1, E))
    p['lnf_g'] = jnp.ones((1, E), jnp.float32)
    p['lnf_b'] = jnp.zeros((1, E), jnp.float32)
    return p


# -------------------------------- forward -----------------------------------

def _bcast_spec(shape):
    zeros = (0,) * len(shape)
    return pl.BlockSpec(shape, lambda b: zeros)


def dino_patch_forward(x_nchw, params, *, embed_dim, depth, num_heads):
    f32, bf16 = jnp.float32, jnp.bfloat16
    B, C, H, W = x_nchw.shape
    assert C == 3
    E = embed_dim
    head_dim = E // num_heads

    # dinov2_pad: pad H, W up to multiples of the 14px patch size.
    # TODO(synk): exact waifu2x dinov2_pad mode/placement unavailable; assume
    #   bottom/right replicate padding.
    pad_h = (-H) % PATCH
    pad_w = (-W) % PATCH
    x = jnp.transpose(x_nchw.astype(f32), (0, 2, 3, 1))       # NHWC, values in [0, 1]
    if pad_h or pad_w:
        x = jnp.pad(x, ((0, 0), (0, pad_h), (0, pad_w), (0, 0)), mode='edge')
    Hp, Wp = (H + pad_h) // PATCH, (W + pad_w) // PATCH
    Tp = Hp * Wp
    T = Tp + 1                                                # + CLS token
    assert params['pos'].shape[0] == Tp, "params built for a different grid size"

    # im2col for the non-overlapping 14x14 patches (pure layout), lane-padded.
    xp = (x.reshape(B, Hp, PATCH, Wp, PATCH, 3)
           .transpose(0, 1, 3, 2, 4, 5)
           .reshape(B, Tp, KRAW))
    xp = jnp.pad(xp, ((0, 0), (0, 0), (0, KPAD - KRAW))).astype(bf16)

    kern = functools.partial(dino_forward_patch_kernel, depth=depth,
                             num_heads=num_heads, head_dim=head_dim, n_patch=Tp)

    feat = pl.pallas_call(
        kern,
        out_shape=jax.ShapeDtypeStruct((B, Tp, E), f32),
        grid=(B,),
        in_specs=[
            pl.BlockSpec((1, Tp, KPAD), lambda b: (b, 0, 0)),
            _bcast_spec((KPAD, E)),
            _bcast_spec((1, E)),
            _bcast_spec((Tp, E)),
            _bcast_spec((1, E)),
            _bcast_spec((depth, 1, E)),        # ln1_g
            _bcast_spec((depth, 1, E)),        # ln1_b
            _bcast_spec((depth, E, 3 * E)),    # w_qkv
            _bcast_spec((depth, 1, 3 * E)),    # b_qkv
            _bcast_spec((depth, E, E)),        # w_proj
            _bcast_spec((depth, 1, E)),        # b_proj
            _bcast_spec((depth, 1, E)),        # ln2_g
            _bcast_spec((depth, 1, E)),        # ln2_b
            _bcast_spec((depth, E, 4 * E)),    # w_fc1
            _bcast_spec((depth, 1, 4 * E)),    # b_fc1
            _bcast_spec((depth, 4 * E, E)),    # w_fc2
            _bcast_spec((depth, 1, E)),        # b_fc2
            _bcast_spec((1, E)),               # lnf_g
            _bcast_spec((1, E)),               # lnf_b
        ],
        out_specs=pl.BlockSpec((1, Tp, E), lambda b: (b, 0, 0)),
        compiler_params=_CP,
    )(xp, params['pe_w'], params['pe_b'], params['pos'], params['cls'],
      params['ln1_g'], params['ln1_b'], params['w_qkv'], params['b_qkv'],
      params['w_proj'], params['b_proj'], params['ln2_g'], params['ln2_b'],
      params['w_fc1'], params['b_fc1'], params['w_fc2'], params['b_fc2'],
      params['lnf_g'], params['lnf_b'])

    # (B, Tp, E) -> (B, E, Hp, Wp), then x.detach()
    feat = jnp.transpose(feat.reshape(B, Hp, Wp, E), (0, 3, 1, 2))
    return jax.lax.stop_gradient(feat)


# ---------------------------------- main -------------------------------------

if __name__ == "__main__":
    key = jax.random.PRNGKey(0)
    kx, kp = jax.random.split(key)

    B, H, W = 2, 52, 52                 # 52 -> padded to 56 (exercises dinov2_pad)
    embed_dim, depth, num_heads = 128, 2, 2

    Hp = -(-H // PATCH)
    Wp = -(-W // PATCH)

    x = jax.random.uniform(kx, (B, 3, H, W), dtype=jnp.float32)   # image in [0, 1], NCHW
    params = init_params(kp, embed_dim=embed_dim, depth=depth, n_patch=Hp * Wp)

    fwd = jax.jit(functools.partial(dino_patch_forward, embed_dim=embed_dim,
                                    depth=depth, num_heads=num_heads))
    out = fwd(x, params)
    jax.block_until_ready(out)

    assert out.shape == (B, embed_dim, Hp, Wp), out.shape
    assert bool(jnp.all(jnp.isfinite(out)))
    print("KERNEL_OK")
</pallas_src>

<mosaic_0001>
module attributes {stable_mosaic.version = 11 : i64} {
  func.func @dino_forward_patch_kernel(%arg0: i32, %arg1: memref<1x16x640xbf16, #tpu.memory_space<vmem>>, %arg2: memref<640x128xbf16, #tpu.memory_space<vmem>>, %arg3: memref<1x128xf32, #tpu.memory_space<vmem>>, %arg4: memref<16x128xf32, #tpu.memory_space<vmem>>, %arg5: memref<1x128xf32, #tpu.memory_space<vmem>>, %arg6: memref<2x1x128xf32, #tpu.memory_space<vmem>>, %arg7: memref<2x1x128xf32, #tpu.memory_space<vmem>>, %arg8: memref<2x128x384xbf16, #tpu.memory_space<vmem>>, %arg9: memref<2x1x384xf32, #tpu.memory_space<vmem>>, %arg10: memref<2x128x128xbf16, #tpu.memory_space<vmem>>, %arg11: memref<2x1x128xf32, #tpu.memory_space<vmem>>, %arg12: memref<2x1x128xf32, #tpu.memory_space<vmem>>, %arg13: memref<2x1x128xf32, #tpu.memory_space<vmem>>, %arg14: memref<2x128x512xbf16, #tpu.memory_space<vmem>>, %arg15: memref<2x1x512xf32, #tpu.memory_space<vmem>>, %arg16: memref<2x512x128xbf16, #tpu.memory_space<vmem>>, %arg17: memref<2x1x128xf32, #tpu.memory_space<vmem>>, %arg18: memref<1x128xf32, #tpu.memory_space<vmem>>, %arg19: memref<1x128xf32, #tpu.memory_space<vmem>>, %arg20: memref<1x16x128xf32, #tpu.memory_space<vmem>>) attributes {dimension_semantics = [#tpu.dimension_semantics<parallel>], iteration_bounds = array<i64: 2>, scalar_prefetch = 0 : i64, scratch_operands = 0 : i64, tpu.core_type = #tpu.core_type<tc>, window_params = [{transform_indices = @transform_0, window_bounds = array<i64: 1, 16, 640>}, {pipeline_mode = #tpu.pipeline_mode<synchronous>, transform_indices = @transform_1, window_bounds = array<i64: 640, 128>}, {pipeline_mode = #tpu.pipeline_mode<synchronous>, transform_indices = @transform_2, window_bounds = array<i64: 1, 128>}, {pipeline_mode = #tpu.pipeline_mode<synchronous>, transform_indices = @transform_3, window_bounds = array<i64: 16, 128>}, {pipeline_mode = #tpu.pipeline_mode<synchronous>, transform_indices = @transform_4, window_bounds = array<i64: 1, 128>}, {pipeline_mode = #tpu.pipeline_mode<synchronous>, transform_indices = @transform_5, window_bounds = array<i64: 2, 1, 128>}, {pipeline_mode = #tpu.pipeline_mode<synchronous>, transform_indices = @transform_6, window_bounds = array<i64: 2, 1, 128>}, {pipeline_mode = #tpu.pipeline_mode<synchronous>, transform_indices = @transform_7, window_bounds = array<i64: 2, 128, 384>}, {pipeline_mode = #tpu.pipeline_mode<synchronous>, transform_indices = @transform_8, window_bounds = array<i64: 2, 1, 384>}, {pipeline_mode = #tpu.pipeline_mode<synchronous>, transform_indices = @transform_9, window_bounds = array<i64: 2, 128, 128>}, {pipeline_mode = #tpu.pipeline_mode<synchronous>, transform_indices = @transform_10, window_bounds = array<i64: 2, 1, 128>}, {pipeline_mode = #tpu.pipeline_mode<synchronous>, transform_indices = @transform_11, window_bounds = array<i64: 2, 1, 128>}, {pipeline_mode = #tpu.pipeline_mode<synchronous>, transform_indices = @transform_12, window_bounds = array<i64: 2, 1, 128>}, {pipeline_mode = #tpu.pipeline_mode<synchronous>, transform_indices = @transform_13, window_bounds = array<i64: 2, 128, 512>}, {pipeline_mode = #tpu.pipeline_mode<synchronous>, transform_indices = @transform_14, window_bounds = array<i64: 2, 1, 512>}, {pipeline_mode = #tpu.pipeline_mode<synchronous>, transform_indices = @transform_15, window_bounds = array<i64: 2, 512, 128>}, {pipeline_mode = #tpu.pipeline_mode<synchronous>, transform_indices = @transform_16, window_bounds = array<i64: 2, 1, 128>}, {pipeline_mode = #tpu.pipeline_mode<synchronous>, transform_indices = @transform_17, window_bounds = array<i64: 1, 128>}, {pipeline_mode = #tpu.pipeline_mode<synchronous>, transform_indices = @transform_18, window_bounds = array<i64: 1, 128>}, {transform_indices = @transform_19, window_bounds = array<i64: 1, 16, 128>}]} {
    %c0 = arith.constant 0 : index
    %c0_0 = arith.constant 0 : index
    %c0_1 = arith.constant 0 : index
    %0 = vector.load %arg1[%c0, %c0_0, %c0_1] : memref<1x16x640xbf16, #tpu.memory_space<vmem>>, vector<1x16x640xbf16>
    %1 = vector.shape_cast %0 : vector<1x16x640xbf16> to vector<16x640xbf16>
    %c0_2 = arith.constant 0 : index
    %c0_3 = arith.constant 0 : index
    %2 = vector.load %arg2[%c0_2, %c0_3] : memref<640x128xbf16, #tpu.memory_space<vmem>>, vector<640x128xbf16>
    %cst = arith.constant dense<0.000000e+00> : vector<16x128xf32>
    %3 = tpu.matmul %1, %2, %cst {dimension_numbers = #tpu.dot_dimension_numbers<[1], [0], [0], [1], [0, 0, 1, 1], [], []>} : vector<16x640xbf16>, vector<640x128xbf16>, vector<16x128xf32> -> vector<16x128xf32>
    %c0_4 = arith.constant 0 : index
    %c0_5 = arith.constant 0 : index
    %4 = vector.load %arg3[%c0_4, %c0_5] : memref<1x128xf32, #tpu.memory_space<vmem>>, vector<1x128xf32>
    %5 = vector.broadcast %4 : vector<1x128xf32> to vector<16x128xf32>
    %6 = arith.addf %3, %5 : vector<16x128xf32>
    %c0_6 = arith.constant 0 : index
    %c0_7 = arith.constant 0 : index
    %7 = vector.load %arg4[%c0_6, %c0_7] : memref<16x128xf32, #tpu.memory_space<vmem>>, vector<16x128xf32>
    %8 = arith.addf %6, %7 : vector<16x128xf32>
    %c0_8 = arith.constant 0 : index
    %c0_9 = arith.constant 0 : index
    %9 = vector.load %arg5[%c0_8, %c0_9] : memref<1x128xf32, #tpu.memory_space<vmem>>, vector<1x128xf32>
    %10 = tpu.concatenate %8, %9 in 0 : vector<16x128xf32>, vector<1x128xf32> -> vector<17x128xf32>
    %c0_10 = arith.constant 0 : index
    %c0_11 = arith.constant 0 : index
    %c0_12 = arith.constant 0 : index
    %11 = vector.load %arg6[%c0_10, %c0_11, %c0_12] : memref<2x1x128xf32, #tpu.memory_space<vmem>>, vector<1x1x128xf32>
    %12 = vector.shape_cast %11 : vector<1x1x128xf32> to vector<1x128xf32>
    %c0_13 = arith.constant 0 : index
    %c0_14 = arith.constant 0 : index
    %c0_15 = arith.constant 0 : index
    %13 = vector.load %arg7[%c0_13, %c0_14, %c0_15] : memref<2x1x128xf32, #tpu.memory_space<vmem>>, vector<1x1x128xf32>
    %14 = vector.shape_cast %13 : vector<1x1x128xf32> to vector<1x128xf32>
    %cst_16 = arith.constant dense<0.000000e+00> : vector<17xf32>
    %15 = vector.multi_reduction <add>, %10, %cst_16 [1] : vector<17x128xf32> to vector<17xf32>
    %16 = vector.shape_cast %15 : vector<17xf32> to vector<17x1xf32>
    %cst_17 = arith.constant 1.280000e+02 : f32
    %17 = vector.broadcast %cst_17 : f32 to vector<17x1xf32>
    %18 = arith.divf %16, %17 : vector<17x1xf32>
    %19 = arith.mulf %10, %10 : vector<17x128xf32>
    %cst_18 = arith.constant dense<0.000000e+00> : vector<17xf32>
    %20 = vector.multi_reduction <add>, %19, %cst_18 [1] : vector<17x128xf32> to vector<17xf32>
    %21 = vector.shape_cast %20 : vector<17xf32> to vector<17x1xf32>
    %cst_19 = arith.constant 1.280000e+02 : f32
    %22 = vector.broadcast %cst_19 : f32 to vector<17x1xf32>
    %23 = arith.divf %21, %22 : vector<17x1xf32>
    %24 = arith.mulf %18, %18 : vector<17x1xf32>
    %25 = arith.subf %23, %24 : vector<17x1xf32>
    %cst_20 = arith.constant 0.000000e+00 : f32
    %26 = vector.broadcast %cst_20 : f32 to vector<17x1xf32>
    %27 = arith.maximumf %25, %26 : vector<17x1xf32>
    %28 = vector.broadcast %18 : vector<17x1xf32> to vector<17x128xf32>
    %29 = arith.subf %10, %28 : vector<17x128xf32>
    %cst_21 = arith.constant 9.99999997E-7 : f32
    %30 = vector.broadcast %cst_21 : f32 to vector<17x1xf32>
    %31 = arith.addf %27, %30 : vector<17x1xf32>
    %32 = math.rsqrt %31 : vector<17x1xf32>
    %33 = vector.broadcast %32 : vector<17x1xf32> to vector<17x128xf32>
    %34 = arith.mulf %29, %33 : vector<17x128xf32>
    %35 = vector.broadcast %12 : vector<1x128xf32> to vector<17x128xf32>
    %36 = arith.mulf %34, %35 : vector<17x128xf32>
    %37 = vector.broadcast %14 : vector<1x128xf32> to vector<17x128xf32>
    %38 = arith.addf %36, %37 : vector<17x128xf32>
    %39 = arith.truncf %38 : vector<17x128xf32> to vector<17x128xbf16>
    %c0_22 = arith.constant 0 : index
    %c0_23 = arith.constant 0 : index
    %c0_24 = arith.constant 0 : index
    %40 = vector.load %arg8[%c0_22, %c0_23, %c0_24] : memref<2x128x384xbf16, #tpu.memory_space<vmem>>, vector<1x128x384xbf16>
    %41 = vector.shape_cast %40 : vector<1x128x384xbf16> to vector<128x384xbf16>
    %cst_25 = arith.constant dense<0.000000e+00> : vector<17x384xf32>
    %42 = tpu.matmul %39, %41, %cst_25 {dimension_numbers = #tpu.dot_dimension_numbers<[1], [0], [0], [1], [0, 0, 1, 1], [], []>} : vector<17x128xbf16>, vector<128x384xbf16>, vector<17x384xf32> -> vector<17x384xf32>
    %c0_26 = arith.constant 0 : index
    %c0_27 = arith.constant 0 : index
    %c0_28 = arith.constant 0 : index
    %43 = vector.load %arg9[%c0_26, %c0_27, %c0_28] : memref<2x1x384xf32, #tpu.memory_space<vmem>>, vector<1x1x384xf32>
    %44 = vector.shape_cast %43 : vector<1x1x384xf32> to vector<1x384xf32>
    %45 = vector.broadcast %44 : vector<1x384xf32> to vector<17x384xf32>
    %46 = arith.addf %42, %45 : vector<17x384xf32>
    %47 = vector.extract_strided_slice %46 {offsets = [0, 0], sizes = [17, 64], strides = [1, 1]} : vector<17x384xf32> to vector<17x64xf32>
    %48 = vector.extract_strided_slice %46 {offsets = [0, 128], sizes = [17, 64], strides = [1, 1]} : vector<17x384xf32> to vector<17x64xf32>
    %49 = vector.extract_strided_slice %46 {offsets = [0, 256], sizes = [17, 64], strides = [1, 1]} : vector<17x384xf32> to vector<17x64xf32>
    %50 = arith.truncf %47 : vector<17x64xf32> to vector<17x64xbf16>
    %51 = arith.truncf %48 : vector<17x64xf32> to vector<17x64xbf16>
    %cst_29 = arith.constant dense<0.000000e+00> : vector<17x17xf32>
    %52 = tpu.matmul %50, %51, %cst_29 {dimension_numbers = #tpu.dot_dimension_numbers<[1], [1], [0], [0], [0, 0, 1, 0], [], []>} : vector<17x64xbf16>, vector<17x64xbf16>, vector<17x17xf32> -> vector<17x17xf32>
    %cst_30 = arith.constant 1.250000e-01 : f32
    %53 = vector.broadcast %cst_30 : f32 to vector<17x17xf32>
    %54 = arith.mulf %52, %53 : vector<17x17xf32>
    %cst_31 = arith.constant dense<0xFF800000> : vector<17xf32>
    %55 = vector.multi_reduction <maximumf>, %54, %cst_31 [1] : vector<17x17xf32> to vector<17xf32>
    %56 = vector.shape_cast %55 : vector<17xf32> to vector<17x1xf32>
    %57 = vector.broadcast %56 : vector<17x1xf32> to vector<17x17xf32>
    %58 = arith.subf %54, %57 : vector<17x17xf32>
    %59 = math.exp %58 : vector<17x17xf32>
    %cst_32 = arith.constant dense<0.000000e+00> : vector<17xf32>
    %60 = vector.multi_reduction <add>, %59, %cst_32 [1] : vector<17x17xf32> to vector<17xf32>
    %61 = vector.shape_cast %60 : vector<17xf32> to vector<17x1xf32>
    %62 = vector.broadcast %61 : vector<17x1xf32> to vector<17x17xf32>
    %63 = arith.divf %59, %62 : vector<17x17xf32>
    %64 = arith.truncf %63 : vector<17x17xf32> to vector<17x17xbf16>
    %65 = arith.truncf %49 : vector<17x64xf32> to vector<17x64xbf16>
    %cst_33 = arith.constant dense<0.000000e+00> : vector<17x64xf32>
    %66 = tpu.matmul %64, %65, %cst_33 {dimension_numbers = #tpu.dot_dimension_numbers<[1], [0], [0], [1], [0, 0, 1, 1], [], []>} : vector<17x17xbf16>, vector<17x64xbf16>, vector<17x64xf32> -> vector<17x64xf32>
    %67 = vector.extract_strided_slice %46 {offsets = [0, 64], sizes = [17, 64], strides = [1, 1]} : vector<17x384xf32> to vector<17x64xf32>
    %68 = vector.extract_strided_slice %46 {offsets = [0, 192], sizes = [17, 64], strides = [1, 1]} : vector<17x384xf32> to vector<17x64xf32>
    %69 = vector.extract_strided_slice %46 {offsets = [0, 320], sizes = [17, 64], strides = [1, 1]} : vector<17x384xf32> to vector<17x64xf32>
    %70 = arith.truncf %67 : vector<17x64xf32> to vector<17x64xbf16>
    %71 = arith.truncf %68 : vector<17x64xf32> to vector<17x64xbf16>
    %cst_34 = arith.constant dense<0.000000e+00> : vector<17x17xf32>
    %72 = tpu.matmul %70, %71, %cst_34 {dimension_numbers = #tpu.dot_dimension_numbers<[1], [1], [0], [0], [0, 0, 1, 0], [], []>} : vector<17x64xbf16>, vector<17x64xbf16>, vector<17x17xf32> -> vector<17x17xf32>
    %cst_35 = arith.constant 1.250000e-01 : f32
    %73 = vector.broadcast %cst_35 : f32 to vector<17x17xf32>
    %74 = arith.mulf %72, %73 : vector<17x17xf32>
    %cst_36 = arith.constant dense<0xFF800000> : vector<17xf32>
    %75 = vector.multi_reduction <maximumf>, %74, %cst_36 [1] : vector<17x17xf32> to vector<17xf32>
    %76 = vector.shape_cast %75 : vector<17xf32> to vector<17x1xf32>
    %77 = vector.broadcast %76 : vector<17x1xf32> to vector<17x17xf32>
    %78 = arith.subf %74, %77 : vector<17x17xf32>
    %79 = math.exp %78 : vector<17x17xf32>
    %cst_37 = arith.constant dense<0.000000e+00> : vector<17xf32>
    %80 = vector.multi_reduction <add>, %79, %cst_37 [1] : vector<17x17xf32> to vector<17xf32>
    %81 = vector.shape_cast %80 : vector<17xf32> to vector<17x1xf32>
    %82 = vector.broadcast %81 : vector<17x1xf32> to vector<17x17xf32>
    %83 = arith.divf %79, %82 : vector<17x17xf32>
    %84 = arith.truncf %83 : vector<17x17xf32> to vector<17x17xbf16>
    %85 = arith.truncf %69 : vector<17x64xf32> to vector<17x64xbf16>
    %cst_38 = arith.constant dense<0.000000e+00> : vector<17x64xf32>
    %86 = tpu.matmul %84, %85, %cst_38 {dimension_numbers = #tpu.dot_dimension_numbers<[1], [0], [0], [1], [0, 0, 1, 1], [], []>} : vector<17x17xbf16>, vector<17x64xbf16>, vector<17x64xf32> -> vector<17x64xf32>
    %87 = tpu.concatenate %66, %86 in 1 : vector<17x64xf32>, vector<17x64xf32> -> vector<17x128xf32>
    %88 = arith.truncf %87 : vector<17x128xf32> to vector<17x128xbf16>
    %c0_39 = arith.constant 0 : index
    %c0_40 = arith.constant 0 : index
    %c0_41 = arith.constant 0 : index
    %89 = vector.load %arg10[%c0_39, %c0_40, %c0_41] : memref<2x128x128xbf16, #tpu.memory_space<vmem>>, vector<1x128x128xbf16>
    %90 = vector.shape_cast %89 : vector<1x128x128xbf16> to vector<128x128xbf16>
    %cst_42 = arith.constant dense<0.000000e+00> : vector<17x128xf32>
    %91 = tpu.matmul %88, %90, %cst_42 {dimension_numbers = #tpu.dot_dimension_numbers<[1], [0], [0], [1], [0, 0, 1, 1], [], []>} : vector<17x128xbf16>, vector<128x128xbf16>, vector<17x128xf32> -> vector<17x128xf32>
    %92 = arith.addf %10, %91 : vector<17x128xf32>
    %c0_43 = arith.constant 0 : index
    %c0_44 = arith.constant 0 : index
    %c0_45 = arith.constant 0 : index
    %93 = vector.load %arg11[%c0_43, %c0_44, %c0_45] : memref<2x1x128xf32, #tpu.memory_space<vmem>>, vector<1x1x128xf32>
    %94 = vector.shape_cast %93 : vector<1x1x128xf32> to vector<1x128xf32>
    %95 = vector.broadcast %94 : vector<1x128xf32> to vector<17x128xf32>
    %96 = arith.addf %92, %95 : vector<17x128xf32>
    %c0_46 = arith.constant 0 : index
    %c0_47 = arith.constant 0 : index
    %c0_48 = arith.constant 0 : index
    %97 = vector.load %arg12[%c0_46, %c0_47, %c0_48] : memref<2x1x128xf32, #tpu.memory_space<vmem>>, vector<1x1x128xf32>
    %98 = vector.shape_cast %97 : vector<1x1x128xf32> to vector<1x128xf32>
    %c0_49 = arith.constant 0 : index
    %c0_50 = arith.constant 0 : index
    %c0_51 = arith.constant 0 : index
    %99 = vector.load %arg13[%c0_49, %c0_50, %c0_51] : memref<2x1x128xf32, #tpu.memory_space<vmem>>, vector<1x1x128xf32>
    %100 = vector.shape_cast %99 : vector<1x1x128xf32> to vector<1x128xf32>
    %cst_52 = arith.constant dense<0.000000e+00> : vector<17xf32>
    %101 = vector.multi_reduction <add>, %96, %cst_52 [1] : vector<17x128xf32> to vector<17xf32>
    %102 = vector.shape_cast %101 : vector<17xf32> to vector<17x1xf32>
    %cst_53 = arith.constant 1.280000e+02 : f32
    %103 = vector.broadcast %cst_53 : f32 to vector<17x1xf32>
    %104 = arith.divf %102, %103 : vector<17x1xf32>
    %105 = arith.mulf %96, %96 : vector<17x128xf32>
    %cst_54 = arith.constant dense<0.000000e+00> : vector<17xf32>
    %106 = vector.multi_reduction <add>, %105, %cst_54 [1] : vector<17x128xf32> to vector<17xf32>
    %107 = vector.shape_cast %106 : vector<17xf32> to vector<17x1xf32>
    %cst_55 = arith.constant 1.280000e+02 : f32
    %108 = vector.broadcast %cst_55 : f32 to vector<17x1xf32>
    %109 = arith.divf %107, %108 : vector<17x1xf32>
    %110 = arith.mulf %104, %104 : vector<17x1xf32>
    %111 = arith.subf %109, %110 : vector<17x1xf32>
    %cst_56 = arith.constant 0.000000e+00 : f32
    %112 = vector.broadcast %cst_56 : f32 to vector<17x1xf32>
    %113 = arith.maximumf %111, %112 : vector<17x1xf32>
    %114 = vector.broadcast %104 : vector<17x1xf32> to vector<17x128xf32>
    %115 = arith.subf %96, %114 : vector<17x128xf32>
    %cst_57 = arith.constant 9.99999997E-7 : f32
    %116 = vector.broadcast %cst_57 : f32 to vector<17x1xf32>
    %117 = arith.addf %113, %116 : vector<17x1xf32>
    %118 = math.rsqrt %117 : vector<17x1xf32>
    %119 = vector.broadcast %118 : vector<17x1xf32> to vector<17x128xf32>
    %120 = arith.mulf %115, %119 : vector<17x128xf32>
    %121 = vector.broadcast %98 : vector<1x128xf32> to vector<17x128xf32>
    %122 = arith.mulf %120, %121 : vector<17x128xf32>
    %123 = vector.broadcast %100 : vector<1x128xf32> to vector<17x128xf32>
    %124 = arith.addf %122, %123 : vector<17x128xf32>
    %125 = arith.truncf %124 : vector<17x128xf32> to vector<17x128xbf16>
    %c0_58 = arith.constant 0 : index
    %c0_59 = arith.constant 0 : index
    %c0_60 = arith.constant 0 : index
    %126 = vector.load %arg14[%c0_58, %c0_59, %c0_60] : memref<2x128x512xbf16, #tpu.memory_space<vmem>>, vector<1x128x512xbf16>
    %127 = vector.shape_cast %126 : vector<1x128x512xbf16> to vector<128x512xbf16>
    %cst_61 = arith.constant dense<0.000000e+00> : vector<17x512xf32>
    %128 = tpu.matmul %125, %127, %cst_61 {dimension_numbers = #tpu.dot_dimension_numbers<[1], [0], [0], [1], [0, 0, 1, 1], [], []>} : vector<17x128xbf16>, vector<128x512xbf16>, vector<17x512xf32> -> vector<17x512xf32>
    %c0_62 = arith.constant 0 : index
    %c0_63 = arith.constant 0 : index
    %c0_64 = arith.constant 0 : index
    %129 = vector.load %arg15[%c0_62, %c0_63, %c0_64] : memref<2x1x512xf32, #tpu.memory_space<vmem>>, vector<1x1x512xf32>
    %130 = vector.shape_cast %129 : vector<1x1x512xf32> to vector<1x512xf32>
    %131 = vector.broadcast %130 : vector<1x512xf32> to vector<17x512xf32>
    %132 = arith.addf %128, %131 : vector<17x512xf32>
    %133 = arith.mulf %132, %132 : vector<17x512xf32>
    %134 = arith.mulf %132, %133 : vector<17x512xf32>
    %cst_65 = arith.constant 4.471500e-02 : f32
    %135 = vector.broadcast %cst_65 : f32 to vector<17x512xf32>
    %136 = arith.mulf %135, %134 : vector<17x512xf32>
    %137 = arith.addf %132, %136 : vector<17x512xf32>
    %cst_66 = arith.constant 0.797884583 : f32
    %138 = vector.broadcast %cst_66 : f32 to vector<17x512xf32>
    %139 = arith.mulf %138, %137 : vector<17x512xf32>
    %140 = math.tanh %139 : vector<17x512xf32>
    %cst_67 = arith.constant 1.000000e+00 : f32
    %141 = vector.broadcast %cst_67 : f32 to vector<17x512xf32>
    %142 = arith.addf %141, %140 : vector<17x512xf32>
    %cst_68 = arith.constant 5.000000e-01 : f32
    %143 = vector.broadcast %cst_68 : f32 to vector<17x512xf32>
    %144 = arith.mulf %143, %142 : vector<17x512xf32>
    %145 = arith.mulf %132, %144 : vector<17x512xf32>
    %146 = arith.truncf %145 : vector<17x512xf32> to vector<17x512xbf16>
    %c0_69 = arith.constant 0 : index
    %c0_70 = arith.constant 0 : index
    %c0_71 = arith.constant 0 : index
    %147 = vector.load %arg16[%c0_69, %c0_70, %c0_71] : memref<2x512x128xbf16, #tpu.memory_space<vmem>>, vector<1x512x128xbf16>
    %148 = vector.shape_cast %147 : vector<1x512x128xbf16> to vector<512x128xbf16>
    %cst_72 = arith.constant dense<0.000000e+00> : vector<17x128xf32>
    %149 = tpu.matmul %146, %148, %cst_72 {dimension_numbers = #tpu.dot_dimension_numbers<[1], [0], [0], [1], [0, 0, 1, 1], [], []>} : vector<17x512xbf16>, vector<512x128xbf16>, vector<17x128xf32> -> vector<17x128xf32>
    %150 = arith.addf %96, %149 : vector<17x128xf32>
    %c0_73 = arith.constant 0 : index
    %c0_74 = arith.constant 0 : index
    %c0_75 = arith.constant 0 : index
    %151 = vector.load %arg17[%c0_73, %c0_74, %c0_75] : memref<2x1x128xf32, #tpu.memory_space<vmem>>, vector<1x1x128xf32>
    %152 = vector.shape_cast %151 : vector<1x1x128xf32> to vector<1x128xf32>
    %153 = vector.broadcast %152 : vector<1x128xf32> to vector<17x128xf32>
    %154 = arith.addf %150, %153 : vector<17x128xf32>
    %c1 = arith.constant 1 : index
    %c0_76 = arith.constant 0 : index
    %c0_77 = arith.constant 0 : index
    %155 = vector.load %arg6[%c1, %c0_76, %c0_77] : memref<2x1x128xf32, #tpu.memory_space<vmem>>, vector<1x1x128xf32>
    %156 = vector.shape_cast %155 : vector<1x1x128xf32> to vector<1x128xf32>
    %c1_78 = arith.constant 1 : index
    %c0_79 = arith.constant 0 : index
    %c0_80 = arith.constant 0 : index
    %157 = vector.load %arg7[%c1_78, %c0_79, %c0_80] : memref<2x1x128xf32, #tpu.memory_space<vmem>>, vector<1x1x128xf32>
    %158 = vector.shape_cast %157 : vector<1x1x128xf32> to vector<1x128xf32>
    %cst_81 = arith.constant dense<0.000000e+00> : vector<17xf32>
    %159 = vector.multi_reduction <add>, %154, %cst_81 [1] : vector<17x128xf32> to vector<17xf32>
    %160 = vector.shape_cast %159 : vector<17xf32> to vector<17x1xf32>
    %cst_82 = arith.constant 1.280000e+02 : f32
    %161 = vector.broadcast %cst_82 : f32 to vector<17x1xf32>
    %162 = arith.divf %160, %161 : vector<17x1xf32>
    %163 = arith.mulf %154, %154 : vector<17x128xf32>
    %cst_83 = arith.constant dense<0.000000e+00> : vector<17xf32>
    %164 = vector.multi_reduction <add>, %163, %cst_83 [1] : vector<17x128xf32> to vector<17xf32>
    %165 = vector.shape_cast %164 : vector<17xf32> to vector<17x1xf32>
    %cst_84 = arith.constant 1.280000e+02 : f32
    %166 = vector.broadcast %cst_84 : f32 to vector<17x1xf32>
    %167 = arith.divf %165, %166 : vector<17x1xf32>
    %168 = arith.mulf %162, %162 : vector<17x1xf32>
    %169 = arith.subf %167, %168 : vector<17x1xf32>
    %cst_85 = arith.constant 0.000000e+00 : f32
    %170 = vector.broadcast %cst_85 : f32 to vector<17x1xf32>
    %171 = arith.maximumf %169, %170 : vector<17x1xf32>
    %172 = vector.broadcast %162 : vector<17x1xf32> to vector<17x128xf32>
    %173 = arith.subf %154, %172 : vector<17x128xf32>
    %cst_86 = arith.constant 9.99999997E-7 : f32
    %174 = vector.broadcast %cst_86 : f32 to vector<17x1xf32>
    %175 = arith.addf %171, %174 : vector<17x1xf32>
    %176 = math.rsqrt %175 : vector<17x1xf32>
    %177 = vector.broadcast %176 : vector<17x1xf32> to vector<17x128xf32>
    %178 = arith.mulf %173, %177 : vector<17x128xf32>
    %179 = vector.broadcast %156 : vector<1x128xf32> to vector<17x128xf32>
    %180 = arith.mulf %178, %179 : vector<17x128xf32>
    %181 = vector.broadcast %158 : vector<1x128xf32> to vector<17x128xf32>
    %182 = arith.addf %180, %181 : vector<17x128xf32>
    %183 = arith.truncf %182 : vector<17x128xf32> to vector<17x128xbf16>
    %c1_87 = arith.constant 1 : index
    %c0_88 = arith.constant 0 : index
    %c0_89 = arith.constant 0 : index
    %184 = vector.load %arg8[%c1_87, %c0_88, %c0_89] : memref<2x128x384xbf16, #tpu.memory_space<vmem>>, vector<1x128x384xbf16>
    %185 = vector.shape_cast %184 : vector<1x128x384xbf16> to vector<128x384xbf16>
    %cst_90 = arith.constant dense<0.000000e+00> : vector<17x384xf32>
    %186 = tpu.matmul %183, %185, %cst_90 {dimension_numbers = #tpu.dot_dimension_numbers<[1], [0], [0], [1], [0, 0, 1, 1], [], []>} : vector<17x128xbf16>, vector<128x384xbf16>, vector<17x384xf32> -> vector<17x384xf32>
    %c1_91 = arith.constant 1 : index
    %c0_92 = arith.constant 0 : index
    %c0_93 = arith.constant 0 : index
    %187 = vector.load %arg9[%c1_91, %c0_92, %c0_93] : memref<2x1x384xf32, #tpu.memory_space<vmem>>, vector<1x1x384xf32>
    %188 = vector.shape_cast %187 : vector<1x1x384xf32> to vector<1x384xf32>
    %189 = vector.broadcast %188 : vector<1x384xf32> to vector<17x384xf32>
    %190 = arith.addf %186, %189 : vector<17x384xf32>
    %191 = vector.extract_strided_slice %190 {offsets = [0, 0], sizes = [17, 64], strides = [1, 1]} : vector<17x384xf32> to vector<17x64xf32>
    %192 = vector.extract_strided_slice %190 {offsets = [0, 128], sizes = [17, 64], strides = [1, 1]} : vector<17x384xf32> to vector<17x64xf32>
    %193 = vector.extract_strided_slice %190 {offsets = [0, 256], sizes = [17, 64], strides = [1, 1]} : vector<17x384xf32> to vector<17x64xf32>
    %194 = arith.truncf %191 : vector<17x64xf32> to vector<17x64xbf16>
    %195 = arith.truncf %192 : vector<17x64xf32> to vector<17x64xbf16>
    %cst_94 = arith.constant dense<0.000000e+00> : vector<17x17xf32>
    %196 = tpu.matmul %194, %195, %cst_94 {dimension_numbers = #tpu.dot_dimension_numbers<[1], [1], [0], [0], [0, 0, 1, 0], [], []>} : vector<17x64xbf16>, vector<17x64xbf16>, vector<17x17xf32> -> vector<17x17xf32>
    %cst_95 = arith.constant 1.250000e-01 : f32
    %197 = vector.broadcast %cst_95 : f32 to vector<17x17xf32>
    %198 = arith.mulf %196, %197 : vector<17x17xf32>
    %cst_96 = arith.constant dense<0xFF800000> : vector<17xf32>
    %199 = vector.multi_reduction <maximumf>, %198, %cst_96 [1] : vector<17x17xf32> to vector<17xf32>
    %200 = vector.shape_cast %199 : vector<17xf32> to vector<17x1xf32>
    %201 = vector.broadcast %200 : vector<17x1xf32> to vector<17x17xf32>
    %202 = arith.subf %198, %201 : vector<17x17xf32>
    %203 = math.exp %202 : vector<17x17xf32>
    %cst_97 = arith.constant dense<0.000000e+00> : vector<17xf32>
    %204 = vector.multi_reduction <add>, %203, %cst_97 [1] : vector<17x17xf32> to vector<17xf32>
    %205 = vector.shape_cast %204 : vector<17xf32> to vector<17x1xf32>
    %206 = vector.broadcast %205 : vector<17x1xf32> to vector<17x17xf32>
    %207 = arith.divf %203, %206 : vector<17x17xf32>
    %208 = arith.truncf %207 : vector<17x17xf32> to vector<17x17xbf16>
    %209 = arith.truncf %193 : vector<17x64xf32> to vector<17x64xbf16>
    %cst_98 = arith.constant dense<0.000000e+00> : vector<17x64xf32>
    %210 = tpu.matmul %208, %209, %cst_98 {dimension_numbers = #tpu.dot_dimension_numbers<[1], [0], [0], [1], [0, 0, 1, 1], [], []>} : vector<17x17xbf16>, vector<17x64xbf16>, vector<17x64xf32> -> vector<17x64xf32>
    %211 = vector.extract_strided_slice %190 {offsets = [0, 64], sizes = [17, 64], strides = [1, 1]} : vector<17x384xf32> to vector<17x64xf32>
    %212 = vector.extract_strided_slice %190 {offsets = [0, 192], sizes = [17, 64], strides = [1, 1]} : vector<17x384xf32> to vector<17x64xf32>
    %213 = vector.extract_strided_slice %190 {offsets = [0, 320], sizes = [17, 64], strides = [1, 1]} : vector<17x384xf32> to vector<17x64xf32>
    %214 = arith.truncf %211 : vector<17x64xf32> to vector<17x64xbf16>
    %215 = arith.truncf %212 : vector<17x64xf32> to vector<17x64xbf16>
    %cst_99 = arith.constant dense<0.000000e+00> : vector<17x17xf32>
    %216 = tpu.matmul %214, %215, %cst_99 {dimension_numbers = #tpu.dot_dimension_numbers<[1], [1], [0], [0], [0, 0, 1, 0], [], []>} : vector<17x64xbf16>, vector<17x64xbf16>, vector<17x17xf32> -> vector<17x17xf32>
    %cst_100 = arith.constant 1.250000e-01 : f32
    %217 = vector.broadcast %cst_100 : f32 to vector<17x17xf32>
    %218 = arith.mulf %216, %217 : vector<17x17xf32>
    %cst_101 = arith.constant dense<0xFF800000> : vector<17xf32>
    %219 = vector.multi_reduction <maximumf>, %218, %cst_101 [1] : vector<17x17xf32> to vector<17xf32>
    %220 = vector.shape_cast %219 : vector<17xf32> to vector<17x1xf32>
    %221 = vector.broadcast %220 : vector<17x1xf32> to vector<17x17xf32>
    %222 = arith.subf %218, %221 : vector<17x17xf32>
    %223 = math.exp %222 : vector<17x17xf32>
    %cst_102 = arith.constant dense<0.000000e+00> : vector<17xf32>
    %224 = vector.multi_reduction <add>, %223, %cst_102 [1] : vector<17x17xf32> to vector<17xf32>
    %225 = vector.shape_cast %224 : vector<17xf32> to vector<17x1xf32>
    %226 = vector.broadcast %225 : vector<17x1xf32> to vector<17x17xf32>
    %227 = arith.divf %223, %226 : vector<17x17xf32>
    %228 = arith.truncf %227 : vector<17x17xf32> to vector<17x17xbf16>
    %229 = arith.truncf %213 : vector<17x64xf32> to vector<17x64xbf16>
    %cst_103 = arith.constant dense<0.000000e+00> : vector<17x64xf32>
    %230 = tpu.matmul %228, %229, %cst_103 {dimension_numbers = #tpu.dot_dimension_numbers<[1], [0], [0], [1], [0, 0, 1, 1], [], []>} : vector<17x17xbf16>, vector<17x64xbf16>, vector<17x64xf32> -> vector<17x64xf32>
    %231 = tpu.concatenate %210, %230 in 1 : vector<17x64xf32>, vector<17x64xf32> -> vector<17x128xf32>
    %232 = arith.truncf %231 : vector<17x128xf32> to vector<17x128xbf16>
    %c1_104 = arith.constant 1 : index
    %c0_105 = arith.constant 0 : index
    %c0_106 = arith.constant 0 : index
    %233 = vector.load %arg10[%c1_104, %c0_105, %c0_106] : memref<2x128x128xbf16, #tpu.memory_space<vmem>>, vector<1x128x128xbf16>
    %234 = vector.shape_cast %233 : vector<1x128x128xbf16> to vector<128x128xbf16>
    %cst_107 = arith.constant dense<0.000000e+00> : vector<17x128xf32>
    %235 = tpu.matmul %232, %234, %cst_107 {dimension_numbers = #tpu.dot_dimension_numbers<[1], [0], [0], [1], [0, 0, 1, 1], [], []>} : vector<17x128xbf16>, vector<128x128xbf16>, vector<17x128xf32> -> vector<17x128xf32>
    %236 = arith.addf %154, %235 : vector<17x128xf32>
    %c1_108 = arith.constant 1 : index
    %c0_109 = arith.constant 0 : index
    %c0_110 = arith.constant 0 : index
    %237 = vector.load %arg11[%c1_108, %c0_109, %c0_110] : memref<2x1x128xf32, #tpu.memory_space<vmem>>, vector<1x1x128xf32>
    %238 = vector.shape_cast %237 : vector<1x1x128xf32> to vector<1x128xf32>
    %239 = vector.broadcast %238 : vector<1x128xf32> to vector<17x128xf32>
    %240 = arith.addf %236, %239 : vector<17x128xf32>
    %c1_111 = arith.constant 1 : index
    %c0_112 = arith.constant 0 : index
    %c0_113 = arith.constant 0 : index
    %241 = vector.load %arg12[%c1_111, %c0_112, %c0_113] : memref<2x1x128xf32, #tpu.memory_space<vmem>>, vector<1x1x128xf32>
    %242 = vector.shape_cast %241 : vector<1x1x128xf32> to vector<1x128xf32>
    %c1_114 = arith.constant 1 : index
    %c0_115 = arith.constant 0 : index
    %c0_116 = arith.constant 0 : index
    %243 = vector.load %arg13[%c1_114, %c0_115, %c0_116] : memref<2x1x128xf32, #tpu.memory_space<vmem>>, vector<1x1x128xf32>
    %244 = vector.shape_cast %243 : vector<1x1x128xf32> to vector<1x128xf32>
    %cst_117 = arith.constant dense<0.000000e+00> : vector<17xf32>
    %245 = vector.multi_reduction <add>, %240, %cst_117 [1] : vector<17x128xf32> to vector<17xf32>
    %246 = vector.shape_cast %245 : vector<17xf32> to vector<17x1xf32>
    %cst_118 = arith.constant 1.280000e+02 : f32
    %247 = vector.broadcast %cst_118 : f32 to vector<17x1xf32>
    %248 = arith.divf %246, %247 : vector<17x1xf32>
    %249 = arith.mulf %240, %240 : vector<17x128xf32>
    %cst_119 = arith.constant dense<0.000000e+00> : vector<17xf32>
    %250 = vector.multi_reduction <add>, %249, %cst_119 [1] : vector<17x128xf32> to vector<17xf32>
    %251 = vector.shape_cast %250 : vector<17xf32> to vector<17x1xf32>
    %cst_120 = arith.constant 1.280000e+02 : f32
    %252 = vector.broadcast %cst_120 : f32 to vector<17x1xf32>
    %253 = arith.divf %251, %252 : vector<17x1xf32>
    %254 = arith.mulf %248, %248 : vector<17x1xf32>
    %255 = arith.subf %253, %254 : vector<17x1xf32>
    %cst_121 = arith.constant 0.000000e+00 : f32
    %256 = vector.broadcast %cst_121 : f32 to vector<17x1xf32>
    %257 = arith.maximumf %255, %256 : vector<17x1xf32>
    %258 = vector.broadcast %248 : vector<17x1xf32> to vector<17x128xf32>
    %259 = arith.subf %240, %258 : vector<17x128xf32>
    %cst_122 = arith.constant 9.99999997E-7 : f32
    %260 = vector.broadcast %cst_122 : f32 to vector<17x1xf32>
    %261 = arith.addf %257, %260 : vector<17x1xf32>
    %262 = math.rsqrt %261 : vector<17x1xf32>
    %263 = vector.broadcast %262 : vector<17x1xf32> to vector<17x128xf32>
    %264 = arith.mulf %259, %263 : vector<17x128xf32>
    %265 = vector.broadcast %242 : vector<1x128xf32> to vector<17x128xf32>
    %266 = arith.mulf %264, %265 : vector<17x128xf32>
    %267 = vector.broadcast %244 : vector<1x128xf32> to vector<17x128xf32>
    %268 = arith.addf %266, %267 : vector<17x128xf32>
    %269 = arith.truncf %268 : vector<17x128xf32> to vector<17x128xbf16>
    %c1_123 = arith.constant 1 : index
    %c0_124 = arith.constant 0 : index
    %c0_125 = arith.constant 0 : index
    %270 = vector.load %arg14[%c1_123, %c0_124, %c0_125] : memref<2x128x512xbf16, #tpu.memory_space<vmem>>, vector<1x128x512xbf16>
    %271 = vector.shape_cast %270 : vector<1x128x512xbf16> to vector<128x512xbf16>
    %cst_126 = arith.constant dense<0.000000e+00> : vector<17x512xf32>
    %272 = tpu.matmul %269, %271, %cst_126 {dimension_numbers = #tpu.dot_dimension_numbers<[1], [0], [0], [1], [0, 0, 1, 1], [], []>} : vector<17x128xbf16>, vector<128x512xbf16>, vector<17x512xf32> -> vector<17x512xf32>
    %c1_127 = arith.constant 1 : index
    %c0_128 = arith.constant 0 : index
    %c0_129 = arith.constant 0 : index
    %273 = vector.load %arg15[%c1_127, %c0_128, %c0_129] : memref<2x1x512xf32, #tpu.memory_space<vmem>>, vector<1x1x512xf32>
    %274 = vector.shape_cast %273 : vector<1x1x512xf32> to vector<1x512xf32>
    %275 = vector.broadcast %274 : vector<1x512xf32> to vector<17x512xf32>
    %276 = arith.addf %272, %275 : vector<17x512xf32>
    %277 = arith.mulf %276, %276 : vector<17x512xf32>
    %278 = arith.mulf %276, %277 : vector<17x512xf32>
    %cst_130 = arith.constant 4.471500e-02 : f32
    %279 = vector.broadcast %cst_130 : f32 to vector<17x512xf32>
    %280 = arith.mulf %279, %278 : vector<17x512xf32>
    %281 = arith.addf %276, %280 : vector<17x512xf32>
    %cst_131 = arith.constant 0.797884583 : f32
    %282 = vector.broadcast %cst_131 : f32 to vector<17x512xf32>
    %283 = arith.mulf %282, %281 : vector<17x512xf32>
    %284 = math.tanh %283 : vector<17x512xf32>
    %cst_132 = arith.constant 1.000000e+00 : f32
    %285 = vector.broadcast %cst_132 : f32 to vector<17x512xf32>
    %286 = arith.addf %285, %284 : vector<17x512xf32>
    %cst_133 = arith.constant 5.000000e-01 : f32
    %287 = vector.broadcast %cst_133 : f32 to vector<17x512xf32>
    %288 = arith.mulf %287, %286 : vector<17x512xf32>
    %289 = arith.mulf %276, %288 : vector<17x512xf32>
    %290 = arith.truncf %289 : vector<17x512xf32> to vector<17x512xbf16>
    %c1_134 = arith.constant 1 : index
    %c0_135 = arith.constant 0 : index
    %c0_136 = arith.constant 0 : index
    %291 = vector.load %arg16[%c1_134, %c0_135, %c0_136] : memref<2x512x128xbf16, #tpu.memory_space<vmem>>, vector<1x512x128xbf16>
    %292 = vector.shape_cast %291 : vector<1x512x128xbf16> to vector<512x128xbf16>
    %cst_137 = arith.constant dense<0.000000e+00> : vector<17x128xf32>
    %293 = tpu.matmul %290, %292, %cst_137 {dimension_numbers = #tpu.dot_dimension_numbers<[1], [0], [0], [1], [0, 0, 1, 1], [], []>} : vector<17x512xbf16>, vector<512x128xbf16>, vector<17x128xf32> -> vector<17x128xf32>
    %294 = arith.addf %240, %293 : vector<17x128xf32>
    %c1_138 = arith.constant 1 : index
    %c0_139 = arith.constant 0 : index
    %c0_140 = arith.constant 0 : index
    %295 = vector.load %arg17[%c1_138, %c0_139, %c0_140] : memref<2x1x128xf32, #tpu.memory_space<vmem>>, vector<1x1x128xf32>
    %296 = vector.shape_cast %295 : vector<1x1x128xf32> to vector<1x128xf32>
    %297 = vector.broadcast %296 : vector<1x128xf32> to vector<17x128xf32>
    %298 = arith.addf %294, %297 : vector<17x128xf32>
    %299 = vector.extract_strided_slice %298 {offsets = [0, 0], sizes = [16, 128], strides = [1, 1]} : vector<17x128xf32> to vector<16x128xf32>
    %c0_141 = arith.constant 0 : index
    %c0_142 = arith.constant 0 : index
    %300 = vector.load %arg18[%c0_141, %c0_142] : memref<1x128xf32, #tpu.memory_space<vmem>>, vector<1x128xf32>
    %c0_143 = arith.constant 0 : index
    %c0_144 = arith.constant 0 : index
    %301 = vector.load %arg19[%c0_143, %c0_144] : memref<1x128xf32, #tpu.memory_space<vmem>>, vector<1x128xf32>
    %cst_145 = arith.constant dense<0.000000e+00> : vector<16xf32>
    %302 = vector.multi_reduction <add>, %299, %cst_145 [1] : vector<16x128xf32> to vector<16xf32>
    %303 = vector.shape_cast %302 : vector<16xf32> to vector<16x1xf32>
    %cst_146 = arith.constant 1.280000e+02 : f32
    %304 = vector.broadcast %cst_146 : f32 to vector<16x1xf32>
    %305 = arith.divf %303, %304 : vector<16x1xf32>
    %306 = arith.mulf %299, %299 : vector<16x128xf32>
    %cst_147 = arith.constant dense<0.000000e+00> : vector<16xf32>
    %307 = vector.multi_reduction <add>, %306, %cst_147 [1] : vector<16x128xf32> to vector<16xf32>
    %308 = vector.shape_cast %307 : vector<16xf32> to vector<16x1xf32>
    %cst_148 = arith.constant 1.280000e+02 : f32
    %309 = vector.broadcast %cst_148 : f32 to vector<16x1xf32>
    %310 = arith.divf %308, %309 : vector<16x1xf32>
    %311 = arith.mulf %305, %305 : vector<16x1xf32>
    %312 = arith.subf %310, %311 : vector<16x1xf32>
    %cst_149 = arith.constant 0.000000e+00 : f32
    %313 = vector.broadcast %cst_149 : f32 to vector<16x1xf32>
    %314 = arith.maximumf %312, %313 : vector<16x1xf32>
    %315 = vector.broadcast %305 : vector<16x1xf32> to vector<16x128xf32>
    %316 = arith.subf %299, %315 : vector<16x128xf32>
    %cst_150 = arith.constant 9.99999997E-7 : f32
    %317 = vector.broadcast %cst_150 : f32 to vector<16x1xf32>
    %318 = arith.addf %314, %317 : vector<16x1xf32>
    %319 = math.rsqrt %318 : vector<16x1xf32>
    %320 = vector.broadcast %319 : vector<16x1xf32> to vector<16x128xf32>
    %321 = arith.mulf %316, %320 : vector<16x128xf32>
    %322 = vector.broadcast %300 : vector<1x128xf32> to vector<16x128xf32>
    %323 = arith.mulf %321, %322 : vector<16x128xf32>
    %324 = vector.broadcast %301 : vector<1x128xf32> to vector<16x128xf32>
    %325 = arith.addf %323, %324 : vector<16x128xf32>
    %c0_151 = arith.constant 0 : index
    %c0_152 = arith.constant 0 : index
    %c0_153 = arith.constant 0 : index
    %326 = vector.load %arg20[%c0_151, %c0_152, %c0_153] : memref<1x16x128xf32, #tpu.memory_space<vmem>>, vector<1x16x128xf32>
    %327 = vector.shape_cast %326 : vector<1x16x128xf32> to vector<16x128xf32>
    %328 = vector.shape_cast %325 : vector<16x128xf32> to vector<1x16x128xf32>
    tpu.vector_store %arg20[%c0_151, %c0_152, %c0_153], %328 {strides = array<i32>} : memref<1x16x128xf32, #tpu.memory_space<vmem>>, vector<1x16x128xf32>,
    return
  }
  func.func @transform_0(%arg0: i32) -> (i32, i32, i32) {
    %c0_i32 = arith.constant 0 : i32
    %c0_i32_0 = arith.constant 0 : i32
    %c0_i32_1 = arith.constant 0 : i32
    return %arg0, %c0_i32, %c0_i32_0 : i32, i32, i32
  }
  func.func @transform_1(%arg0: i32) -> (i32, i32) {
    %c0_i32 = arith.constant 0 : i32
    %c0_i32_0 = arith.constant 0 : i32
    %c0_i32_1 = arith.constant 0 : i32
    return %c0_i32, %c0_i32_0 : i32, i32
  }
  func.func @transform_2(%arg0: i32) -> (i32, i32) {
    %c0_i32 = arith.constant 0 : i32
    %c0_i32_0 = arith.constant 0 : i32
    %c0_i32_1 = arith.constant 0 : i32
    return %c0_i32, %c0_i32_0 : i32, i32
  }
  func.func @transform_3(%arg0: i32) -> (i32, i32) {
    %c0_i32 = arith.constant 0 : i32
    %c0_i32_0 = arith.constant 0 : i32
    %c0_i32_1 = arith.constant 0 : i32
    return %c0_i32, %c0_i32_0 : i32, i32
  }
  func.func @transform_4(%arg0: i32) -> (i32, i32) {
    %c0_i32 = arith.constant 0 : i32
    %c0_i32_0 = arith.constant 0 : i32
    %c0_i32_1 = arith.constant 0 : i32
    return %c0_i32, %c0_i32_0 : i32, i32
  }
  func.func @transform_5(%arg0: i32) -> (i32, i32, i32) {
    %c0_i32 = arith.constant 0 : i32
    %c0_i32_0 = arith.constant 0 : i32
    %c0_i32_1 = arith.constant 0 : i32
    %c0_i32_2 = arith.constant 0 : i32
    return %c0_i32, %c0_i32_0, %c0_i32_1 : i32, i32, i32
  }
  func.func @transform_6(%arg0: i32) -> (i32, i32, i32) {
    %c0_i32 = arith.constant 0 : i32
    %c0_i32_0 = arith.constant 0 : i32
    %c0_i32_1 = arith.constant 0 : i32
    %c0_i32_2 = arith.constant 0 : i32
    return %c0_i32, %c0_i32_0, %c0_i32_1 : i32, i32, i32
  }
  func.func @transform_7(%arg0: i32) -> (i32, i32, i32) {
    %c0_i32 = arith.constant 0 : i32
    %c0_i32_0 = arith.constant 0 : i32
    %c0_i32_1 = arith.constant 0 : i32
    %c0_i32_2 = arith.constant 0 : i32
    return %c0_i32, %c0_i32_0, %c0_i32_1 : i32, i32, i32
  }
  func.func @transform_8(%arg0: i32) -> (i32, i32, i32) {
    %c0_i32 = arith.constant 0 : i32
    %c0_i32_0 = arith.constant 0 : i32
    %c0_i32_1 = arith.constant 0 : i32
    %c0_i32_2 = arith.constant 0 : i32
    return %c0_i32, %c0_i32_0, %c0_i32_1 : i32, i32, i32
  }
  func.func @transform_9(%arg0: i32) -> (i32, i32, i32) {
    %c0_i32 = arith.constant 0 : i32
    %c0_i32_0 = arith.constant 0 : i32
    %c0_i32_1 = arith.constant 0 : i32
    %c0_i32_2 = arith.constant 0 : i32
    return %c0_i32, %c0_i32_0, %c0_i32_1 : i32, i32, i32
  }
  func.func @transform_10(%arg0: i32) -> (i32, i32, i32) {
    %c0_i32 = arith.constant 0 : i32
    %c0_i32_0 = arith.constant 0 : i32
    %c0_i32_1 = arith.constant 0 : i32
    %c0_i32_2 = arith.constant 0 : i32
    return %c0_i32, %c0_i32_0, %c0_i32_1 : i32, i32, i32
  }
  func.func @transform_11(%arg0: i32) -> (i32, i32, i32) {
    %c0_i32 = arith.constant 0 : i32
    %c0_i32_0 = arith.constant 0 : i32
    %c0_i32_1 = arith.constant 0 : i32
    %c0_i32_2 = arith.constant 0 : i32
    return %c0_i32, %c0_i32_0, %c0_i32_1 : i32, i32, i32
  }
  func.func @transform_12(%arg0: i32) -> (i32, i32, i32) {
    %c0_i32 = arith.constant 0 : i32
    %c0_i32_0 = arith.constant 0 : i32
    %c0_i32_1 = arith.constant 0 : i32
    %c0_i32_2 = arith.constant 0 : i32
    return %c0_i32, %c0_i32_0, %c0_i32_1 : i32, i32, i32
  }
  func.func @transform_13(%arg0: i32) -> (i32, i32, i32) {
    %c0_i32 = arith.constant 0 : i32
    %c0_i32_0 = arith.constant 0 : i32
    %c0_i32_1 = arith.constant 0 : i32
    %c0_i32_2 = arith.constant 0 : i32
    return %c0_i32, %c0_i32_0, %c0_i32_1 : i32, i32, i32
  }
  func.func @transform_14(%arg0: i32) -> (i32, i32, i32) {
    %c0_i32 = arith.constant 0 : i32
    %c0_i32_0 = arith.constant 0 : i32
    %c0_i32_1 = arith.constant 0 : i32
    %c0_i32_2 = arith.constant 0 : i32
    return %c0_i32, %c0_i32_0, %c0_i32_1 : i32, i32, i32
  }
  func.func @transform_15(%arg0: i32) -> (i32, i32, i32) {
    %c0_i32 = arith.constant 0 : i32
    %c0_i32_0 = arith.constant 0 : i32
    %c0_i32_1 = arith.constant 0 : i32
    %c0_i32_2 = arith.constant 0 : i32
    return %c0_i32, %c0_i32_0, %c0_i32_1 : i32, i32, i32
  }
  func.func @transform_16(%arg0: i32) -> (i32, i32, i32) {
    %c0_i32 = arith.constant 0 : i32
    %c0_i32_0 = arith.constant 0 : i32
    %c0_i32_1 = arith.constant 0 : i32
    %c0_i32_2 = arith.constant 0 : i32
    return %c0_i32, %c0_i32_0, %c0_i32_1 : i32, i32, i32
  }
  func.func @transform_17(%arg0: i32) -> (i32, i32) {
    %c0_i32 = arith.constant 0 : i32
    %c0_i32_0 = arith.constant 0 : i32
    %c0_i32_1 = arith.constant 0 : i32
    return %c0_i32, %c0_i32_0 : i32, i32
  }
  func.func @transform_18(%arg0: i32) -> (i32, i32) {
    %c0_i32 = arith.constant 0 : i32
    %c0_i32_0 = arith.constant 0 : i32
    %c0_i32_1 = arith.constant 0 : i32
    return %c0_i32, %c0_i32_0 : i32, i32
  }
  func.func @transform_19(%arg0: i32) -> (i32, i32, i32) {
    %c0_i32 = arith.constant 0 : i32
    %c0_i32_0 = arith.constant 0 : i32
    %c0_i32_1 = arith.constant 0 : i32
    return %arg0, %c0_i32, %c0_i32_0 : i32, i32, i32
  }
}

</mosaic_0001>

<bundles_post_ra>
// kernel: dino_patch_forward.1
= control target key start
LH: loop header
LB: loop body
LE: loop exit
PB: predicated region body
PF: predicated region fallthrough
CT: control target
= control target key end

     0   :  { %s7399_s0 = inlined_call_operand.vmem [shape: bf16[2,16,640], index: 0, kind: input, shape index: {}]   ;;  %s7400_s1 = inlined_call_operand.vmem [shape: bf16[640,128], index: 1, kind: input, shape index: {}]   ;;  %s7401_s2 = inlined_call_operand.vmem [shape: f32[1,128], index: 2, kind: input, shape index: {}]   ;;  %s7402_s3 = inlined_call_operand.vmem [shape: f32[16,128], index: 3, kind: input, shape index: {}]   ;;  %s7403_s4 = inlined_call_operand.vmem [shape: f32[1,128], index: 4, kind: input, shape index: {}]   ;;  %s7404_s5 = inlined_call_operand.vmem [shape: f32[2,1,128], index: 5, kind: input, shape index: {}]   ;;  %s7405_s6 = inlined_call_operand.vmem [shape: f32[2,1,128], index: 6, kind: input, shape index: {}]   ;;  %s7406_s7 = inlined_call_operand.vmem [shape: bf16[2,128,384], index: 7, kind: input, shape index: {}]   ;;  %s7407_s8 = inlined_call_operand.vmem [shape: f32[2,1,384], index: 8, kind: input, shape index: {}]   ;;  %s7408_s9 = inlined_call_operand.vmem [shape: bf16[2,128,128], index: 9, kind: input, shape index: {}]   ;;  %s7409_s10 = inlined_call_operand.vmem [shape: f32[2,1,128], index: 10, kind: input, shape index: {}]   ;;  %s7410_s11 = inlined_call_operand.vmem [shape: f32[2,1,128], index: 11, kind: input, shape index: {}]   ;;  %s7411_s12 = inlined_call_operand.vmem [shape: f32[2,1,128], index: 12, kind: input, shape index: {}]   ;;  %s7412_s13 = inlined_call_operand.vmem [shape: bf16[2,128,512], index: 13, kind: input, shape index: {}]   ;;  %s7413_s14 = inlined_call_operand.vmem [shape: f32[2,1,512], index: 14, kind: input, shape index: {}]   ;;  %s7414_s15 = inlined_call_operand.vmem [shape: bf16[2,512,128], index: 15, kind: input, shape index: {}]   ;;  %s7415_s16 = inlined_call_operand.vmem [shape: f32[2,1,128], index: 16, kind: input, shape index: {}]   ;;  %s7416_s17 = inlined_call_operand.vmem [shape: f32[1,128], index: 17, kind: input, shape index: {}]   ;;  %s7417_s18 = inlined_call_operand.vmem [shape: f32[1,128], index: 18, kind: input, shape index: {}]   ;;  %s7418_s19 = inlined_call_operand.hbm [shape: f32[2,16,128], index: 19, kind: output, shape index: {}]  }
   0x1   :  { %7430 = sst [smem:[#allocation11_spill]] %s7399_s0 }
   0x2   :  { %7431 = sst [smem:[#allocation12_spill]] %s7400_s1 }
   0x3   :  { %7432 = sst [smem:[#allocation13_spill]] %s7401_s2 }
   0x4   :  { %7433 = sst [smem:[#allocation14_spill]] %s7402_s3 }
   0x5   :  { %7434 = sst [smem:[#allocation15_spill]] %s7403_s4 }
   0x6   :  { %7435 = sst [smem:[#allocation16_spill]] %s7404_s5 }
   0x7   :  { %7436 = sst [smem:[#allocation17_spill]] %s7418_s19 }
   0x8   :  { %24 = vsyncpa [#allocation3], 0 }
   0x9   :  { %26 = vsyncpa [#allocation3 + $0x1], 0  ;;  %s6069_s0 = smov 0   ;;  %s6071_s30 = smov 0  }
   0xa   :  { %s6073_s20 = smov 0   ;;  %s6075_s21 = smov 0  }
   0xb LB: > { %7437 = sst [smem:[#allocation5_spill]] %s5948_s0  ;;  %s6090_s1 = sadd.s32 4294967295, %s5960_s21   ;;  %s5960_s21 = sphi %s6075_s21, %s7456_s21   ;;  %s5956_s20 = sphi %s6073_s20, %s7458_s20   ;;  %s5952_s30 = sphi %s6071_s30, %s7460_s30   ;;  %s5948_s0 = sphi %s6069_s0, %s7459_s0  }
   0xc   : > { %7438 = sst [smem:[#allocation6_spill]] %s5956_s20  ;;  %s4592_s22 = sadd.s32 4294967294, %s5960_s21  }
   0xd   : > { %7439 = sst [smem:[#allocation7_spill]] %s5960_s21  ;;  %s6094_s2 = sadd.s32 1, %s5960_s21  }
   0xe   : > { %7440 = sst [smem:[#allocation8_spill]] %s6094_s2  ;;  %s443_s23 = sadd.s32 1, %s5956_s20 }
   0xf   : > { %s440_s24 = ssub.s32 %s5960_s21, %s6094_s2  ;;  %p453_p0 = scmp.ne.s32.totalorder %s5956_s20, %s5952_s30 }
  0x10   : > { %p441_p1 = scmp.eq.s32.totalorder %s440_s24, 0  ;;  %p454_p2 = scmp.eq.s32.totalorder %s6090_s1, 1 }
  0x11   : > { %p459_p3 = scmp.ne.s32.totalorder %s5952_s30, %s5948_s0  ;;  %p460_p4 = scmp.eq.s32.totalorder %s4592_s22, 1 }
  0x12   : > { %s6105_s25 = scalar_select %p441_p1, %s5956_s20, %s443_s23  }
  0x13   : > { %p6107_p5 = por %p454_p2, %p453_p0  ;;  %p6111_p6 = por %p460_p4, %p459_p3 }
  0x14   : > { %7441 = sst [smem:[#allocation9_spill]] %s6105_s25  ;;  %p4595_p7 = scmp.ge.s32.totalorder %s5960_s21, 1 }
  0x15   : > { %s7443_s26 = scalar_select %p6111_p6, 1, 0 }
  0x16   : > { %p540_p8 = scmp.lt.s32.totalorder %s5960_s21, 3 }
  0x17   : > { %7444 = sst [smem:[#allocation10_spill]] %s7443_s26 }
  0x18   : > { %p541_p9 = pnand %p4595_p7, %p540_p8 }
  0x19   : > { %s7445_s29 = sld [smem:[#allocation12_spill]] (!%p541_p9)  ;;  %p596_p10 = scmp.lt.s32.totalorder (!%p541_p9), %s6090_s1, 1 }
  0x1a   : > { %544 = sbr.rel (%p541_p9) target bundleno = 5651 (0x1613), region = 96  ;;  %s7446_s19 = sld [smem:[#allocation11_spill]] (!%p541_p9) }
  0x1b   : > { %s7447_s23 = sld [smem:[#allocation13_spill]] (!%p541_p9)  ;;  %s7428_s26 = smov (!%p541_p9), 64  }
  0x1c   : > { %s7449_s4 = sld [smem:[#allocation15_spill]] (!%p541_p9)  ;;  %s7451_s20 = smov (!%p541_p9), 64  }
  0x1d   : > { %s7450_s5 = sld [smem:[#allocation16_spill]] (!%p541_p9) }
  0x1f   : > { %v5489_v0 = vld [vmem:[%s7445_s29 + $0x78] sm:$0xff]   ;;  %v5493_v4 = vld [vmem:[%s7445_s29 + $0x70] sm:$0xff]   ;;  %v5497_v8 = vld [vmem:[%s7445_s29 + $0x68] sm:$0xff]   ;;  %s597_s24 = scalar_select %p596_p10, %s6090_s1, 1  ;;  %v5962_v33 = vmov 0.0   ;;  %vm5963_vm0 = vmmov 0  }
  0x20   : > { %v5490_v1 = vld [vmem:[%s7445_s29 + $0x38] sm:$0xff]   ;;  %5024 = vmatprep.subr.bf16.mxu0 %v5489_v0  ;;  %v5494_v5 = vld [vmem:[%s7445_s29 + $0x30] sm:$0xff]   ;;  %v5498_v9 = vld [vmem:[%s7445_s29 + $0x28] sm:$0xff]   ;;  %vm1095_vm1 = vcmask 1040384   ;;  %vm1437_vm2 = vcmask 523264   ;;  %vm1501_vm3 = vcmask 138240  }
  0x21   : > { %v5491_v2 = vld [vmem:[%s7445_s29 + $0xf8] sm:$0xff]   ;;  %5025 = vmatpush3.bf16.msra.mxu0 %v5490_v1  ;;  %v5495_v6 = vld [vmem:[%s7445_s29 + $0xf0] sm:$0xff]   ;;  %v5499_v10 = vld [vmem:[%s7445_s29 + $0xe8] sm:$0xff]   ;;  %s5433_s28 = smul.u32 40, %s597_s24  ;;  %vm1508_vm4 = vcmask 131072  }
  0x22   : > { %v5492_v3 = vld [vmem:[%s7445_s29 + $0xb8] sm:$0xff]   ;;  %5046 = vmatprep.subr.bf16.mxu1 %v5491_v2  ;;  %5026 = vmatprep.subr.bf16.mxu0 %v5493_v4  ;;  %v5496_v7 = vld [vmem:[%s7445_s29 + $0xb0] sm:$0xff]   ;;  %v5500_v11 = vld [vmem:[%s7445_s29 + $0xa8] sm:$0xff]  }
  0x23   : > { %5047 = vmatpush3.bf16.msra.mxu1 %v5492_v3  ;;  %v5501_v12 = vld [vmem:[%s7445_s29 + $0x60] sm:$0xff]   ;;  %v5505_v16 = vld [vmem:[%s7445_s29 + $0x58] sm:$0xff]   ;;  %v5509_v20 = vld [vmem:[%s7445_s29 + $0x50] sm:$0xff]   ;;  %s6209_s21 = scalar_lea.vmem %s7446_s19, %s5433_s28  ;;  %s7448_s19 = sld [smem:[#allocation14_spill]] }
  0x24   : > { %5048 = vmatprep.subr.bf16.mxu1 %v5495_v6  ;;  %v5502_v13 = vld [vmem:[%s7445_s29 + $0x20] sm:$0xff]   ;;  %v5506_v17 = vld [vmem:[%s7445_s29 + $0x18] sm:$0xff]   ;;  %v5510_v21 = vld [vmem:[%s7445_s29 + $0x10] sm:$0xff]  }
  0x25   : > { %5027 = vmatpush3.bf16.msra.mxu0 %v5494_v5  ;;  %v5503_v14 = vld [vmem:[%s7445_s29 + $0xe0] sm:$0xff]   ;;  %v5507_v18 = vld [vmem:[%s7445_s29 + $0xd8] sm:$0xff]   ;;  %v5511_v22 = vld [vmem:[%s7445_s29 + $0xd0] sm:$0xff]  }
  0x26   : > { %5028 = vmatprep.subr.bf16.mxu0 %v5497_v8  ;;  %v5504_v15 = vld [vmem:[%s7445_s29 + $0xa0] sm:$0xff]   ;;  %v5508_v19 = vld [vmem:[%s7445_s29 + $0x98] sm:$0xff]   ;;  %v5512_v23 = vld [vmem:[%s7445_s29 + $0x90] sm:$0xff]  }
  0x27   : > { %5049 = vmatpush3.bf16.msra.mxu1 %v5496_v7  ;;  %v5513_v24 = vld [vmem:[%s7445_s29 + $0x48] sm:$0xff]   ;;  %v5517_v28 = vld [vmem:[%s7445_s29 + $0x40] sm:$0xff]   ;;  %v5527_v37 = vld [vmem:[%s7445_s29 + $0x138] sm:$0xff]  }
  0x28   : > { %5050 = vmatprep.subr.bf16.mxu1 %v5499_v10  ;;  %v5514_v25 = vld [vmem:[%s7445_s29 + $0x8] sm:$0xff]   ;;  %v5518_v29 = vld [vmem:[%s7445_s29] sm:$0xff]   ;;  %v5528_v38 = vld [vmem:[%s7445_s29 + $0x130] sm:$0xff]  }
  0x29   : > { %5029 = vmatpush3.bf16.msra.mxu0 %v5498_v9  ;;  %v5515_v26 = vld [vmem:[%s7445_s29 + $0xc8] sm:$0xff]   ;;  %v5519_v30 = vld [vmem:[%s7445_s29 + $0xc0] sm:$0xff]   ;;  %v5531_v41 = vld [vmem:[%s7445_s29 + $0x118] sm:$0xff]  }
  0x2a   : > { %5030 = vmatprep.subr.bf16.mxu0 %v5501_v12  ;;  %v5516_v27 = vld [vmem:[%s7445_s29 + $0x88] sm:$0xff]   ;;  %v5520_v31 = vld [vmem:[%s6209_s21] ss:$20 sps:$4 sm:$0xff]   ;;  %v5522_v32 = vld [vmem:[%s6209_s21 + $0x4] ss:$20 sps:$4 sm:$0xff]  }
  0x2b   : > { %5051 = vmatpush3.bf16.msra.mxu1 %v5500_v11  ;;  %v5523_v34 = vld [vmem:[%s7445_s29 + $0x80] sm:$0xff]   ;;  %993 = vmatprep.mubr.bf16.mxu0 %v5522_v32  ;;  %v5524_v35 = vld [vmem:[%s6209_s21 + $0x8] ss:$20 sps:$4 sm:$0xff]   ;;  %v5532_v42 = vld [vmem:[%s7445_s29 + $0x110] sm:$0xff]  }
  0x2c   : > { %5052 = vmatprep.subr.bf16.mxu1 %v5503_v14  ;;  %v5526_v36 = vld [vmem:[%s6209_s21 + $0xc] ss:$20 sps:$4 sm:$0xff]   ;;  %v5535_v45 = vld [vmem:[%s6209_s21 + $0x10] ss:$20 sps:$4 sm:$0xff]   ;;  %v5561_v32 = vld [vmem:[%s7406_s7 + $0x1c] ss:$12 sps:$4 sm:$0xff]  }
  0x2d   : > { %5031 = vmatpush3.bf16.msra.mxu0 %v5502_v13  ;;  %1034 = vmatprep.mubr.bf16.mxu1 %v5526_v36  ;;  %v5529_v39 = vld [vmem:[%s7445_s29 + $0x128] sm:$0xff]   ;;  %v5530_v40 = vld [vmem:[%s7445_s29 + $0x120] sm:$0xff]   ;;  %s593_s21 = sand.u32 1, %s5952_s30  }
  0x2e   : > { %5032 = vmatprep.subr.bf16.mxu0 %v5505_v16  ;;  %v5533_v43 = vld [vmem:[%s7445_s29 + $0x108] sm:$0xff]   ;;  %v5534_v44 = vld [vmem:[%s7445_s29 + $0x100] sm:$0xff]   ;;  %s4596_s0 = sshll.u32 %s593_s21, 4  ;;  %s7359_s2 = scalar_lea.sflag [#allocation3], %s593_s21 }
  0x2f   : > { %5053 = vmatpush3.bf16.msra.mxu1 %v5504_v15  ;;  %v4598_v52 = vld [vmem:[%s7447_s23] ss:$0 sm:$0xff]  ;;  %v1085_v5 = vld [vmem:[%s7448_s19 + $0x8] sm:$0xff]  ;;  %v5565_v36 = vld [vmem:[%s7406_s7 + $0x4] ss:$12 sps:$4 sm:$0xff]   ;;  %s595_s24 = scalar_lea.vmem [#allocation2], %s4596_s0 }
  0x30   : > { %5054 = vmatprep.subr.bf16.mxu1 %v5507_v18  ;;  %v1084_v63 = vld [vmem:[%s7448_s19] sm:$0xff]  ;;  %v5538_v15 = vld [vmem:[%s7406_s7 + $0xac] ss:$12 sps:$4 sm:$0xff]   ;;  %v5536_v16 = vld [vmem:[%s7406_s7 + $0xa8] ss:$12 sps:$4 sm:$0xff]   ;;  %s4530_s27 = sshll.u32 %s595_s24, 4  ;;  %s7357_s27 = int_to_ptr.vmem [resolvable:$true] %s4530_s27 }
  0x31   : > { %5033 = vmatpush3.bf16.msra.mxu0 %v5506_v17  ;;  %v6266_v8 = vld [vmem:[%s7449_s4] sm:$0x1]  ;;  %v5542_v18 = vld [vmem:[%s7406_s7 + $0xb0] ss:$12 sps:$4 sm:$0xff]   ;;  %s7452_s23 = sld [smem:[#allocation17_spill]]  ;;  %s5900_s4 = scalar_lea.vmem %s7357_s27, 256 }
  0x32   : > { %5034 = vmatprep.subr.bf16.mxu0 %v5509_v20  ;;  %v1105_v11 = vmul.f32 %v6266_v8, %v6266_v8  ;;  %v1096_v13 = vsel %vm1095_vm1, %v6266_v8, 0.0  ;;  %v5541_v17 = vld [vmem:[%s7406_s7 + $0x94] ss:$12 sps:$4 sm:$0xff]   ;;  %v5545_v20 = vld [vmem:[%s7406_s7 + $0x7c] ss:$12 sps:$4 sm:$0xff]   ;;  %p5901_p11 = scmp.ne.s32.totalorder %s7357_s27, %s5900_s4 }
  0x33   : > { %5055 = vmatpush3.bf16.msra.mxu1 %v5508_v19  ;;  %v5539_v19 = vld [vmem:[%s7406_s7 + $0x90] ss:$12 sps:$4 sm:$0xff]  }
  0x34   : > { %5056 = vmatprep.subr.bf16.mxu1 %v5511_v22  ;;  %v1110_v14 = vsel %vm1095_vm1, %v1105_v11, 0.0  ;;  %v5543_v22 = vld [vmem:[%s7406_s7 + $0x78] ss:$12 sps:$4 sm:$0xff]   ;;  %v4645_v11 = vld [vmem:[%s7405_s6] ss:$0 sm:$0xff]  ;;  %p5902_p12 = pnand %p5901_p11, %p6107_p5 }
  0x35   : > { %5035 = vmatpush3.bf16.msra.mxu0 %v5510_v21  ;;  %v5546_v21 = vld [vmem:[%s7406_s7 + $0x98] ss:$12 sps:$4 sm:$0xff]  }
  0x36   : > { %5036 = vmatprep.subr.bf16.mxu0 %v5513_v24  ;;  %v5550_v24 = vld [vmem:[%s7406_s7 + $0x80] ss:$12 sps:$4 sm:$0xff]   ;;  %p5903_p13 = pneg %p5902_p12 }
  0x37   : > { %5057 = vmatpush3.bf16.msra.mxu1 %v5512_v23  ;;  %v5549_v23 = vld [vmem:[%s7406_s7 + $0x64] ss:$12 sps:$4 sm:$0xff]  }
  0x38   : > { %5058 = vmatprep.subr.bf16.mxu1 %v5515_v26  ;;  %v5551_v26 = vld [vmem:[%s7406_s7 + $0x48] ss:$12 sps:$4 sm:$0xff]  }
  0x39   : > { %5037 = vmatpush3.bf16.msra.mxu0 %v5514_v25  ;;  %v5547_v25 = vld [vmem:[%s7406_s7 + $0x60] ss:$12 sps:$4 sm:$0xff]  }
  0x3a   : > { %5038 = vmatprep.subr.bf16.mxu0 %v5517_v28  ;;  %v5554_v28 = vld [vmem:[%s7406_s7 + $0x68] ss:$12 sps:$4 sm:$0xff]  }
  0x3b   : > { %5059 = vmatpush3.bf16.msra.mxu1 %v5516_v27  ;;  %v5553_v27 = vld [vmem:[%s7406_s7 + $0x4c] ss:$12 sps:$4 sm:$0xff]  }
  0x3c   : > { %5060 = vmatprep.subr.bf16.mxu1 %v5519_v30  ;;  %v5558_v30 = vld [vmem:[%s7406_s7 + $0x50] ss:$12 sps:$4 sm:$0xff]  }
  0x3d   : > { %5039 = vmatpush3.bf16.msra.mxu0 %v5518_v29  ;;  %v5557_v29 = vld [vmem:[%s7406_s7 + $0x34] ss:$12 sps:$4 sm:$0xff]  }
  0x3e   : > { %5261 = vmatprep.subr.bf16.mxu0 %v5962_v33 }
  0x3f   : > { %5061 = vmatpush3.bf16.msra.mxu1 %v5523_v34  ;;  %v5964_v34 = vmov 0  }
  0x40   : > { %994 = vmatmul.mubr.bf16.vlgmr.msra.gmra.mxu0 %v5520_v31  ;;  %1334 = vmatprep.subr.bf16.mxu1 %v5538_v15  ;;  %v5555_v31 = vld [vmem:[%s7406_s7 + $0x30] ss:$12 sps:$4 sm:$0xff]  }
  0x41   : > { %5277 = vmatprep.mubr.msk.bf16.mxu0 %vm5963_vm0, %v5962_v33  ;;  %5262 = vmatpush3.bf16.msra.mxu0 %v5527_v37  ;;  %v5566_v37 = vld [vmem:[%s7406_s7 + $0x20] ss:$12 sps:$4 sm:$0xff]  }
  0x42   : > { %1035 = vmatmul.mubr.bf16.vlgmr.msra.gmra.mxu1 %v5524_v35  ;;  %5263 = vmatprep.subr.bf16.mxu0 %v5962_v33  ;;  %v5559_v35 = vld [vmem:[%s7406_s7 + $0x18] ss:$12 sps:$4 sm:$0xff]  }
  0x43   : > { %1335 = vmatpush1.bf16.msra.mxu1 %v5536_v16  ;;  %1366 = vmatprep.mubr.bf16.mxu1 %v5964_v34 }
  0x44   : > { %1336 = vmatprep.subr.bf16.mxu1 %v5541_v17 }
  0x45   : > { %5264 = vmatpush3.bf16.msra.mxu0 %v5528_v38  ;;  %v5563_v38 = vld [vmem:[%s7406_s7] ss:$12 sps:$4 sm:$0xff]  }
  0x46   : > { %5265 = vmatprep.subr.bf16.mxu0 %v5962_v33 }
  0x47   : > { %1337 = vmatpush1.bf16.msra.mxu1 %v5539_v19 }
  0x48   : > { %1338 = vmatprep.subr.bf16.mxu1 %v5545_v20 }
  0x49   : > { %5266 = vmatpush3.bf16.msra.mxu0 %v5529_v39  ;;  %v5567_v39 = vld [vmem:[%s7406_s7 + $0x8] ss:$12 sps:$4 sm:$0xff]  }
  0x4a   : > { %5267 = vmatprep.subr.bf16.mxu0 %v5962_v33 }
  0x4b   : > { %1339 = vmatpush1.bf16.msra.mxu1 %v5543_v22  ;;  %v1191_v22 = vlaneseq }
  0x4c   : > { %1340 = vmatprep.subr.bf16.mxu1 %v5549_v23 }
  0x4d   : > { %5268 = vmatpush3.bf16.msra.mxu0 %v5530_v40  ;;  %v6361_v23 = vshrl.u32 %v1191_v22, 7 }
  0x4e   : > { %5269 = vmatprep.subr.bf16.mxu0 %v5962_v33 }
  0x4f   : > { %1341 = vmatpush1.bf16.msra.mxu1 %v5547_v25  ;;  %v1189_v25 = vld [vmem:[%s7407_s8] sm:$0x7] }
  0x50   : > { %1342 = vmatprep.subr.bf16.mxu1 %v5553_v27 }
  0x51   : > { %5270 = vmatpush3.bf16.msra.mxu0 %v5531_v41 }
  0x52   : > { %5271 = vmatprep.subr.bf16.mxu0 %v5962_v33 }
  0x53   : > { %1343 = vmatpush1.bf16.msra.mxu1 %v5551_v26 }
  0x54   : > { %1344 = vmatprep.subr.bf16.mxu1 %v5557_v29 }
  0x55   : > { %5272 = vmatpush3.bf16.msra.mxu0 %v5532_v42 }
  0x56   : > { %5273 = vmatprep.subr.bf16.mxu0 %v5962_v33 }
  0x57   : > { %1345 = vmatpush1.bf16.msra.mxu1 %v5555_v31  ;;  %v6371_v31 = vsub.s32 1, %v6361_v23 }
  0x58   : > { %1346 = vmatprep.subr.bf16.mxu1 %v5561_v32 }
  0x59   : > { %5274 = vmatpush3.bf16.msra.mxu0 %v5533_v43 }
  0x5a   : > { %5275 = vmatprep.subr.bf16.mxu0 %v5962_v33  ;;  %v5562_v33 = vld [vmem:[%s7406_s7 + $0x38] ss:$12 sps:$4 sm:$0xff]  }
  0x5b   : > { %1347 = vmatpush1.bf16.msra.mxu1 %v5559_v35 }
  0x5c   : > { %1348 = vmatprep.subr.bf16.mxu1 %v5565_v36 }
  0x5d   : > { %5276 = vmatpush3.bf16.msra.mxu0 %v5534_v44 }
  0x5e   : > { %5281 = vmatprep.subr.bf16.mxu0 %v5542_v18 }
  0x5f   : > { %1349 = vmatpush1.bf16.msra.mxu1 %v5563_v38 }
  0x60   : > { %5278 = vmatmul.mubr.bf16.vlgmr.msra.gmra.mxu0 %v5535_v45 }
  0x61   : > { %5282 = vmatpush3.bf16.msra.mxu0 %v5542_v18 }
  0x62   : > { %5283 = vmatprep.subr.bf16.mxu0 %v5546_v21 }
  0x65   : > { %5284 = vmatpush3.bf16.msra.mxu0 %v5546_v21 }
  0x66   : > { %5285 = vmatprep.subr.bf16.mxu0 %v5550_v24 }
  0x69   : > { %5286 = vmatpush3.bf16.msra.mxu0 %v5550_v24  ;;  %v6364_v24 = vsub.s32 0, %v6361_v23 }
  0x6a   : > { %5287 = vmatprep.subr.bf16.mxu0 %v5554_v28 }
  0x6b   : > { %v1194_v27 = vrot.slane %v1189_v25, %v6364_v24 }
  0x6d   : > { %5288 = vmatpush3.bf16.msra.mxu0 %v5554_v28 }
  0x6e   : > { %5289 = vmatprep.subr.bf16.mxu0 %v5558_v30 }
  0x71   : > { %5290 = vmatpush3.bf16.msra.mxu0 %v5558_v30 }
  0x72   : > { %5291 = vmatprep.subr.bf16.mxu0 %v5562_v33 }
  0x75   : > { %5292 = vmatpush3.bf16.msra.mxu0 %v5562_v33 }
  0x76   : > { %5293 = vmatprep.subr.bf16.mxu0 %v5566_v37 }
  0x79   : > { %5294 = vmatpush3.bf16.msra.mxu0 %v5566_v37  ;;  %v6376_v37 = vsub.s32 2, %v6361_v23 }
  0x7a   : > { %5295 = vmatprep.subr.bf16.mxu0 %v5567_v39 }
  0x7d   : > { %5296 = vmatpush3.bf16.msra.mxu0 %v5567_v39 }
 0x100   : > { %v5040_v46 = vpop.f32.mrf.mxu0 }
 0x102   : > { %v5041_v47 = vpop.f32.mrf.mxu0  ;;  %v5062_v48 = vpop.f32.mrf.mxu1 }
 0x103   : > { %v5042_v51 = vadd.f32 %v5041_v47, %v5040_v46 }
 0x104   : > { %v5043_v49 = vpop.f32.mrf.mxu0  ;;  %v5063_v50 = vpop.f32.mrf.mxu1 }
 0x105   : > { %v996_v55 = vadd.f32 %v5042_v51, %v4598_v52  ;;  %v5064_v56 = vadd.f32 %v5063_v50, %v5062_v48 }
 0x106   : > { %v5044_v53 = vpop.f32.mrf.mxu0  ;;  %v5065_v54 = vpop.f32.mrf.mxu1 }
 0x107   : > { %v5045_v57 = vadd.f32 %v5044_v53, %v5043_v49  ;;  %v1037_v61 = vadd.f32 %v5064_v56, %v996_v55 }
 0x108   : > { %v5066_v58 = vpop.f32.mrf.mxu1 }
 0x109   : > { %v999_v59 = vadd.f32 %v5045_v57, %v4598_v52  ;;  %v5067_v60 = vadd.f32 %v5066_v58, %v5065_v54 }
 0x10b   : > { %v1040_v3 = vadd.f32 %v5067_v60, %v999_v59 }
 0x120   : > { %v1077_v62 = vpop.f32.mrf.mxu0 }
 0x121   : > { %v1078_v0 = vadd.f32 %v1077_v62, %v1037_v61 }
 0x122   : > { %v5279_v1 = vpop.f32.mrf.mxu0 }
 0x123   : > { %v6255_v2 = vadd.f32 %v1084_v63, %v1078_v0 }
 0x124   : > { %v1080_v4 = vpop.f32.mrf.mxu0 }
 0x125   : > { %v1081_v6 = vadd.f32 %v1080_v4, %v1040_v3  ;;  %1091 = vadd.xlane.f32.xlu0 %v6255_v2  ;;  %v1103_v7 = vmul.f32 %v6255_v2, %v6255_v2  ;;  %v4644_v4 = vld [vmem:[%s7450_s5] ss:$0 sm:$0xff] }
 0x126   : > { %v5280_v9 = vpop.f32.mrf.mxu0 }
 0x127   : > { %v6268_v10 = vadd.f32 %v1085_v5, %v1081_v6  ;;  %1106 = vadd.xlane.f32.xlu1 %v1103_v7 }
 0x129   : > { %1093 = vadd.xlane.f32.xlu0 %v6268_v10  ;;  %v1104_v12 = vmul.f32 %v6268_v10, %v6268_v10 }
 0x12b   : > { %1108 = vadd.xlane.f32.xlu1 %v1104_v12 }
 0x12d   : > { %1097 = vadd.xlane.f32.xlu0 %v1096_v13 }
 0x12f   : > { %1111 = vadd.xlane.f32.xlu1 %v1110_v14 }
 0x1ae   : > { %v1092_v40 = vpop.xlane.xlu0 %1091 }
 0x1af   : > { %v1100_v41 = vmul.f32 0.0078125, %v1092_v40  ;;  %v1198_v40 = vrot.slane %v1189_v25, %v6371_v31 }
 0x1b0   : > { %v1107_v42 = vpop.xlane.xlu1 %1106 }
 0x1b1   : > { %v1116_v43 = vmul.f32 %v1100_v41, %v1100_v41  ;;  %v1113_v44 = vmul.f32 0.0078125, %v1107_v42  ;;  %v1125_v0 = vsub.f32 %v6255_v2, %v1100_v41 }
 0x1b2   : > { %v1094_v45 = vpop.xlane.xlu0 %1093 }
 0x1b3   : > { %v1119_v46 = vsub.f32 %v1113_v44, %v1116_v43  ;;  %v1101_v47 = vmul.f32 0.0078125, %v1094_v45  ;;  %v1202_v43 = vrot.slane %v1189_v25, %v6376_v37 }
 0x1b4   : > { %v1109_v48 = vpop.xlane.xlu1 %1108 }
 0x1b5   : > { %v1122_v49 = vmax.f32 %v1119_v46, 0.0  ;;  %v1117_v50 = vmul.f32 %v1101_v47, %v1101_v47  ;;  %v1114_v51 = vmul.f32 0.0078125, %v1109_v48  ;;  %v1126_v5 = vsub.f32 %v6268_v10, %v1101_v47 }
 0x1b6   : > { %v1098_v52 = vpop.xlane.xlu0 %1097 }
 0x1b7   : > { %v1128_v53 = vadd.f32 1e-06, %v1122_v49  ;;  %v1120_v54 = vsub.f32 %v1114_v51, %v1117_v50  ;;  %v1102_v55 = vmul.f32 0.0078125, %v1098_v52 }
 0x1b8   : > { %v1112_v56 = vpop.xlane.xlu1 %1111 }
 0x1b9   : > { %5776 = vrsqrt.f32 %v1128_v53  ;;  %v1123_v57 = vmax.f32 %v1120_v54, 0.0  ;;  %v1118_v58 = vmul.f32 %v1102_v55, %v1102_v55  ;;  %v1115_v59 = vmul.f32 0.0078125, %v1112_v56 }
 0x1ba   : > { %v1127_v13 = vsub.f32 %v6266_v8, %v1102_v55  ;;  %v6389_v54 = vsel %vm1095_vm1, 65535, %v5964_v34 }
 0x1bb   : > { %v1129_v60 = vadd.f32 1e-06, %v1123_v57  ;;  %v1121_v61 = vsub.f32 %v1115_v59, %v1118_v58 }
 0x1bd   : > { %5778 = vrsqrt.f32 %v1129_v60  ;;  %v1124_v62 = vmax.f32 %v1121_v61, 0.0 }
 0x1bf   : > { %v1130_v63 = vadd.f32 1e-06, %v1124_v62 }
 0x1c1   : > { %5780 = vrsqrt.f32 %v1130_v63 }
 0x1c6   : > { %v5777_v1 = vpop.eup %5776 }
 0x1c7   : > { %v1134_v3 = vmul.f32 %v5777_v1, %v1125_v0 }
 0x1c9   : > { %v1143_v9 = vmul.f32 %v4644_v4, %v1134_v3 }
 0x1ca   : > { %v5779_v6 = vpop.eup %5778 }
 0x1cb   : > { %v1135_v7 = vmul.f32 %v5779_v6, %v1126_v5  ;;  %v1152_v15 = vadd.f32 %v4645_v11, %v1143_v9 }
 0x1cd   : > { %v1144_v12 = vmul.f32 %v4644_v4, %v1135_v7 }
 0x1ce   : > { %v5781_v14 = vpop.eup %5780 }
 0x1cf   : > { %v1153_v16 = vadd.f32 %v4645_v11, %v1144_v12  ;;  %v1136_v17 = vmul.f32 %v5781_v14, %v1127_v13 }
 0x1d1   : > { %v1155_v18 = vpack.c.bf16 %v1153_v16, %v1152_v15  ;;  %v1145_v19 = vmul.f32 %v4644_v4, %v1136_v17 }
 0x1d3   : > { %1367 = vmatmul.mubr.bf16.vlgmr.msra.gmra.mxu1 %v1155_v18  ;;  %5297 = vmatprep.mubr.bf16.mxu0 %v1155_v18  ;;  %v1154_v20 = vadd.f32 %v4645_v11, %v1145_v19 }
 0x1d4   : > { %1376 = vmatprep.mubr.bf16.mxu1 %v5964_v34 }
 0x1d5   : > { %v1156_v21 = vpack.c.bf16 %v1154_v20, %v1154_v20 }
 0x1d7   : > { %5298 = vmatmul.mubr.bf16.vlgmr.msra.gmra.mxu0 %v1156_v21 }
 0x1db   : > { %1377 = vmatmul.mubr.bf16.gmra.mxu1 %v1156_v21 }
 0x293   : > { %v1368_v26 = vpop.f32.mrf.mxu1 }
 0x294   : > { %v1369_v30 = vadd.f32 %v1368_v26, %v1194_v27 }
 0x295   : > { %v1370_v28 = vpop.f32.mrf.mxu1 }
 0x296   : > { %v1371_v47 = vadd.f32 %v1370_v28, %v1198_v40 }
 0x297   : > { %v1372_v29 = vpop.f32.mrf.mxu1  ;;  %v5299_v33 = vpop.f32.mrf.mxu0 }
 0x298   : > { %v1373_v32 = vadd.f32 %v1372_v29, %v1194_v27  ;;  %v1428_v50 = vadd.f32 %v5299_v33, %v1202_v43 }
 0x299   : > { %v1374_v35 = vpop.f32.mrf.mxu1  ;;  %v1419_v38 = vpop.f32.mrf.mxu0 }
 0x29a   : > { %v6373_v36 = vpack.c.bf16 %v1373_v32, %v1369_v30  ;;  %v1375_v44 = vadd.f32 %v1374_v35, %v1198_v40  ;;  %v6385_v53 = vpack.c.bf16 %v1428_v50, %v1428_v50  ;;  %v1420_v60 = vadd.f32 %v1419_v38, %v1202_v43 }
 0x29b   : > { %v1378_v39 = vpop.f32.mrf.mxu1  ;;  %v5300_v41 = vpop.f32.mrf.mxu0 }
 0x29c   : > { %5305 = vmatprep.mubr.msk.bf16.mxu1 %vm1437_vm2, %v6373_v36  ;;  %v1435_v51 = vpack.c.bf16 %v1375_v44, %v1371_v47  ;;  %v1549_v55 = vand.u32 %v6389_v54, %v6385_v53  ;;  %v1379_v58 = vadd.f32 %v1378_v39, %v1194_v27 }
 0x29d   : > { %v1380_v42 = vpop.f32.mrf.mxu1  ;;  %v1422_v57 = vpop.f32.mrf.mxu0 }
 0x29e   : > { %v1381_v45 = vadd.f32 %v1380_v42, %v1198_v40  ;;  %v1445_v56 = vsel %vm1437_vm2, %v1435_v51, 0  ;;  %v1423_v59 = vadd.f32 %v1422_v57, %v1202_v43  ;;  %v1434_v61 = vpack.c.bf16 %v1379_v58, %v1379_v58 }
 0x29f   : > { %v1382_v46 = vpop.f32.mrf.mxu1 }
 0x2a0   : > { %v1436_v48 = vpack.c.bf16 %v1381_v45, %v1381_v45  ;;  %v6394_v62 = vpack.c.bf16 %v1423_v59, %v1420_v60 }
 0x2a1   : > { %v1383_v49 = vpop.f32.mrf.mxu1 }
 0x2a2   : > { %5425 = vmatprep.subr.msk.bf16.mxu1 %vm1437_vm2, %v1436_v48  ;;  %v1448_v52 = vsel %vm1437_vm2, %v1436_v48, 0 }
 0x2a3   : > { %5302 = vmatpush3.bf16.xpose.msra.mxu1 %v1448_v52 }
 0x2a4   : > { %5426 = vmatprep.subr.msk.bf16.mxu1 %vm1437_vm2, %v1435_v51 }
 0x2ab   : > { %5304 = vmatpush3.bf16.xpose.msra.mxu1 %v1445_v56 }
 0x2ac   : > { %5309 = vmatprep.subr.bf16.mxu1 %v1549_v55 }
 0x2b2   : > { %5306 = vmatmul.mubr.msk.bf16.vlgmr.msra.gmra.mxu1 %vm1437_vm2, %v1434_v61 }
 0x2b3   : > { %5310 = vmatpush3.bf16.msra.mxu1 %v1549_v55 }
 0x2b4   : > { %5311 = vmatprep.subr.bf16.mxu1 %v6394_v62 }
 0x2b7   : > { %5312 = vmatpush3.bf16.msra.mxu1 %v6394_v62 }
 0x372   : > { %v5307_v63 = vpop.f32.mrf.mxu1 }
 0x373   : > { %v1500_v4 = vmul.f32 0.125, %v5307_v63 }
 0x374   : > { %v1484_v0 = vpop.f32.mrf.mxu1 }
 0x375   : > { %v1498_v1 = vmul.f32 0.125, %v1484_v0  ;;  %v1509_v9 = vsel %vm1508_vm4, %v1500_v4, -inf }
 0x376   : > { %v5308_v3 = vpop.f32.mrf.mxu1 }
 0x377   : > { %v1502_v5 = vsel %vm1501_vm3, %v1498_v1, -inf }
 0x378   : > { %1503 = vmax.xlane.f32.xlu0 %v1502_v5  ;;  %v1487_v6 = vpop.f32.mrf.mxu1 }
 0x379   : > { %v1499_v7 = vmul.f32 0.125, %v1487_v6 }
 0x37b   : > { %v1505_v11 = vsel %vm1501_vm3, %v1499_v7, -inf }
 0x37c   : > { %1510 = vmax.xlane.f32.xlu0 %v1509_v9  ;;  %1506 = vmax.xlane.f32.xlu1 %v1505_v11 }
 0x401   : > { %v1504_v12 = vpop.xlane.xlu0 %1503 }
 0x402   : > { %v1512_v13 = vsub.f32 %v1498_v1, %v1504_v12 }
 0x404   : > { %v1515_v14 = vmul.f32 1.442695, %v1512_v13 }
 0x405   : > { %v1511_v15 = vpop.xlane.xlu0 %1510  ;;  %v1507_v16 = vpop.xlane.xlu1 %1506 }
 0x406   : > { %5782 = vpow2.f32 %v1515_v14  ;;  %v1514_v17 = vsub.f32 %v1500_v4, %v1511_v15  ;;  %v1513_v18 = vsub.f32 %v1499_v7, %v1507_v16 }
 0x408   : > { %v1519_v19 = vmul.f32 1.442695, %v1514_v17  ;;  %v1517_v20 = vmul.f32 1.442695, %v1513_v18 }
 0x40a   : > { %5784 = vpow2.f32 %v1519_v19 }
 0x40b   : > { %5786 = vpow2.f32 %v1517_v20 }
 0x413   : > { %v5783_v21 = vpop.eup %5782 }
 0x414   : > { %v1521_v22 = vsel %vm1501_vm3, %v5783_v21, 0.0 }
 0x415   : > { %1522 = vadd.xlane.f32.xlu1 %v1521_v22 }
 0x417   : > { %v5785_v25 = vpop.eup %5784 }
 0x418   : > { %v5787_v26 = vpop.eup %5786  ;;  %v1527_v27 = vsel %vm1508_vm4, %v5785_v25, 0.0 }
 0x419   : > { %1528 = vadd.xlane.f32.xlu1 %v1527_v27  ;;  %v1524_v28 = vsel %vm1501_vm3, %v5787_v26, 0.0 }
 0x41a   : > { %1525 = vadd.xlane.f32.xlu0 %v1524_v28 }
 0x42a   : > { %1607 = vrot.lane.b32.xlu1 %v1435_v51, %s7428_s26 }
 0x42e   : > { %1601 = vrot.lane.b32.xlu1 %v6373_v36, %s7428_s26 }
 0x430   : > { %1609 = vrot.lane.b32.xlu0 %v1436_v48, %s7428_s26 }
 0x432   : > { %1603 = vrot.lane.b32.xlu1 %v1434_v61, %s7428_s26 }
 0x49e   : > { %v1523_v29 = vpop.xlane.xlu1 %1522 }
 0x49f   : > { %5788 = vrcp.f32 %v1523_v29 }
 0x4a2   : > { %v1529_v30 = vpop.xlane.xlu1 %1528 }
 0x4a3   : > { %v1526_v32 = vpop.xlane.xlu0 %1525  ;;  %5790 = vrcp.f32 %v1529_v30 }
 0x4a4   : > { %5792 = vrcp.f32 %v1526_v32 }
 0x4a6   : > { %v1608_v40 = vpop.permute.xlu1 %1607 }
 0x4a7   : > { %v1610_v33 = vpop.permute.xlu0 %1609  ;;  %v1618_v47 = vsel %vm1437_vm2, %v1608_v40, 0 }
 0x4a8   : > { %5427 = vmatprep.subr.msk.bf16.mxu1 %vm1437_vm2, %v1610_v33  ;;  %v1621_v45 = vsel %vm1437_vm2, %v1610_v33, 0 }
 0x4aa   : > { %v1602_v46 = vpop.permute.xlu1 %1601 }
 0x4ac   : > { %v5789_v35 = vpop.eup %5788 }
 0x4ad   : > { %v1531_v42 = vmul.f32 %v5789_v35, %v5783_v21 }
 0x4ae   : > { %v1604_v48 = vpop.permute.xlu1 %1603 }
 0x4b0   : > { %v5791_v38 = vpop.eup %5790 }
 0x4b1   : > { %v5793_v39 = vpop.eup %5792  ;;  %v1535_v41 = vmul.f32 %v5791_v38, %v5785_v25  ;;  %v5568_v38 = vld [vmem:[%s7408_s9 + $0x38] sm:$0xff]  }
 0x4b2   : > { %v1533_v36 = vmul.f32 %v5793_v39, %v5787_v26  ;;  %v5569_v39 = vld [vmem:[%s7408_s9 + $0x30] sm:$0xff]   ;;  %5333 = vmatprep.subr.bf16.mxu0 %v5568_v38 }
 0x4b3   : > { %v1537_v43 = vpack.c.bf16 %v1535_v41, %v1535_v41  ;;  %5334 = vmatpush3.bf16.msra.mxu0 %v5568_v38  ;;  %v5571_v41 = vld [vmem:[%s7408_s9 + $0x20] sm:$0xff]  }
 0x4b4   : > { %v1536_v44 = vpack.c.bf16 %v1533_v36, %v1531_v42  ;;  %5335 = vmatprep.subr.bf16.mxu0 %v5569_v39  ;;  %v5572_v42 = vld [vmem:[%s7408_s9 + $0x18] sm:$0xff]   ;;  %v5573_v36 = vld [vmem:[%s7408_s9 + $0x10] sm:$0xff]  }
 0x4b5   : > { %v5608_v38 = vld [vmem:[%s7412_s13 + $0x44] ss:$16 sps:$4 sm:$0xff]  }
 0x4b6   : > { %5313 = vmatprep.mubr.msk.bf16.mxu1 %vm1501_vm3, %v1536_v44  ;;  %v5575_v44 = vld [vmem:[%s7408_s9] sm:$0xff]  }
 0x4b7   : > { %5314 = vmatmul.mubr.msk.bf16.vlgmr.msra.gmra.mxu1 %vm1501_vm3, %v1537_v43  ;;  %5336 = vmatpush3.bf16.msra.mxu0 %v5569_v39  ;;  %v5574_v43 = vld [vmem:[%s7408_s9 + $0x8] sm:$0xff]  }
 0x4b8   : > { %5318 = vmatpush3.bf16.xpose.msra.mxu1 %v1621_v45  ;;  %5321 = vmatprep.mubr.msk.bf16.mxu1 %vm1437_vm2, %v1602_v46  ;;  %v5611_v39 = vld [vmem:[%s7412_s13 + $0x4c] ss:$16 sps:$4 sm:$0xff]  }
 0x4b9   : > { %5428 = vmatprep.subr.msk.bf16.mxu1 %vm1437_vm2, %v1608_v40  ;;  %v5570_v40 = vld [vmem:[%s7408_s9 + $0x28] sm:$0xff]  }
 0x4ba   : > { %5337 = vmatprep.subr.bf16.mxu0 %v5570_v40 }
 0x4bb   : > { %5338 = vmatpush3.bf16.msra.mxu0 %v5570_v40  ;;  %v5606_v40 = vld [vmem:[%s7412_s13 + $0x40] ss:$16 sps:$4 sm:$0xff]  }
 0x4bc   : > { %5339 = vmatprep.subr.bf16.mxu0 %v5571_v41 }
 0x4bf   : > { %5340 = vmatpush3.bf16.msra.mxu0 %v5571_v41  ;;  %v5609_v41 = vld [vmem:[%s7412_s13 + $0x48] ss:$16 sps:$4 sm:$0xff]  }
 0x4c0   : > { %5320 = vmatpush3.bf16.xpose.msra.mxu1 %v1618_v47  ;;  %5341 = vmatprep.subr.bf16.mxu0 %v5572_v42 }
 0x4c3   : > { %5342 = vmatpush3.bf16.msra.mxu0 %v5572_v42  ;;  %v5614_v42 = vld [vmem:[%s7412_s13 + $0x24] ss:$16 sps:$4 sm:$0xff]  }
 0x4c4   : > { %5343 = vmatprep.subr.bf16.mxu0 %v5573_v36 }
 0x4c7   : > { %5322 = vmatmul.mubr.msk.bf16.vlgmr.msra.gmra.mxu1 %vm1437_vm2, %v1604_v48  ;;  %5344 = vmatpush3.bf16.msra.mxu0 %v5573_v36  ;;  %v5617_v36 = vld [vmem:[%s7412_s13 + $0x2c] ss:$16 sps:$4 sm:$0xff]  }
 0x4c8   : > { %5345 = vmatprep.subr.bf16.mxu0 %v5574_v43 }
 0x4cb   : > { %5346 = vmatpush3.bf16.msra.mxu0 %v5574_v43  ;;  %v5612_v43 = vld [vmem:[%s7412_s13 + $0x20] ss:$16 sps:$4 sm:$0xff]  }
 0x4cc   : > { %5347 = vmatprep.subr.bf16.mxu0 %v5575_v44 }
 0x4cf   : > { %5348 = vmatpush3.bf16.msra.mxu0 %v5575_v44  ;;  %v5615_v44 = vld [vmem:[%s7412_s13 + $0x28] ss:$16 sps:$4 sm:$0xff]  }
 0x577   : > { %v6418_v49 = vpop.f32.mrf.mxu1 }
 0x579   : > { %v6420_v50 = vpop.f32.mrf.mxu1 }
 0x57b   : > { %v5316_v51 = vpop.f32.mrf.mxu1 }
 0x57d   : > { %v6422_v52 = vpop.f32.mrf.mxu1 }
 0x587   : > { %v5323_v55 = vpop.f32.mrf.mxu1 }
 0x588   : > { %v1673_v59 = vmul.f32 0.125, %v5323_v55 }
 0x589   : > { %v1657_v56 = vpop.f32.mrf.mxu1 }
 0x58a   : > { %v1671_v57 = vmul.f32 0.125, %v1657_v56  ;;  %v1680_v0 = vsel %vm1508_vm4, %v1673_v59, -inf }
 0x58b   : > { %v5324_v58 = vpop.f32.mrf.mxu1 }
 0x58c   : > { %v1674_v60 = vsel %vm1501_vm3, %v1671_v57, -inf }
 0x58d   : > { %1675 = vmax.xlane.f32.xlu0 %v1674_v60  ;;  %v1660_v61 = vpop.f32.mrf.mxu1 }
 0x58e   : > { %v1672_v63 = vmul.f32 0.125, %v1660_v61 }
 0x590   : > { %v1677_v1 = vsel %vm1501_vm3, %v1672_v63, -inf }
 0x591   : > { %1681 = vmax.xlane.f32.xlu0 %v1680_v0  ;;  %1678 = vmax.xlane.f32.xlu1 %v1677_v1 }
 0x616   : > { %v1676_v3 = vpop.xlane.xlu0 %1675 }
 0x617   : > { %v1683_v4 = vsub.f32 %v1671_v57, %v1676_v3 }
 0x619   : > { %v1686_v5 = vmul.f32 1.442695, %v1683_v4 }
 0x61a   : > { %v1682_v6 = vpop.xlane.xlu0 %1681  ;;  %v1679_v7 = vpop.xlane.xlu1 %1678 }
 0x61b   : > { %5794 = vpow2.f32 %v1686_v5  ;;  %v1685_v9 = vsub.f32 %v1673_v59, %v1682_v6  ;;  %v1684_v11 = vsub.f32 %v1672_v63, %v1679_v7 }
 0x61d   : > { %v1690_v12 = vmul.f32 1.442695, %v1685_v9  ;;  %v1688_v13 = vmul.f32 1.442695, %v1684_v11 }
 0x61f   : > { %5796 = vpow2.f32 %v1690_v12 }
 0x620   : > { %5798 = vpow2.f32 %v1688_v13 }
 0x628   : > { %v5795_v14 = vpop.eup %5794 }
 0x629   : > { %v1692_v15 = vsel %vm1501_vm3, %v5795_v14, 0.0 }
 0x62a   : > { %1693 = vadd.xlane.f32.xlu0 %v1692_v15  ;;  %v5581_v15 = vld [vmem:[%s7412_s13 + $0xec] ss:$16 sps:$4 sm:$0xff]  }
 0x62b   : > { %2246 = vmatprep.subr.bf16.mxu0 %v5581_v15 }
 0x62c   : > { %v5797_v16 = vpop.eup %5796 }
 0x62d   : > { %v5799_v17 = vpop.eup %5798  ;;  %v1698_v18 = vsel %vm1508_vm4, %v5797_v16, 0.0 }
 0x62e   : > { %1699 = vadd.xlane.f32.xlu1 %v1698_v18  ;;  %v1695_v19 = vsel %vm1501_vm3, %v5799_v17, 0.0  ;;  %v5584_v18 = vld [vmem:[%s7412_s13 + $0xc4] ss:$16 sps:$4 sm:$0xff]  }
 0x62f   : > { %1696 = vadd.xlane.f32.xlu0 %v1695_v19  ;;  %v5587_v19 = vld [vmem:[%s7412_s13 + $0xcc] ss:$16 sps:$4 sm:$0xff]  }
 0x63f   : > { %1711 = vrot.lane.b32.xlu1 %v6394_v62, %s7428_s26 }
 0x645   : > { %1713 = vrot.lane.b32.xlu0 %v6385_v53, %s7428_s26 }
 0x6b3   : > { %v1694_v20 = vpop.xlane.xlu0 %1693 }
 0x6b4   : > { %5800 = vrcp.f32 %v1694_v20  ;;  %v5582_v20 = vld [vmem:[%s7412_s13 + $0xc0] ss:$16 sps:$4 sm:$0xff]  }
 0x6b7   : > { %v1700_v21 = vpop.xlane.xlu1 %1699 }
 0x6b8   : > { %v1697_v22 = vpop.xlane.xlu0 %1696  ;;  %5802 = vrcp.f32 %v1700_v21  ;;  %v5585_v21 = vld [vmem:[%s7412_s13 + $0xc8] ss:$16 sps:$4 sm:$0xff]  }
 0x6b9   : > { %5804 = vrcp.f32 %v1697_v22  ;;  %v5590_v22 = vld [vmem:[%s7412_s13 + $0xa4] ss:$16 sps:$4 sm:$0xff]  }
 0x6bb   : > { %v1712_v27 = vpop.permute.xlu1 %1711 }
 0x6bc   : > { %v1714_v25 = vpop.permute.xlu0 %1713 }
 0x6bd   : > { %v1723_v26 = vand.u32 %v1714_v25, %v6389_v54  ;;  %v5593_v25 = vld [vmem:[%s7412_s13 + $0xac] ss:$16 sps:$4 sm:$0xff]  }
 0x6bf   : > { %5325 = vmatprep.subr.bf16.mxu1 %v1723_v26 }
 0x6c0   : > { %5326 = vmatpush3.bf16.msra.mxu1 %v1723_v26  ;;  %v5588_v26 = vld [vmem:[%s7412_s13 + $0xa0] ss:$16 sps:$4 sm:$0xff]  }
 0x6c1   : > { %5327 = vmatprep.subr.bf16.mxu1 %v1712_v27  ;;  %v5801_v28 = vpop.eup %5800 }
 0x6c2   : > { %v1702_v32 = vmul.f32 %v5801_v28, %v5795_v14  ;;  %v5578_v14 = vld [vmem:[%s7412_s13 + $0xe4] ss:$16 sps:$4 sm:$0xff]  }
 0x6c3   : > { %v5596_v28 = vld [vmem:[%s7412_s13 + $0x84] ss:$16 sps:$4 sm:$0xff]  }
 0x6c4   : > { %5328 = vmatpush3.bf16.msra.mxu1 %v1712_v27  ;;  %v5591_v27 = vld [vmem:[%s7412_s13 + $0xa8] ss:$16 sps:$4 sm:$0xff]  }
 0x6c5   : > { %v5803_v29 = vpop.eup %5802  ;;  %2195 = vmatprep.subr.bf16.mxu1 %v5578_v14 }
 0x6c6   : > { %v5805_v62 = vpop.eup %5804  ;;  %v1706_v30 = vmul.f32 %v5803_v29, %v5797_v16  ;;  %v5576_v16 = vld [vmem:[%s7412_s13 + $0xe0] ss:$16 sps:$4 sm:$0xff]   ;;  %v5599_v29 = vld [vmem:[%s7412_s13 + $0x8c] ss:$16 sps:$4 sm:$0xff]  }
 0x6c7   : > { %v1704_v53 = vmul.f32 %v5805_v62, %v5799_v17  ;;  %v5579_v17 = vld [vmem:[%s7412_s13 + $0xe8] ss:$16 sps:$4 sm:$0xff]   ;;  %v5594_v62 = vld [vmem:[%s7412_s13 + $0x80] ss:$16 sps:$4 sm:$0xff]  }
 0x6c8   : > { %v1708_v33 = vpack.c.bf16 %v1706_v30, %v1706_v30  ;;  %v5597_v30 = vld [vmem:[%s7412_s13 + $0x88] ss:$16 sps:$4 sm:$0xff]  }
 0x6c9   : > { %v1707_v35 = vpack.c.bf16 %v1704_v53, %v1702_v32  ;;  %v5602_v32 = vld [vmem:[%s7412_s13 + $0x64] ss:$16 sps:$4 sm:$0xff]   ;;  %v5605_v53 = vld [vmem:[%s7412_s13 + $0x6c] ss:$16 sps:$4 sm:$0xff]  }
 0x6cb   : > { %5329 = vmatprep.mubr.msk.bf16.mxu1 %vm1501_vm3, %v1707_v35  ;;  %v5603_v35 = vld [vmem:[%s7412_s13 + $0x68] ss:$16 sps:$4 sm:$0xff]  }
 0x6cc   : > { %5330 = vmatmul.mubr.msk.bf16.vlgmr.msra.gmra.mxu1 %vm1501_vm3, %v1708_v33  ;;  %v5600_v33 = vld [vmem:[%s7412_s13 + $0x60] ss:$16 sps:$4 sm:$0xff]  }
 0x6cd   : > { %2227 = vmatprep.mubr.bf16.mxu1 %v5964_v34  ;;  %2196 = vmatpush1.bf16.msra.mxu1 %v5576_v16 }
 0x6ce   : > { %2197 = vmatprep.subr.bf16.mxu1 %v5584_v18  ;;  %v4687_v18 = vld [vmem:[%s7410_s11] ss:$0 sm:$0xff] }
 0x6d1   : > { %2198 = vmatpush1.bf16.msra.mxu1 %v5582_v20 }
 0x6d2   : > { %2199 = vmatprep.subr.bf16.mxu1 %v5590_v22 }
 0x6d5   : > { %2200 = vmatpush1.bf16.msra.mxu1 %v5588_v26 }
 0x6d6   : > { %2201 = vmatprep.subr.bf16.mxu1 %v5596_v28 }
 0x6d9   : > { %2202 = vmatpush1.bf16.msra.mxu1 %v5594_v62 }
 0x6da   : > { %2203 = vmatprep.subr.bf16.mxu1 %v5602_v32 }
 0x6dd   : > { %2204 = vmatpush1.bf16.msra.mxu1 %v5600_v33 }
 0x6de   : > { %2205 = vmatprep.subr.bf16.mxu1 %v5608_v38  ;;  %v5624_v38 = vld [vmem:[%s7414_s15 + $0x78] sm:$0xff]  }
 0x6e1   : > { %2206 = vmatpush1.bf16.msra.mxu1 %v5606_v40  ;;  %v5626_v40 = vld [vmem:[%s7414_s15 + $0x38] sm:$0xff]  }
 0x6e2   : > { %2207 = vmatprep.subr.bf16.mxu1 %v5614_v42  ;;  %v5628_v42 = vld [vmem:[%s7414_s15 + $0x70] sm:$0xff]  }
 0x6e5   : > { %2208 = vmatpush1.bf16.msra.mxu1 %v5612_v43  ;;  %v5630_v43 = vld [vmem:[%s7414_s15 + $0x30] sm:$0xff]  }
 0x78c   : > { %v5331_v45 = vpop.f32.mrf.mxu1 }
 0x78e   : > { %v1759_v46 = vpop.f32.mrf.mxu1 }
 0x790   : > { %v5332_v47 = vpop.f32.mrf.mxu1 }
 0x791   : > { %v5618_v47 = vld [vmem:[%s7412_s13] ss:$16 sps:$4 sm:$0xff]  }
 0x792   : > { %v1762_v48 = vpop.f32.mrf.mxu1 }
 0x793   : > { %v5479_v51 = vpack.i.bf16 %v1762_v48, %v1759_v46  ;;  %v5623_v46 = vld [vmem:[%s7412_s13 + $0xc] ss:$16 sps:$4 sm:$0xff]   ;;  %v5621_v48 = vld [vmem:[%s7412_s13 + $0x8] ss:$16 sps:$4 sm:$0xff]  }
 0x795   : > { %5480 = vrot.lane.b32.xlu1 %v5479_v51, %s7428_s26 }
 0x799   : > { %1780 = vrot.lane.b32.xlu1 %v5331_v45, %s7428_s26  ;;  %v5620_v45 = vld [vmem:[%s7412_s13 + $0x4] ss:$16 sps:$4 sm:$0xff]  }
 0x79a   : > { %2209 = vmatprep.subr.bf16.mxu1 %v5620_v45  ;;  %v5632_v45 = vld [vmem:[%s7414_s15 + $0x68] sm:$0xff]  }
 0x79b   : > { %2210 = vmatpush1.bf16.msra.mxu1 %v5618_v47  ;;  %v5634_v47 = vld [vmem:[%s7414_s15 + $0x28] sm:$0xff]  }
 0x79c   : > { %5113 = vmatprep.subr.bf16.mxu1 %v5624_v38 }
 0x807   : > { %v5481_v55 = vpop.permute.xlu1 %5480 }
 0x808   : > { %v5483_v56 = vunpack.i.h.bf16 %v5481_v55  ;;  %v5482_v57 = vunpack.i.l.bf16 %v5481_v55 }
 0x80a   : > { %v1785_v58 = vsel %vm1437_vm2, %v6420_v50, %v5482_v57  ;;  %v1786_v59 = vsel %vm1437_vm2, %v6422_v52, %v5483_v56  ;;  %v4686_v50 = vld [vmem:[%s7409_s10] ss:$0 sm:$0xff] }
 0x80b   : > { %v1781_v60 = vpop.permute.xlu1 %1780  ;;  %v1788_v61 = vpack.c.bf16 %v1786_v59, %v1785_v58 }
 0x80c   : > { %v1787_v63 = vsel %vm1437_vm2, %v6418_v49, %v1781_v60 }
 0x80d   : > { %v1789_v0 = vpack.c.bf16 %v1787_v63, %v1787_v63  ;;  %5349 = vmatprep.mubr.bf16.mxu0 %v1788_v61 }
 0x80f   : > { %5350 = vmatmul.mubr.bf16.vlgmr.msra.gmra.mxu0 %v1789_v0 }
 0x810   : > { %2278 = vmatprep.mubr.bf16.mxu0 %v5964_v34  ;;  %2247 = vmatpush1.bf16.msra.mxu0 %v5579_v17 }
 0x811   : > { %2248 = vmatprep.subr.bf16.mxu0 %v5587_v19 }
 0x814   : > { %2249 = vmatpush1.bf16.msra.mxu0 %v5585_v21 }
 0x815   : > { %2250 = vmatprep.subr.bf16.mxu0 %v5593_v25  ;;  %v4688_v25 = vld [vmem:[%s7411_s12] ss:$0 sm:$0xff] }
 0x818   : > { %2251 = vmatpush1.bf16.msra.mxu0 %v5591_v27 }
 0x819   : > { %2252 = vmatprep.subr.bf16.mxu0 %v5599_v29 }
 0x81c   : > { %2253 = vmatpush1.bf16.msra.mxu0 %v5597_v30 }
 0x81d   : > { %2254 = vmatprep.subr.bf16.mxu0 %v5605_v53 }
 0x820   : > { %2255 = vmatpush1.bf16.msra.mxu0 %v5603_v35 }
 0x821   : > { %2256 = vmatprep.subr.bf16.mxu0 %v5611_v39  ;;  %v5625_v39 = vld [vmem:[%s7414_s15 + $0xf8] sm:$0xff]  }
 0x824   : > { %2257 = vmatpush1.bf16.msra.mxu0 %v5609_v41  ;;  %v5627_v41 = vld [vmem:[%s7414_s15 + $0xb8] sm:$0xff]  }
 0x825   : > { %2258 = vmatprep.subr.bf16.mxu0 %v5617_v36  ;;  %v5629_v36 = vld [vmem:[%s7414_s15 + $0xf0] sm:$0xff]  }
 0x828   : > { %2259 = vmatpush1.bf16.msra.mxu0 %v5615_v44  ;;  %v5631_v44 = vld [vmem:[%s7414_s15 + $0xb0] sm:$0xff]  }
 0x829   : > { %2260 = vmatprep.subr.bf16.mxu0 %v5623_v46  ;;  %v5633_v46 = vld [vmem:[%s7414_s15 + $0xe8] sm:$0xff]  }
 0x82c   : > { %2261 = vmatpush1.bf16.msra.mxu0 %v5621_v48  ;;  %v5635_v48 = vld [vmem:[%s7414_s15 + $0xa8] sm:$0xff]  }
 0x82d   : > { %5141 = vmatprep.subr.bf16.mxu0 %v5625_v39 }
 0x8cf   : > { %v5351_v1 = vpop.f32.mrf.mxu0 }
 0x8d0   : > { %v1904_v3 = vadd.f32 %v5351_v1, %v6266_v8 }
 0x8d1   : > { %v1888_v4 = vpop.f32.mrf.mxu0 }
 0x8d2   : > { %v1902_v52 = vadd.f32 %v1888_v4, %v6255_v2  ;;  %v6478_v7 = vadd.f32 %v4686_v50, %v1904_v3 }
 0x8d3   : > { %v5352_v5 = vpop.f32.mrf.mxu0 }
 0x8d4   : > { %v6476_v6 = vadd.f32 %v4686_v50, %v1902_v52  ;;  %v1929_v12 = vmul.f32 %v6478_v7, %v6478_v7 }
 0x8d5   : > { %v1891_v49 = vpop.f32.mrf.mxu0 }
 0x8d6   : > { %v1903_v9 = vadd.f32 %v1891_v49, %v6268_v10  ;;  %1917 = vadd.xlane.f32.xlu0 %v6476_v6  ;;  %v1927_v8 = vmul.f32 %v6476_v6, %v6476_v6  ;;  %v1934_v13 = vsel %vm1095_vm1, %v1929_v12, 0.0  ;;  %v1921_v10 = vsel %vm1095_vm1, %v6478_v7, 0.0 }
 0x8d8   : > { %v6482_v11 = vadd.f32 %v4686_v50, %v1903_v9 }
 0x8da   : > { %1930 = vadd.xlane.f32.xlu0 %v1927_v8  ;;  %1919 = vadd.xlane.f32.xlu1 %v6482_v11  ;;  %v1928_v2 = vmul.f32 %v6482_v11, %v6482_v11 }
 0x8de   : > { %1935 = vadd.xlane.f32.xlu1 %v1934_v13  ;;  %1932 = vadd.xlane.f32.xlu0 %v1928_v2 }
 0x8e2   : > { %1922 = vadd.xlane.f32.xlu0 %v1921_v10 }
 0x95f   : > { %v1918_v51 = vpop.xlane.xlu0 %1917 }
 0x960   : > { %v1924_v55 = vmul.f32 0.0078125, %v1918_v51  ;;  %v5636_v51 = vld [vmem:[%s7414_s15 + $0x60] sm:$0xff]  }
 0x962   : > { %v1940_v58 = vmul.f32 %v1924_v55, %v1924_v55  ;;  %v1949_v15 = vsub.f32 %v6476_v6, %v1924_v55  ;;  %v5637_v55 = vld [vmem:[%s7414_s15 + $0xe0] sm:$0xff]  }
 0x963   : > { %v1931_v56 = vpop.xlane.xlu0 %1930  ;;  %v1920_v57 = vpop.xlane.xlu1 %1919 }
 0x964   : > { %v1937_v59 = vmul.f32 0.0078125, %v1931_v56  ;;  %v1925_v60 = vmul.f32 0.0078125, %v1920_v57  ;;  %v5638_v56 = vld [vmem:[%s7414_s15 + $0x20] sm:$0xff]  }
 0x965   : > { %v5639_v57 = vld [vmem:[%s7414_s15 + $0xa0] sm:$0xff]  }
 0x966   : > { %v1943_v61 = vsub.f32 %v1937_v59, %v1940_v58  ;;  %v1941_v1 = vmul.f32 %v1925_v60, %v1925_v60  ;;  %v1950_v19 = vsub.f32 %v6482_v11, %v1925_v60  ;;  %v5640_v58 = vld [vmem:[%s7414_s15 + $0x58] sm:$0xff]  }
 0x967   : > { %v1933_v63 = vpop.xlane.xlu0 %1932  ;;  %v1936_v52 = vpop.xlane.xlu1 %1935  ;;  %v5641_v59 = vld [vmem:[%s7414_s15 + $0xd8] sm:$0xff]  }
 0x968   : > { %v1946_v0 = vmax.f32 %v1943_v61, 0.0  ;;  %v1938_v3 = vmul.f32 0.0078125, %v1933_v63  ;;  %v1939_v8 = vmul.f32 0.0078125, %v1936_v52  ;;  %v5642_v60 = vld [vmem:[%s7414_s15 + $0x18] sm:$0xff]   ;;  %v5644_v63 = vld [vmem:[%s7414_s15 + $0x50] sm:$0xff]   ;;  %v5650_v52 = vld [vmem:[%s7414_s15 + $0x8] sm:$0xff]  }
 0x969   : > { %v5643_v61 = vld [vmem:[%s7414_s15 + $0x98] sm:$0xff]  }
 0x96a   : > { %v1952_v4 = vadd.f32 1e-06, %v1946_v0  ;;  %v1944_v50 = vsub.f32 %v1938_v3, %v1941_v1  ;;  %v5645_v0 = vld [vmem:[%s7414_s15 + $0xd0] sm:$0xff]  }
 0x96b   : > { %v1923_v5 = vpop.xlane.xlu0 %1922  ;;  %v5646_v1 = vld [vmem:[%s7414_s15 + $0x10] sm:$0xff]  }
 0x96c   : > { %5806 = vrsqrt.f32 %v1952_v4  ;;  %v1947_v49 = vmax.f32 %v1944_v50, 0.0  ;;  %v1926_v9 = vmul.f32 0.0078125, %v1923_v5  ;;  %v5647_v3 = vld [vmem:[%s7414_s15 + $0x90] sm:$0xff]   ;;  %v5648_v4 = vld [vmem:[%s7414_s15 + $0x48] sm:$0xff]  }
 0x96d   : > { %v5649_v50 = vld [vmem:[%s7414_s15 + $0xc8] sm:$0xff]  }
 0x96e   : > { %v1953_v12 = vadd.f32 1e-06, %v1947_v49  ;;  %v1942_v2 = vmul.f32 %v1926_v9, %v1926_v9  ;;  %v1951_v27 = vsub.f32 %v6478_v7, %v1926_v9  ;;  %v5651_v5 = vld [vmem:[%s7414_s15 + $0x88] sm:$0xff]   ;;  %v5652_v49 = vld [vmem:[%s7414_s15 + $0x40] sm:$0xff]  }
 0x96f   : > { %v5653_v9 = vld [vmem:[%s7414_s15 + $0xc0] sm:$0xff]  }
 0x970   : > { %5808 = vrsqrt.f32 %v1953_v12  ;;  %v1945_v13 = vsub.f32 %v1939_v8, %v1942_v2  ;;  %v5654_v8 = vld [vmem:[%s7414_s15] sm:$0xff]  }
 0x971   : > { %v5655_v12 = vld [vmem:[%s7414_s15 + $0x80] sm:$0xff]  }
 0x972   : > { %v1948_v10 = vmax.f32 %v1945_v13, 0.0  ;;  %v2013_v2 = vld [vmem:[%s7413_s14] sm:$0xf]  ;;  %v2029_v13 = vsub.s32 3, %v6361_v23 }
 0x974   : > { %v1954_v14 = vadd.f32 1e-06, %v1948_v10  ;;  %v2018_v10 = vrot.slane %v2013_v2, %v6364_v24 }
 0x976   : > { %5810 = vrsqrt.f32 %v1954_v14  ;;  %v6703_v14 = vrot.slane %v2013_v2, %v6376_v37 }
 0x979   : > { %v5807_v16 = vpop.eup %5806 }
 0x97a   : > { %v1958_v17 = vmul.f32 %v5807_v16, %v1949_v15  ;;  %v6706_v15 = vrot.slane %v2013_v2, %v6371_v31  ;;  %v6710_v16 = vrot.slane %v2013_v2, %v2029_v13 }
 0x97c   : > { %v1967_v22 = vmul.f32 %v4687_v18, %v1958_v17 }
 0x97d   : > { %v5809_v20 = vpop.eup %5808 }
 0x97e   : > { %v1959_v21 = vmul.f32 %v5809_v20, %v1950_v19  ;;  %v1976_v28 = vadd.f32 %v4688_v25, %v1967_v22 }
 0x980   : > { %v1968_v26 = vmul.f32 %v4687_v18, %v1959_v21 }
 0x982   : > { %v1977_v29 = vadd.f32 %v4688_v25, %v1968_v26 }
 0x983   : > { %v5811_v62 = vpop.eup %5810 }
 0x984   : > { %v1960_v30 = vmul.f32 %v5811_v62, %v1951_v27  ;;  %v1979_v32 = vpack.c.bf16 %v1977_v29, %v1976_v28 }
 0x986   : > { %2228 = vmatmul.mubr.bf16.vlgmr.msra.gmra.mxu1 %v1979_v32  ;;  %2279 = vmatmul.mubr.bf16.vlgmr.msra.gmra.mxu0 %v1979_v32  ;;  %v1969_v53 = vmul.f32 %v4687_v18, %v1960_v30 }
 0x987   : > { %2237 = vmatprep.mubr.bf16.mxu1 %v5964_v34  ;;  %2288 = vmatprep.mubr.bf16.mxu0 %v5964_v34 }
 0x988   : > { %v1978_v33 = vadd.f32 %v4688_v25, %v1969_v53  ;;  %5114 = vmatpush3.bf16.msra.mxu1 %v5626_v40  ;;  %5142 = vmatpush3.bf16.msra.mxu0 %v5627_v41 }
 0x989   : > { %5115 = vmatprep.subr.bf16.mxu1 %v5628_v42  ;;  %5143 = vmatprep.subr.bf16.mxu0 %v5629_v36 }
 0x98a   : > { %v1980_v35 = vpack.c.bf16 %v1978_v33, %v1978_v33 }
 0x98c   : > { %5116 = vmatpush3.bf16.msra.mxu1 %v5630_v43  ;;  %5144 = vmatpush3.bf16.msra.mxu0 %v5631_v44 }
 0x98d   : > { %5117 = vmatprep.subr.bf16.mxu1 %v5632_v45  ;;  %5145 = vmatprep.subr.bf16.mxu0 %v5633_v46 }
 0x98e   : > { %2238 = vmatmul.mubr.bf16.gmra.mxu1 %v1980_v35  ;;  %2289 = vmatmul.mubr.bf16.gmra.mxu0 %v1980_v35 }
 0x990   : > { %5118 = vmatpush3.bf16.msra.mxu1 %v5634_v47  ;;  %5146 = vmatpush3.bf16.msra.mxu0 %v5635_v48 }
 0x991   : > { %5119 = vmatprep.subr.bf16.mxu1 %v5636_v51  ;;  %5147 = vmatprep.subr.bf16.mxu0 %v5637_v55 }
 0x994   : > { %5120 = vmatpush3.bf16.msra.mxu1 %v5638_v56  ;;  %5148 = vmatpush3.bf16.msra.mxu0 %v5639_v57 }
 0x995   : > { %5121 = vmatprep.subr.bf16.mxu1 %v5640_v58  ;;  %5149 = vmatprep.subr.bf16.mxu0 %v5641_v59 }
 0x998   : > { %5122 = vmatpush3.bf16.msra.mxu1 %v5642_v60  ;;  %5150 = vmatpush3.bf16.msra.mxu0 %v5643_v61 }
 0x999   : > { %5123 = vmatprep.subr.bf16.mxu1 %v5644_v63  ;;  %5151 = vmatprep.subr.bf16.mxu0 %v5645_v0 }
 0x99c   : > { %5124 = vmatpush3.bf16.msra.mxu1 %v5646_v1  ;;  %5152 = vmatpush3.bf16.msra.mxu0 %v5647_v3 }
 0x99d   : > { %5125 = vmatprep.subr.bf16.mxu1 %v5648_v4  ;;  %5153 = vmatprep.subr.bf16.mxu0 %v5649_v50 }
 0x9a0   : > { %5126 = vmatpush3.bf16.msra.mxu1 %v5650_v52  ;;  %5154 = vmatpush3.bf16.msra.mxu0 %v5651_v5 }
 0x9a1   : > { %5127 = vmatprep.subr.bf16.mxu1 %v5652_v49  ;;  %5155 = vmatprep.subr.bf16.mxu0 %v5653_v9 }
 0x9a4   : > { %5128 = vmatpush3.bf16.msra.mxu1 %v5654_v8  ;;  %5156 = vmatpush3.bf16.msra.mxu0 %v5655_v12 }
 0xa46   : > { %v2229_v17 = vpop.f32.mrf.mxu1  ;;  %v2280_v18 = vpop.f32.mrf.mxu0 }
 0xa47   : > { %v6712_v19 = vadd.f32 %v2229_v17, %v2018_v10  ;;  %v6715_v20 = vadd.f32 %v2280_v18, %v6703_v14 }
 0xa48   : > { %v2231_v21 = vpop.f32.mrf.mxu1  ;;  %v2282_v22 = vpop.f32.mrf.mxu0 }
 0xa49   : > { %v2297_v25 = vmul.f32 %v6712_v19, %v6712_v19  ;;  %v2299_v26 = vmul.f32 %v6715_v20, %v6715_v20  ;;  %v6722_v27 = vadd.f32 %v2231_v21, %v6706_v15  ;;  %v6725_v28 = vadd.f32 %v2282_v22, %v6710_v16 }
 0xa4a   : > { %v2233_v29 = vpop.f32.mrf.mxu1  ;;  %v2284_v62 = vpop.f32.mrf.mxu0 }
 0xa4b   : > { %v2309_v30 = vmul.f32 %v2297_v25, %v6712_v19  ;;  %v2311_v32 = vmul.f32 %v2299_v26, %v6715_v20  ;;  %v2298_v53 = vmul.f32 %v6722_v27, %v6722_v27  ;;  %v2300_v33 = vmul.f32 %v6725_v28, %v6725_v28 }
 0xa4c   : > { %v6733_v35 = vadd.f32 %v2233_v29, %v2018_v10  ;;  %v6736_v38 = vadd.f32 %v2284_v62, %v6703_v14  ;;  %v2235_v39 = vpop.f32.mrf.mxu1  ;;  %v2286_v40 = vpop.f32.mrf.mxu0 }
 0xa4d   : > { %v2321_v41 = vmul.f32 0.044715, %v2309_v30  ;;  %v2323_v42 = vmul.f32 0.044715, %v2311_v32  ;;  %v2310_v36 = vmul.f32 %v2298_v53, %v6722_v27  ;;  %v2312_v43 = vmul.f32 %v2300_v33, %v6725_v28 }
 0xa4e   : > { %v2301_v44 = vmul.f32 %v6733_v35, %v6733_v35  ;;  %v2303_v45 = vmul.f32 %v6736_v38, %v6736_v38  ;;  %v6745_v46 = vadd.f32 %v2235_v39, %v6706_v15  ;;  %v6748_v47 = vadd.f32 %v2286_v40, %v6710_v16  ;;  %v2239_v48 = vpop.f32.mrf.mxu1  ;;  %v2290_v51 = vpop.f32.mrf.mxu0 }
 0xa4f   : > { %v2333_v55 = vadd.f32 %v2321_v41, %v6712_v19  ;;  %v2335_v56 = vadd.f32 %v2323_v42, %v6715_v20  ;;  %v2322_v57 = vmul.f32 0.044715, %v2310_v36  ;;  %v2324_v58 = vmul.f32 0.044715, %v2312_v43 }
 0xa50   : > { %v2313_v59 = vmul.f32 %v2301_v44, %v6733_v35  ;;  %v2315_v60 = vmul.f32 %v2303_v45, %v6736_v38  ;;  %v2302_v61 = vmul.f32 %v6745_v46, %v6745_v46  ;;  %v2304_v63 = vmul.f32 %v6748_v47, %v6748_v47  ;;  %v2241_v0 = vpop.f32.mrf.mxu1  ;;  %v2292_v1 = vpop.f32.mrf.mxu0 }
 0xa51   : > { %v2345_v3 = vmul.f32 0.7978846, %v2333_v55  ;;  %v2347_v4 = vmul.f32 0.7978846, %v2335_v56  ;;  %v2334_v50 = vadd.f32 %v2322_v57, %v6722_v27  ;;  %v2336_v52 = vadd.f32 %v2324_v58, %v6725_v28 }
 0xa52   : > { %v2325_v5 = vmul.f32 0.044715, %v2313_v59  ;;  %v2327_v49 = vmul.f32 0.044715, %v2315_v60  ;;  %v2314_v9 = vmul.f32 %v2302_v61, %v6745_v46  ;;  %v2316_v8 = vmul.f32 %v2304_v63, %v6748_v47  ;;  %v2243_v12 = vpop.f32.mrf.mxu1  ;;  %v2294_v2 = vpop.f32.mrf.mxu0 }
 0xa53   : > { %5812 = vtanh.f32 %v2345_v3  ;;  %v2346_v17 = vmul.f32 0.7978846, %v2334_v50  ;;  %v2348_v18 = vmul.f32 0.7978846, %v2336_v52  ;;  %v6762_v21 = vadd.f32 %v2239_v48, %v2018_v10 }
 0xa54   : > { %5814 = vtanh.f32 %v2347_v4  ;;  %v2337_v22 = vadd.f32 %v2325_v5, %v6733_v35  ;;  %v2339_v25 = vadd.f32 %v2327_v49, %v6736_v38  ;;  %v2326_v26 = vmul.f32 0.044715, %v2314_v9  ;;  %v2244_v29 = vpop.f32.mrf.mxu1  ;;  %v2295_v62 = vpop.f32.mrf.mxu0 }
 0xa55   : > { %5816 = vtanh.f32 %v2346_v17  ;;  %v2328_v30 = vmul.f32 0.044715, %v2316_v8  ;;  %v2305_v32 = vmul.f32 %v6762_v21, %v6762_v21  ;;  %v6769_v53 = vadd.f32 %v2290_v51, %v6703_v14 }
 0xa56   : > { %5818 = vtanh.f32 %v2348_v18  ;;  %v2349_v33 = vmul.f32 0.7978846, %v2337_v22  ;;  %v2351_v10 = vmul.f32 0.7978846, %v2339_v25  ;;  %v2338_v39 = vadd.f32 %v2326_v26, %v6745_v46 }
 0xa57   : > { %v2340_v40 = vadd.f32 %v2328_v30, %v6748_v47  ;;  %v2317_v41 = vmul.f32 %v2305_v32, %v6762_v21  ;;  %v2307_v42 = vmul.f32 %v6769_v53, %v6769_v53  ;;  %v6777_v36 = vadd.f32 %v2241_v0, %v6706_v15 }
 0xa58   : > { %5820 = vtanh.f32 %v2349_v33  ;;  %v2350_v43 = vmul.f32 0.7978846, %v2338_v39  ;;  %v6780_v14 = vadd.f32 %v2292_v1, %v6710_v16 }
 0xa59   : > { %5822 = vtanh.f32 %v2351_v10  ;;  %v2352_v44 = vmul.f32 0.7978846, %v2340_v40  ;;  %v2329_v45 = vmul.f32 0.044715, %v2317_v41  ;;  %v2319_v48 = vmul.f32 %v2307_v42, %v6769_v53 }
 0xa5a   : > { %5824 = vtanh.f32 %v2350_v43  ;;  %v2306_v51 = vmul.f32 %v6777_v36, %v6777_v36  ;;  %v2308_v55 = vmul.f32 %v6780_v14, %v6780_v14 }
 0xa5b   : > { %5826 = vtanh.f32 %v2352_v44  ;;  %v2341_v15 = vadd.f32 %v2329_v45, %v6762_v21  ;;  %v2331_v56 = vmul.f32 0.044715, %v2319_v48 }
 0xa5c   : > { %v2318_v57 = vmul.f32 %v2306_v51, %v6777_v36  ;;  %v2320_v16 = vmul.f32 %v2308_v55, %v6780_v14 }
 0xa5d   : > { %v2353_v58 = vmul.f32 0.7978846, %v2341_v15  ;;  %v2343_v59 = vadd.f32 %v2331_v56, %v6769_v53 }
 0xa5e   : > { %v2330_v60 = vmul.f32 0.044715, %v2318_v57  ;;  %v2332_v61 = vmul.f32 0.044715, %v2320_v16 }
 0xa5f   : > { %5828 = vtanh.f32 %v2353_v58  ;;  %v2355_v63 = vmul.f32 0.7978846, %v2343_v59 }
 0xa60   : > { %v5813_v0 = vpop.eup %5812  ;;  %v2342_v1 = vadd.f32 %v2330_v60, %v6777_v36  ;;  %v2344_v3 = vadd.f32 %v2332_v61, %v6780_v14 }
 0xa61   : > { %v5815_v4 = vpop.eup %5814  ;;  %5830 = vtanh.f32 %v2355_v63  ;;  %v2369_v12 = vadd.f32 1.0, %v5813_v0 }
 0xa62   : > { %v5817_v50 = vpop.eup %5816  ;;  %v2354_v52 = vmul.f32 0.7978846, %v2342_v1  ;;  %v2356_v5 = vmul.f32 0.7978846, %v2344_v3  ;;  %v2371_v18 = vadd.f32 1.0, %v5815_v4 }
 0xa63   : > { %v5819_v49 = vpop.eup %5818  ;;  %v2370_v9 = vadd.f32 1.0, %v5817_v50  ;;  %v2381_v33 = vmul.f32 0.5, %v2369_v12 }
 0xa64   : > { %5832 = vtanh.f32 %v2354_v52  ;;  %v2372_v2 = vadd.f32 1.0, %v5819_v49  ;;  %v2383_v41 = vmul.f32 0.5, %v2371_v18 }
 0xa65   : > { %v5821_v8 = vpop.eup %5820  ;;  %5834 = vtanh.f32 %v2356_v5  ;;  %v2382_v32 = vmul.f32 0.5, %v2370_v9  ;;  %v2393_v15 = vmul.f32 %v2381_v33, %v6712_v19 }
 0xa66   : > { %v5823_v17 = vpop.eup %5822  ;;  %v2373_v22 = vadd.f32 1.0, %v5821_v8  ;;  %v2384_v40 = vmul.f32 0.5, %v2372_v2  ;;  %v2395_v59 = vmul.f32 %v2383_v41, %v6715_v20 }
 0xa67   : > { %v5825_v25 = vpop.eup %5824  ;;  %v2375_v26 = vadd.f32 1.0, %v5823_v17  ;;  %v2394_v51 = vmul.f32 %v2382_v32, %v6722_v27 }
 0xa68   : > { %v5827_v29 = vpop.eup %5826  ;;  %v2385_v62 = vmul.f32 0.5, %v2373_v22  ;;  %v2374_v30 = vadd.f32 1.0, %v5825_v25  ;;  %v2396_v56 = vmul.f32 %v2384_v40, %v6725_v28 }
 0xa69   : > { %v2387_v10 = vmul.f32 0.5, %v2375_v26  ;;  %v2376_v39 = vadd.f32 1.0, %v5827_v29  ;;  %v4753_v26 = vld [vmem:[%s7415_s16] ss:$0 sm:$0xff] }
 0xa6a   : > { %v2386_v42 = vmul.f32 0.5, %v2374_v30  ;;  %v2397_v43 = vmul.f32 %v2385_v62, %v6733_v35 }
 0xa6b   : > { %v2388_v44 = vmul.f32 0.5, %v2376_v39  ;;  %v2399_v48 = vmul.f32 %v2387_v10, %v6736_v38 }
 0xa6c   : > { %v5829_v45 = vpop.eup %5828  ;;  %v2398_v55 = vmul.f32 %v2386_v42, %v6745_v46  ;;  %v2405_v35 = vpack.c.bf16 %v2397_v43, %v2393_v15 }
 0xa6d   : > { %v2400_v57 = vmul.f32 %v2388_v44, %v6748_v47  ;;  %v2377_v16 = vadd.f32 1.0, %v5829_v45  ;;  %v2407_v0 = vpack.c.bf16 %v2399_v48, %v2395_v59 }
 0xa6e   : > { %v5831_v58 = vpop.eup %5830  ;;  %v2406_v60 = vpack.c.bf16 %v2398_v55, %v2394_v51 }
 0xa6f   : > { %v2408_v61 = vpack.c.bf16 %v2400_v57, %v2396_v56  ;;  %v2379_v63 = vadd.f32 1.0, %v5831_v58  ;;  %v2389_v27 = vmul.f32 0.5, %v2377_v16 }
 0xa70   : > { %2701 = vmatprep.mubr.bf16.mxu1 %v2406_v60 }
 0xa71   : > { %v5833_v38 = vpop.eup %5832  ;;  %2749 = vmatprep.mubr.bf16.mxu0 %v2408_v61  ;;  %2702 = vmatmul.mubr.bf16.vlgmr.msra.gmra.mxu1 %v2405_v35  ;;  %v2391_v28 = vmul.f32 0.5, %v2379_v63  ;;  %v2401_v4 = vmul.f32 %v2389_v27, %v6762_v21  ;;  %v5656_v61 = vld [vmem:[%s7406_s7 + $0x168] ss:$12 sps:$4 sm:$0xff]  }
 0xa72   : > { %v5835_v46 = vpop.eup %5834  ;;  %2750 = vmatmul.mubr.bf16.vlgmr.msra.gmra.mxu0 %v2407_v0  ;;  %v2378_v19 = vadd.f32 1.0, %v5833_v38  ;;  %v5661_v63 = vld [vmem:[%s7406_s7 + $0x154] ss:$12 sps:$4 sm:$0xff]   ;;  %v5662_v0 = vld [vmem:[%s7406_s7 + $0x170] ss:$12 sps:$4 sm:$0xff]  }
 0xa73   : > { %v2380_v1 = vadd.f32 1.0, %v5835_v46  ;;  %v2403_v50 = vmul.f32 %v2391_v28, %v6769_v53  ;;  %v2409_v9 = vpack.c.bf16 %v2401_v4, %v2401_v4  ;;  %v5659_v38 = vld [vmem:[%s7406_s7 + $0x150] ss:$12 sps:$4 sm:$0xff]   ;;  %5353 = vmatprep.subr.bf16.mxu0 %v5662_v0  ;;  %v5666_v46 = vld [vmem:[%s7406_s7 + $0x158] ss:$12 sps:$4 sm:$0xff]  }
 0xa74   : > { %v2390_v47 = vmul.f32 0.5, %v2378_v19  ;;  %5354 = vmatpush3.bf16.msra.mxu0 %v5662_v0  ;;  %v5665_v27 = vld [vmem:[%s7406_s7 + $0x13c] ss:$12 sps:$4 sm:$0xff]   ;;  %v5663_v19 = vld [vmem:[%s7406_s7 + $0x138] ss:$12 sps:$4 sm:$0xff]  }
 0xa75   : > { %v2392_v3 = vmul.f32 0.5, %v2380_v1  ;;  %v2411_v8 = vpack.c.bf16 %v2403_v50, %v2403_v50  ;;  %5355 = vmatprep.subr.bf16.mxu0 %v5666_v46  ;;  %v5667_v28 = vld [vmem:[%s7406_s7 + $0x120] ss:$12 sps:$4 sm:$0xff]   ;;  %v5669_v1 = vld [vmem:[%s7406_s7 + $0x124] ss:$12 sps:$4 sm:$0xff]  }
 0xa76   : > { %v2402_v20 = vmul.f32 %v2390_v47, %v6777_v36  ;;  %v5670_v47 = vld [vmem:[%s7406_s7 + $0x140] ss:$12 sps:$4 sm:$0xff]   ;;  %v5674_v4 = vld [vmem:[%s7406_s7 + $0x128] ss:$12 sps:$4 sm:$0xff]  }
 0xa77   : > { %v2404_v52 = vmul.f32 %v2392_v3, %v6780_v14  ;;  %v5673_v3 = vld [vmem:[%s7406_s7 + $0x10c] ss:$12 sps:$4 sm:$0xff]   ;;  %v5677_v50 = vld [vmem:[%s7406_s7 + $0xf4] ss:$12 sps:$4 sm:$0xff]  }
 0xa78   : > { %v2410_v5 = vpack.c.bf16 %v2402_v20, %v2402_v20  ;;  %5356 = vmatpush3.bf16.msra.mxu0 %v5666_v46  ;;  %v5671_v20 = vld [vmem:[%s7406_s7 + $0x108] ss:$12 sps:$4 sm:$0xff]  }
 0xa79   : > { %v2412_v49 = vpack.c.bf16 %v2404_v52, %v2404_v52  ;;  %5357 = vmatprep.subr.bf16.mxu0 %v5670_v47  ;;  %v5678_v52 = vld [vmem:[%s7406_s7 + $0x110] ss:$12 sps:$4 sm:$0xff]  }
 0xa7a   : > { %2709 = vmatprep.mubr.bf16.mxu1 %v2410_v5  ;;  %v5675_v5 = vld [vmem:[%s7406_s7 + $0xf0] ss:$12 sps:$4 sm:$0xff]  }
 0xa7b   : > { %2757 = vmatprep.mubr.bf16.mxu0 %v2412_v49  ;;  %2710 = vmatmul.mubr.bf16.gmra.mxu1 %v2409_v9  ;;  %v5681_v49 = vld [vmem:[%s7406_s7 + $0xdc] ss:$12 sps:$4 sm:$0xff]   ;;  %v5682_v9 = vld [vmem:[%s7406_s7 + $0xf8] ss:$12 sps:$4 sm:$0xff]  }
 0xa7c   : > { %2758 = vmatmul.mubr.bf16.gmra.mxu0 %v2411_v8  ;;  %3057 = vmatprep.mubr.bf16.mxu1 %v5964_v34  ;;  %v5679_v8 = vld [vmem:[%s7406_s7 + $0xd8] ss:$12 sps:$4 sm:$0xff]  }
 0xa7d   : > { %5358 = vmatpush3.bf16.msra.mxu0 %v5670_v47 }
 0xa7e   : > { %5359 = vmatprep.subr.bf16.mxu0 %v5674_v4 }
 0xa81   : > { %5360 = vmatpush3.bf16.msra.mxu0 %v5674_v4 }
 0xa82   : > { %5361 = vmatprep.subr.bf16.mxu0 %v5678_v52 }
 0xa85   : > { %5362 = vmatpush3.bf16.msra.mxu0 %v5678_v52 }
 0xa86   : > { %5363 = vmatprep.subr.bf16.mxu0 %v5682_v9 }
 0xa89   : > { %5364 = vmatpush3.bf16.msra.mxu0 %v5682_v9 }
 0xb31   : > { %v5129_v12 = vpop.f32.mrf.mxu1 }
 0xb32   : > { %v5157_v2 = vpop.f32.mrf.mxu0 }
 0xb33   : > { %v5130_v17 = vpop.f32.mrf.mxu1 }
 0xb34   : > { %v5131_v21 = vadd.f32 %v5130_v17, %v5129_v12  ;;  %v5158_v18 = vpop.f32.mrf.mxu0  ;;  %v5685_v12 = vld [vmem:[%s7406_s7 + $0xc4] ss:$12 sps:$4 sm:$0xff]   ;;  %v5683_v17 = vld [vmem:[%s7406_s7 + $0xc0] ss:$12 sps:$4 sm:$0xff]  }
 0xb35   : > { %v5159_v36 = vadd.f32 %v5158_v18, %v5157_v2  ;;  %v5132_v22 = vpop.f32.mrf.mxu1  ;;  %v5686_v2 = vld [vmem:[%s7406_s7 + $0xe0] ss:$12 sps:$4 sm:$0xff]  }
 0xb36   : > { %v5160_v53 = vpop.f32.mrf.mxu0  ;;  %5365 = vmatprep.subr.bf16.mxu0 %v5686_v2 }
 0xb37   : > { %v2752_v25 = vadd.f32 %v5159_v36, %v5131_v21  ;;  %v5133_v14 = vpop.f32.mrf.mxu1  ;;  %v5687_v21 = vld [vmem:[%s7406_s7 + $0xc8] ss:$12 sps:$4 sm:$0xff]   ;;  %5366 = vmatpush3.bf16.msra.mxu0 %v5686_v2 }
 0xb38   : > { %v5134_v29 = vadd.f32 %v5133_v14, %v5132_v22  ;;  %v5161_v62 = vpop.f32.mrf.mxu0  ;;  %5367 = vmatprep.subr.bf16.mxu0 %v5687_v21 }
 0xb39   : > { %v2765_v30 = vadd.f32 %v2752_v25, %v6476_v6  ;;  %v5162_v32 = vadd.f32 %v5161_v62, %v5160_v53 }
 0xb3b   : > { %v6810_v33 = vadd.f32 %v4753_v26, %v2765_v30  ;;  %v2755_v10 = vadd.f32 %v5162_v32, %v5134_v29  ;;  %v5135_v39 = vpop.f32.mrf.mxu1  ;;  %5368 = vmatpush3.bf16.msra.mxu0 %v5687_v21 }
 0xb3c   : > { %v5163_v40 = vpop.f32.mrf.mxu0 }
 0xb3d   : > { %v2766_v41 = vadd.f32 %v2755_v10, %v6482_v11  ;;  %v5136_v42 = vpop.f32.mrf.mxu1  ;;  %2782 = vadd.xlane.f32.xlu0 %v6810_v33  ;;  %v2792_v6 = vmul.f32 %v6810_v33, %v6810_v33 }
 0xb3e   : > { %v5137_v43 = vadd.f32 %v5136_v42, %v5135_v39  ;;  %v5164_v44 = vpop.f32.mrf.mxu0 }
 0xb3f   : > { %v6814_v45 = vadd.f32 %v4753_v26, %v2766_v41  ;;  %v5165_v48 = vadd.f32 %v5164_v44, %v5163_v40  ;;  %v5138_v51 = vpop.f32.mrf.mxu1 }
 0xb40   : > { %v5166_v55 = vpop.f32.mrf.mxu0 }
 0xb41   : > { %v2760_v15 = vadd.f32 %v5165_v48, %v5137_v43  ;;  %v5139_v56 = vpop.f32.mrf.mxu1  ;;  %2784 = vadd.xlane.f32.xlu1 %v6814_v45  ;;  %2795 = vadd.xlane.f32.xlu0 %v2792_v6  ;;  %v2793_v16 = vmul.f32 %v6814_v45, %v6814_v45 }
 0xb42   : > { %v5167_v57 = vpop.f32.mrf.mxu0 }
 0xb43   : > { %v2767_v11 = vadd.f32 %v2760_v15, %v6478_v7  ;;  %v5658_v7 = vld [vmem:[%s7406_s7 + $0x16c] ss:$12 sps:$4 sm:$0xff]  }
 0xb44   : > { %3025 = vmatprep.subr.bf16.mxu1 %v5658_v7 }
 0xb45   : > { %v6822_v58 = vadd.f32 %v4753_v26, %v2767_v11  ;;  %2797 = vadd.xlane.f32.xlu1 %v2793_v16  ;;  %3026 = vmatpush1.bf16.msra.mxu1 %v5656_v61 }
 0xb46   : > { %3027 = vmatprep.subr.bf16.mxu1 %v5661_v63  ;;  %v4757_v63 = vld [vmem:[%s7405_s6 + $0x1] ss:$0 sm:$0xff] }
 0xb47   : > { %v2786_v59 = vsel %vm1095_vm1, %v6822_v58, 0.0  ;;  %v2794_v60 = vmul.f32 %v6822_v58, %v6822_v58 }
 0xb48   : > { %2787 = vadd.xlane.f32.xlu0 %v2786_v59  ;;  %v4756_v59 = vld [vmem:[%s7450_s5 + $0x1] ss:$0 sm:$0xff] }
 0xb49   : > { %v2799_v35 = vsel %vm1095_vm1, %v2794_v60, 0.0  ;;  %3028 = vmatpush1.bf16.msra.mxu1 %v5659_v38 }
 0xb4a   : > { %2800 = vadd.xlane.f32.xlu1 %v2799_v35  ;;  %3029 = vmatprep.subr.bf16.mxu1 %v5665_v27 }
 0xb4d   : > { %3030 = vmatpush1.bf16.msra.mxu1 %v5663_v19 }
 0xb4e   : > { %3031 = vmatprep.subr.bf16.mxu1 %v5669_v1 }
 0xb51   : > { %3032 = vmatpush1.bf16.msra.mxu1 %v5667_v28 }
 0xb52   : > { %3033 = vmatprep.subr.bf16.mxu1 %v5673_v3 }
 0xb55   : > { %3034 = vmatpush1.bf16.msra.mxu1 %v5671_v20  ;;  %v4790_v20 = vld [vmem:[%s7407_s8 + $0x3] sm:$0x7] }
 0xb56   : > { %3035 = vmatprep.subr.bf16.mxu1 %v5677_v50  ;;  %v2885_v52 = vrot.slane %v4790_v20, %v6364_v24 }
 0xb59   : > { %3036 = vmatpush1.bf16.msra.mxu1 %v5675_v5 }
 0xb5a   : > { %3037 = vmatprep.subr.bf16.mxu1 %v5681_v49 }
 0xb5d   : > { %3038 = vmatpush1.bf16.msra.mxu1 %v5679_v8 }
 0xb5e   : > { %3039 = vmatprep.subr.bf16.mxu1 %v5685_v12 }
 0xb61   : > { %3040 = vmatpush1.bf16.msra.mxu1 %v5683_v17 }
 0xbc6   : > { %v2783_v18 = vpop.xlane.xlu0 %2782 }
 0xbc7   : > { %v2789_v36 = vmul.f32 0.0078125, %v2783_v18 }
 0xbc9   : > { %v2805_v25 = vmul.f32 %v2789_v36, %v2789_v36  ;;  %v2814_v57 = vsub.f32 %v6810_v33, %v2789_v36  ;;  %v2889_v36 = vrot.slane %v4790_v20, %v6371_v31 }
 0xbca   : > { %v2785_v22 = vpop.xlane.xlu1 %2784  ;;  %v2796_v53 = vpop.xlane.xlu0 %2795 }
 0xbcb   : > { %v2790_v14 = vmul.f32 0.0078125, %v2785_v22  ;;  %v2802_v26 = vmul.f32 0.0078125, %v2796_v53 }
 0xbcd   : > { %v2808_v29 = vsub.f32 %v2802_v26, %v2805_v25  ;;  %v2806_v30 = vmul.f32 %v2790_v14, %v2790_v14  ;;  %v2815_v60 = vsub.f32 %v6814_v45, %v2790_v14  ;;  %v2893_v25 = vrot.slane %v4790_v20, %v6376_v37 }
 0xbce   : > { %v2798_v62 = vpop.xlane.xlu1 %2797 }
 0xbcf   : > { %v2811_v32 = vmax.f32 %v2808_v29, 0.0  ;;  %v2803_v10 = vmul.f32 0.0078125, %v2798_v62 }
 0xbd1   : > { %v2817_v39 = vadd.f32 1e-06, %v2811_v32  ;;  %v2809_v40 = vsub.f32 %v2803_v10, %v2806_v30  ;;  %v2788_v41 = vpop.xlane.xlu0 %2787 }
 0xbd2   : > { %v2791_v42 = vmul.f32 0.0078125, %v2788_v41 }
 0xbd3   : > { %5836 = vrsqrt.f32 %v2817_v39  ;;  %v2812_v43 = vmax.f32 %v2809_v40, 0.0  ;;  %v2801_v44 = vpop.xlane.xlu1 %2800 }
 0xbd4   : > { %v2807_v48 = vmul.f32 %v2791_v42, %v2791_v42  ;;  %v2804_v51 = vmul.f32 0.0078125, %v2801_v44  ;;  %v2816_v38 = vsub.f32 %v6822_v58, %v2791_v42 }
 0xbd5   : > { %v2818_v6 = vadd.f32 1e-06, %v2812_v43 }
 0xbd6   : > { %v2810_v55 = vsub.f32 %v2804_v51, %v2807_v48 }
 0xbd7   : > { %5838 = vrsqrt.f32 %v2818_v6 }
 0xbd8   : > { %v2813_v15 = vmax.f32 %v2810_v55, 0.0 }
 0xbda   : > { %v2819_v56 = vadd.f32 1e-06, %v2813_v15 }
 0xbdc   : > { %5840 = vrsqrt.f32 %v2819_v56 }
 0xbe0   : > { %v5837_v11 = vpop.eup %5836 }
 0xbe1   : > { %v2823_v16 = vmul.f32 %v5837_v11, %v2814_v57 }
 0xbe3   : > { %v2832_v61 = vmul.f32 %v4756_v59, %v2823_v16 }
 0xbe4   : > { %v5839_v35 = vpop.eup %5838 }
 0xbe5   : > { %v2824_v7 = vmul.f32 %v5839_v35, %v2815_v60  ;;  %v2841_v46 = vadd.f32 %v4757_v63, %v2832_v61 }
 0xbe7   : > { %v2833_v0 = vmul.f32 %v4756_v59, %v2824_v7 }
 0xbe9   : > { %v5841_v27 = vpop.eup %5840  ;;  %v2842_v19 = vadd.f32 %v4757_v63, %v2833_v0 }
 0xbea   : > { %v2825_v28 = vmul.f32 %v5841_v27, %v2816_v38 }
 0xbeb   : > { %v2844_v1 = vpack.c.bf16 %v2842_v19, %v2841_v46 }
 0xbec   : > { %v2834_v47 = vmul.f32 %v4756_v59, %v2825_v28 }
 0xbed   : > { %3058 = vmatmul.mubr.bf16.vlgmr.msra.gmra.mxu1 %v2844_v1  ;;  %5369 = vmatprep.mubr.bf16.mxu0 %v2844_v1 }
 0xbee   : > { %v2843_v3 = vadd.f32 %v4757_v63, %v2834_v47  ;;  %3067 = vmatprep.mubr.bf16.mxu1 %v5964_v34 }
 0xbf0   : > { %v2845_v4 = vpack.c.bf16 %v2843_v3, %v2843_v3 }
 0xbf2   : > { %5370 = vmatmul.mubr.bf16.vlgmr.msra.gmra.mxu0 %v2845_v4 }
 0xbf5   : > { %3068 = vmatmul.mubr.bf16.gmra.mxu1 %v2845_v4 }
 0xcad   : > { %v3059_v50 = vpop.f32.mrf.mxu1 }
 0xcae   : > { %v3060_v9 = vadd.f32 %v3059_v50, %v2885_v52 }
 0xcaf   : > { %v3061_v5 = vpop.f32.mrf.mxu1 }
 0xcb0   : > { %v3062_v62 = vadd.f32 %v3061_v5, %v2889_v36 }
 0xcb1   : > { %v3063_v49 = vpop.f32.mrf.mxu1 }
 0xcb2   : > { %v3064_v8 = vadd.f32 %v3063_v49, %v2885_v52  ;;  %v5371_v12 = vpop.f32.mrf.mxu0 }
 0xcb3   : > { %v3065_v2 = vpop.f32.mrf.mxu1  ;;  %v3119_v10 = vadd.f32 %v5371_v12, %v2893_v25 }
 0xcb4   : > { %v6915_v17 = vpack.c.bf16 %v3064_v8, %v3060_v9  ;;  %v3110_v21 = vpop.f32.mrf.mxu0  ;;  %v3066_v14 = vadd.f32 %v3065_v2, %v2889_v36 }
 0xcb5   : > { %v3069_v18 = vpop.f32.mrf.mxu1  ;;  %v6924_v41 = vpack.c.bf16 %v3119_v10, %v3119_v10  ;;  %v3111_v6 = vadd.f32 %v3110_v21, %v2893_v25 }
 0xcb6   : > { %v5372_v22 = vpop.f32.mrf.mxu0  ;;  %5377 = vmatprep.mubr.msk.bf16.mxu1 %vm1437_vm2, %v6915_v17  ;;  %v3126_v39 = vpack.c.bf16 %v3066_v14, %v3062_v62  ;;  %v3070_v48 = vadd.f32 %v3069_v18, %v2885_v52 }
 0xcb7   : > { %v3071_v53 = vpop.f32.mrf.mxu1  ;;  %v3235_v42 = vand.u32 %v6924_v41, %v6389_v54 }
 0xcb8   : > { %v3072_v26 = vadd.f32 %v3071_v53, %v2889_v36  ;;  %v3135_v43 = vsel %vm1437_vm2, %v3126_v39, 0  ;;  %v3113_v44 = vpop.f32.mrf.mxu0  ;;  %v3125_v55 = vpack.c.bf16 %v3070_v48, %v3070_v48 }
 0xcb9   : > { %v3073_v29 = vpop.f32.mrf.mxu1  ;;  %v3114_v51 = vadd.f32 %v3113_v44, %v2893_v25 }
 0xcba   : > { %v3127_v30 = vpack.c.bf16 %v3072_v26, %v3072_v26 }
 0xcbb   : > { %v3074_v32 = vpop.f32.mrf.mxu1  ;;  %v6929_v15 = vpack.c.bf16 %v3114_v51, %v3111_v6 }
 0xcbc   : > { %5429 = vmatprep.subr.msk.bf16.mxu1 %vm1437_vm2, %v3127_v30  ;;  %v3138_v40 = vsel %vm1437_vm2, %v3127_v30, 0 }
 0xcbd   : > { %5374 = vmatpush3.bf16.xpose.msra.mxu1 %v3138_v40 }
 0xcbe   : > { %5430 = vmatprep.subr.msk.bf16.mxu1 %vm1437_vm2, %v3126_v39 }
 0xcc5   : > { %5376 = vmatpush3.bf16.xpose.msra.mxu1 %v3135_v43 }
 0xcc6   : > { %5381 = vmatprep.subr.bf16.mxu1 %v3235_v42 }
 0xccc   : > { %5378 = vmatmul.mubr.msk.bf16.vlgmr.msra.gmra.mxu1 %vm1437_vm2, %v3125_v55 }
 0xccd   : > { %5382 = vmatpush3.bf16.msra.mxu1 %v3235_v42 }
 0xcce   : > { %5383 = vmatprep.subr.bf16.mxu1 %v6929_v15 }
 0xcd1   : > { %5384 = vmatpush3.bf16.msra.mxu1 %v6929_v15 }
 0xd8c   : > { %v5379_v56 = vpop.f32.mrf.mxu1 }
 0xd8d   : > { %v3190_v59 = vmul.f32 0.125, %v5379_v56 }
 0xd8e   : > { %v3174_v57 = vpop.f32.mrf.mxu1 }
 0xd8f   : > { %v3188_v11 = vmul.f32 0.125, %v3174_v57  ;;  %v3197_v61 = vsel %vm1508_vm4, %v3190_v59, -inf }
 0xd90   : > { %v5380_v16 = vpop.f32.mrf.mxu1 }
 0xd91   : > { %v3191_v60 = vsel %vm1501_vm3, %v3188_v11, -inf }
 0xd92   : > { %3192 = vmax.xlane.f32.xlu0 %v3191_v60  ;;  %v3177_v35 = vpop.f32.mrf.mxu1 }
 0xd93   : > { %v3189_v7 = vmul.f32 0.125, %v3177_v35 }
 0xd95   : > { %v3194_v63 = vsel %vm1501_vm3, %v3189_v7, -inf }
 0xd96   : > { %3198 = vmax.xlane.f32.xlu0 %v3197_v61  ;;  %3195 = vmax.xlane.f32.xlu1 %v3194_v63 }
 0xe1b   : > { %v3193_v0 = vpop.xlane.xlu0 %3192 }
 0xe1c   : > { %v3200_v38 = vsub.f32 %v3188_v11, %v3193_v0 }
 0xe1e   : > { %v3203_v27 = vmul.f32 1.442695, %v3200_v38 }
 0xe1f   : > { %v3199_v46 = vpop.xlane.xlu0 %3198  ;;  %v3196_v19 = vpop.xlane.xlu1 %3195 }
 0xe20   : > { %5842 = vpow2.f32 %v3203_v27  ;;  %v3202_v28 = vsub.f32 %v3190_v59, %v3199_v46  ;;  %v3201_v1 = vsub.f32 %v3189_v7, %v3196_v19 }
 0xe22   : > { %v3207_v47 = vmul.f32 1.442695, %v3202_v28  ;;  %v3205_v3 = vmul.f32 1.442695, %v3201_v1 }
 0xe24   : > { %5844 = vpow2.f32 %v3207_v47 }
 0xe25   : > { %5846 = vpow2.f32 %v3205_v3 }
 0xe2d   : > { %v5843_v4 = vpop.eup %5842 }
 0xe2e   : > { %v3209_v20 = vsel %vm1501_vm3, %v5843_v4, 0.0 }
 0xe2f   : > { %3210 = vadd.xlane.f32.xlu1 %v3209_v20 }
 0xe31   : > { %v5845_v50 = vpop.eup %5844 }
 0xe32   : > { %v5847_v52 = vpop.eup %5846  ;;  %v3215_v5 = vsel %vm1508_vm4, %v5845_v50, 0.0 }
 0xe33   : > { %3216 = vadd.xlane.f32.xlu1 %v3215_v5  ;;  %v3212_v49 = vsel %vm1501_vm3, %v5847_v52, 0.0 }
 0xe34   : > { %3213 = vadd.xlane.f32.xlu0 %v3212_v49 }
 0xe44   : > { %3293 = vrot.lane.b32.xlu1 %v3126_v39, %s7451_s20 }
 0xe48   : > { %3287 = vrot.lane.b32.xlu1 %v6915_v17, %s7451_s20 }
 0xe4a   : > { %3295 = vrot.lane.b32.xlu0 %v3127_v30, %s7451_s20 }
 0xe4c   : > { %3289 = vrot.lane.b32.xlu1 %v3125_v55, %s7451_s20 }
 0xeb8   : > { %v3211_v9 = vpop.xlane.xlu1 %3210 }
 0xeb9   : > { %5848 = vrcp.f32 %v3211_v9 }
 0xebc   : > { %v3217_v8 = vpop.xlane.xlu1 %3216 }
 0xebd   : > { %v3214_v12 = vpop.xlane.xlu0 %3213  ;;  %5850 = vrcp.f32 %v3217_v8 }
 0xebe   : > { %5852 = vrcp.f32 %v3214_v12 }
 0xec0   : > { %v3294_v22 = vpop.permute.xlu1 %3293 }
 0xec1   : > { %v3296_v2 = vpop.permute.xlu0 %3295  ;;  %v3304_v30 = vsel %vm1437_vm2, %v3294_v22, 0 }
 0xec2   : > { %5431 = vmatprep.subr.msk.bf16.mxu1 %vm1437_vm2, %v3296_v2  ;;  %v3307_v29 = vsel %vm1437_vm2, %v3296_v2, 0 }
 0xec4   : > { %v3288_v62 = vpop.permute.xlu1 %3287 }
 0xec6   : > { %v5849_v21 = vpop.eup %5848 }
 0xec7   : > { %v3219_v25 = vmul.f32 %v5849_v21, %v5843_v4 }
 0xec8   : > { %v3290_v32 = vpop.permute.xlu1 %3289 }
 0xeca   : > { %v5851_v18 = vpop.eup %5850 }
 0xecb   : > { %v5853_v36 = vpop.eup %5852  ;;  %v3223_v53 = vmul.f32 %v5851_v18, %v5845_v50 }
 0xecc   : > { %v3221_v17 = vmul.f32 %v5853_v36, %v5847_v52  ;;  %v5689_v36 = vld [vmem:[%s7408_s9 + $0x70] sm:$0xff]  }
 0xecd   : > { %v3225_v14 = vpack.c.bf16 %v3223_v53, %v3223_v53  ;;  %v5691_v53 = vld [vmem:[%s7408_s9 + $0x60] sm:$0xff]  }
 0xece   : > { %v3224_v26 = vpack.c.bf16 %v3221_v17, %v3219_v25  ;;  %v5692_v25 = vld [vmem:[%s7408_s9 + $0x58] sm:$0xff]   ;;  %v5693_v17 = vld [vmem:[%s7408_s9 + $0x50] sm:$0xff]  }
 0xed0   : > { %5385 = vmatprep.mubr.msk.bf16.mxu1 %vm1501_vm3, %v3224_v26  ;;  %v5695_v26 = vld [vmem:[%s7408_s9 + $0x40] sm:$0xff]  }
 0xed1   : > { %5386 = vmatmul.mubr.msk.bf16.vlgmr.msra.gmra.mxu1 %vm1501_vm3, %v3225_v14  ;;  %v5694_v14 = vld [vmem:[%s7408_s9 + $0x48] sm:$0xff]  }
 0xed2   : > { %5390 = vmatpush3.bf16.xpose.msra.mxu1 %v3307_v29  ;;  %5393 = vmatprep.mubr.msk.bf16.mxu1 %vm1437_vm2, %v3288_v62 }
 0xed3   : > { %5432 = vmatprep.subr.msk.bf16.mxu1 %vm1437_vm2, %v3294_v22  ;;  %v5690_v22 = vld [vmem:[%s7408_s9 + $0x68] sm:$0xff]  }
 0xeda   : > { %5392 = vmatpush3.bf16.xpose.msra.mxu1 %v3304_v30 }
 0xee1   : > { %5394 = vmatmul.mubr.msk.bf16.vlgmr.msra.gmra.mxu1 %vm1437_vm2, %v3290_v32 }
 0xf91   : > { %v6953_v10 = vpop.f32.mrf.mxu1 }
 0xf93   : > { %v6955_v39 = vpop.f32.mrf.mxu1 }
 0xf95   : > { %v5388_v40 = vpop.f32.mrf.mxu1 }
 0xf97   : > { %v6957_v42 = vpop.f32.mrf.mxu1 }
 0xfa1   : > { %v5395_v43 = vpop.f32.mrf.mxu1 }
 0xfa2   : > { %v3359_v6 = vmul.f32 0.125, %v5395_v43 }
 0xfa3   : > { %v3343_v44 = vpop.f32.mrf.mxu1 }
 0xfa4   : > { %v3357_v48 = vmul.f32 0.125, %v3343_v44  ;;  %v3366_v11 = vsel %vm1508_vm4, %v3359_v6, -inf }
 0xfa5   : > { %v5396_v51 = vpop.f32.mrf.mxu1 }
 0xfa6   : > { %v3360_v55 = vsel %vm1501_vm3, %v3357_v48, -inf }
 0xfa7   : > { %3361 = vmax.xlane.f32.xlu0 %v3360_v55  ;;  %v3346_v56 = vpop.f32.mrf.mxu1 }
 0xfa8   : > { %v3358_v57 = vmul.f32 0.125, %v3346_v56 }
 0xfaa   : > { %v3363_v16 = vsel %vm1501_vm3, %v3358_v57, -inf }
 0xfab   : > { %3367 = vmax.xlane.f32.xlu0 %v3366_v11  ;;  %3364 = vmax.xlane.f32.xlu1 %v3363_v16 }
0x1030   : > { %v3362_v59 = vpop.xlane.xlu0 %3361 }
0x1031   : > { %v3369_v60 = vsub.f32 %v3357_v48, %v3362_v59 }
0x1033   : > { %v3372_v35 = vmul.f32 1.442695, %v3369_v60 }
0x1034   : > { %v3368_v7 = vpop.xlane.xlu0 %3367  ;;  %v3365_v61 = vpop.xlane.xlu1 %3364 }
0x1035   : > { %5854 = vpow2.f32 %v3372_v35  ;;  %v3371_v63 = vsub.f32 %v3359_v6, %v3368_v7  ;;  %v3370_v0 = vsub.f32 %v3358_v57, %v3365_v61 }
0x1037   : > { %v3376_v38 = vmul.f32 1.442695, %v3371_v63  ;;  %v3374_v27 = vmul.f32 1.442695, %v3370_v0 }
0x1039   : > { %5856 = vpow2.f32 %v3376_v38 }
0x103a   : > { %5858 = vpow2.f32 %v3374_v27 }
0x1042   : > { %v5855_v46 = vpop.eup %5854 }
0x1043   : > { %v3378_v19 = vsel %vm1501_vm3, %v5855_v46, 0.0 }
0x1044   : > { %3379 = vadd.xlane.f32.xlu0 %v3378_v19  ;;  %v5701_v19 = vld [vmem:[%s7412_s13 + $0x1ec] ss:$16 sps:$4 sm:$0xff]  }
0x1046   : > { %v5857_v28 = vpop.eup %5856 }
0x1047   : > { %v5859_v1 = vpop.eup %5858  ;;  %v3384_v47 = vsel %vm1508_vm4, %v5857_v28, 0.0 }
0x1048   : > { %3385 = vadd.xlane.f32.xlu1 %v3384_v47  ;;  %v3381_v3 = vsel %vm1501_vm3, %v5859_v1, 0.0  ;;  %v5704_v47 = vld [vmem:[%s7412_s13 + $0x1c4] ss:$16 sps:$4 sm:$0xff]  }
0x1049   : > { %3382 = vadd.xlane.f32.xlu0 %v3381_v3  ;;  %v5707_v3 = vld [vmem:[%s7412_s13 + $0x1cc] ss:$16 sps:$4 sm:$0xff]  }
0x1059   : > { %3397 = vrot.lane.b32.xlu1 %v6929_v15, %s7451_s20 }
0x105f   : > { %3399 = vrot.lane.b32.xlu0 %v6924_v41, %s7451_s20 }
0x10cd   : > { %v3380_v4 = vpop.xlane.xlu0 %3379 }
0x10ce   : > { %5860 = vrcp.f32 %v3380_v4  ;;  %v5702_v4 = vld [vmem:[%s7412_s13 + $0x1c0] ss:$16 sps:$4 sm:$0xff]  }
0x10d1   : > { %v3386_v20 = vpop.xlane.xlu1 %3385 }
0x10d2   : > { %v3383_v50 = vpop.xlane.xlu0 %3382  ;;  %5862 = vrcp.f32 %v3386_v20  ;;  %v5705_v20 = vld [vmem:[%s7412_s13 + $0x1c8] ss:$16 sps:$4 sm:$0xff]  }
0x10d3   : > { %5864 = vrcp.f32 %v3383_v50  ;;  %v5710_v50 = vld [vmem:[%s7412_s13 + $0x1a4] ss:$16 sps:$4 sm:$0xff]  }
0x10d5   : > { %v3398_v49 = vpop.permute.xlu1 %3397 }
0x10d6   : > { %v3400_v52 = vpop.permute.xlu0 %3399 }
0x10d7   : > { %v3409_v5 = vand.u32 %v3400_v52, %v6389_v54  ;;  %v5688_v54 = vld [vmem:[%s7408_s9 + $0x78] sm:$0xff]  }
0x10d8   : > { %5405 = vmatprep.subr.bf16.mxu0 %v5688_v54  ;;  %v5713_v52 = vld [vmem:[%s7412_s13 + $0x1ac] ss:$16 sps:$4 sm:$0xff]  }
0x10d9   : > { %5397 = vmatprep.subr.bf16.mxu1 %v3409_v5  ;;  %5406 = vmatpush3.bf16.msra.mxu0 %v5688_v54  ;;  %v5728_v54 = vld [vmem:[%s7412_s13 + $0x144] ss:$16 sps:$4 sm:$0xff]  }
0x10da   : > { %5398 = vmatpush3.bf16.msra.mxu1 %v3409_v5  ;;  %5407 = vmatprep.subr.bf16.mxu0 %v5689_v36  ;;  %v5708_v5 = vld [vmem:[%s7412_s13 + $0x1a0] ss:$16 sps:$4 sm:$0xff]  }
0x10db   : > { %5399 = vmatprep.subr.bf16.mxu1 %v3398_v49  ;;  %v5861_v9 = vpop.eup %5860 }
0x10dc   : > { %v3388_v2 = vmul.f32 %v5861_v9, %v5855_v46  ;;  %v5698_v46 = vld [vmem:[%s7412_s13 + $0x1e4] ss:$16 sps:$4 sm:$0xff]  }
0x10dd   : > { %5408 = vmatpush3.bf16.msra.mxu0 %v5689_v36  ;;  %v5716_v9 = vld [vmem:[%s7412_s13 + $0x184] ss:$16 sps:$4 sm:$0xff]   ;;  %v5731_v36 = vld [vmem:[%s7412_s13 + $0x14c] ss:$16 sps:$4 sm:$0xff]  }
0x10de   : > { %5400 = vmatpush3.bf16.msra.mxu1 %v3398_v49  ;;  %5409 = vmatprep.subr.bf16.mxu0 %v5690_v22  ;;  %v5711_v49 = vld [vmem:[%s7412_s13 + $0x1a8] ss:$16 sps:$4 sm:$0xff]  }
0x10df   : > { %v5863_v8 = vpop.eup %5862  ;;  %3887 = vmatprep.subr.bf16.mxu1 %v5698_v46 }
0x10e0   : > { %v5865_v15 = vpop.eup %5864  ;;  %v3392_v12 = vmul.f32 %v5863_v8, %v5857_v28  ;;  %v5696_v28 = vld [vmem:[%s7412_s13 + $0x1e0] ss:$16 sps:$4 sm:$0xff]   ;;  %v5719_v8 = vld [vmem:[%s7412_s13 + $0x18c] ss:$16 sps:$4 sm:$0xff]  }
0x10e1   : > { %v3390_v41 = vmul.f32 %v5865_v15, %v5859_v1  ;;  %5410 = vmatpush3.bf16.msra.mxu0 %v5690_v22  ;;  %v5699_v1 = vld [vmem:[%s7412_s13 + $0x1e8] ss:$16 sps:$4 sm:$0xff]   ;;  %v5714_v15 = vld [vmem:[%s7412_s13 + $0x180] ss:$16 sps:$4 sm:$0xff]  }
0x10e2   : > { %v3394_v21 = vpack.c.bf16 %v3392_v12, %v3392_v12  ;;  %5411 = vmatprep.subr.bf16.mxu0 %v5691_v53  ;;  %v5717_v12 = vld [vmem:[%s7412_s13 + $0x188] ss:$16 sps:$4 sm:$0xff]   ;;  %v5726_v22 = vld [vmem:[%s7412_s13 + $0x140] ss:$16 sps:$4 sm:$0xff]  }
0x10e3   : > { %v3393_v18 = vpack.c.bf16 %v3390_v41, %v3388_v2  ;;  %v5722_v2 = vld [vmem:[%s7412_s13 + $0x164] ss:$16 sps:$4 sm:$0xff]   ;;  %v5725_v41 = vld [vmem:[%s7412_s13 + $0x16c] ss:$16 sps:$4 sm:$0xff]  }
0x10e5   : > { %5401 = vmatprep.mubr.msk.bf16.mxu1 %vm1501_vm3, %v3393_v18  ;;  %5412 = vmatpush3.bf16.msra.mxu0 %v5691_v53  ;;  %v5723_v18 = vld [vmem:[%s7412_s13 + $0x168] ss:$16 sps:$4 sm:$0xff]  }
0x10e6   : > { %5402 = vmatmul.mubr.msk.bf16.vlgmr.msra.gmra.mxu1 %vm1501_vm3, %v3394_v21  ;;  %5413 = vmatprep.subr.bf16.mxu0 %v5692_v25  ;;  %v5720_v21 = vld [vmem:[%s7412_s13 + $0x160] ss:$16 sps:$4 sm:$0xff]   ;;  %v5729_v53 = vld [vmem:[%s7412_s13 + $0x148] ss:$16 sps:$4 sm:$0xff]  }
0x10e7   : > { %3919 = vmatprep.mubr.bf16.mxu1 %v5964_v34  ;;  %3888 = vmatpush1.bf16.msra.mxu1 %v5696_v28 }
0x10e8   : > { %3889 = vmatprep.subr.bf16.mxu1 %v5704_v47  ;;  %v4851_v47 = vld [vmem:[%s7410_s11 + $0x1] ss:$0 sm:$0xff] }
0x10e9   : > { %5414 = vmatpush3.bf16.msra.mxu0 %v5692_v25  ;;  %v5734_v25 = vld [vmem:[%s7412_s13 + $0x124] ss:$16 sps:$4 sm:$0xff]  }
0x10ea   : > { %5415 = vmatprep.subr.bf16.mxu0 %v5693_v17 }
0x10eb   : > { %3890 = vmatpush1.bf16.msra.mxu1 %v5702_v4 }
0x10ec   : > { %3891 = vmatprep.subr.bf16.mxu1 %v5710_v50 }
0x10ed   : > { %5416 = vmatpush3.bf16.msra.mxu0 %v5693_v17  ;;  %v5737_v17 = vld [vmem:[%s7412_s13 + $0x12c] ss:$16 sps:$4 sm:$0xff]  }
0x10ee   : > { %5417 = vmatprep.subr.bf16.mxu0 %v5694_v14 }
0x10ef   : > { %3892 = vmatpush1.bf16.msra.mxu1 %v5708_v5 }
0x10f0   : > { %3893 = vmatprep.subr.bf16.mxu1 %v5716_v9 }
0x10f1   : > { %5418 = vmatpush3.bf16.msra.mxu0 %v5694_v14  ;;  %v5732_v14 = vld [vmem:[%s7412_s13 + $0x120] ss:$16 sps:$4 sm:$0xff]  }
0x10f2   : > { %5419 = vmatprep.subr.bf16.mxu0 %v5695_v26 }
0x10f3   : > { %3894 = vmatpush1.bf16.msra.mxu1 %v5714_v15 }
0x10f4   : > { %3895 = vmatprep.subr.bf16.mxu1 %v5722_v2 }
0x10f5   : > { %5420 = vmatpush3.bf16.msra.mxu0 %v5695_v26  ;;  %v5735_v26 = vld [vmem:[%s7412_s13 + $0x128] ss:$16 sps:$4 sm:$0xff]  }
0x10f6   : > { %3938 = vmatprep.subr.bf16.mxu0 %v5701_v19 }
0x10f7   : > { %3896 = vmatpush1.bf16.msra.mxu1 %v5720_v21 }
0x10f8   : > { %3897 = vmatprep.subr.bf16.mxu1 %v5728_v54  ;;  %v5745_v54 = vld [vmem:[%s7414_s15 + $0x1f8] sm:$0xff]  }
0x10fb   : > { %3898 = vmatpush1.bf16.msra.mxu1 %v5726_v22  ;;  %v5748_v22 = vld [vmem:[%s7414_s15 + $0x170] sm:$0xff]  }
0x10fc   : > { %3899 = vmatprep.subr.bf16.mxu1 %v5734_v25  ;;  %v5750_v25 = vld [vmem:[%s7414_s15 + $0x130] sm:$0xff]  }
0x10ff   : > { %3900 = vmatpush1.bf16.msra.mxu1 %v5732_v14  ;;  %v5752_v14 = vld [vmem:[%s7414_s15 + $0x168] sm:$0xff]  }
0x11a6   : > { %v5403_v29 = vpop.f32.mrf.mxu1 }
0x11a8   : > { %v3445_v62 = vpop.f32.mrf.mxu1 }
0x11aa   : > { %v5404_v30 = vpop.f32.mrf.mxu1 }
0x11ab   : > { %v5738_v30 = vld [vmem:[%s7412_s13 + $0x100] ss:$16 sps:$4 sm:$0xff]  }
0x11ac   : > { %v3448_v32 = vpop.f32.mrf.mxu1 }
0x11ad   : > { %v5484_v40 = vpack.i.bf16 %v3448_v32, %v3445_v62  ;;  %v5743_v62 = vld [vmem:[%s7412_s13 + $0x10c] ss:$16 sps:$4 sm:$0xff]   ;;  %v5741_v32 = vld [vmem:[%s7412_s13 + $0x108] ss:$16 sps:$4 sm:$0xff]  }
0x11af   : > { %5485 = vrot.lane.b32.xlu1 %v5484_v40, %s7451_s20 }
0x11b3   : > { %3466 = vrot.lane.b32.xlu1 %v5403_v29, %s7451_s20  ;;  %v5740_v29 = vld [vmem:[%s7412_s13 + $0x104] ss:$16 sps:$4 sm:$0xff]   ;;  %s5023_s20 = sshll.u32 %s6090_s1, 8  ;;  %s5966_s1 = smov [#allocation2]  }
0x11b4   : > { %3901 = vmatprep.subr.bf16.mxu1 %v5740_v29  ;;  %v5754_v29 = vld [vmem:[%s7414_s15 + $0x128] sm:$0xff]   ;;  %s7355_s28 = scalar_lea.hbm %s7452_s23, %s5023_s20  ;;  %s5904_s0 = sshll.u32 %s5966_s1, 4  ;;  %s5905_s0 = int_to_ptr.vmem [resolvable:$false] %s5904_s0 }
0x11b5   : > { %3902 = vmatpush1.bf16.msra.mxu1 %v5738_v30  ;;  %v5756_v30 = vld [vmem:[%s7414_s15 + $0x160] sm:$0xff]   ;;  %s5906_s26 = scalar_lea.vmem %s5905_s0, 512  ;;  %p5907_p0 = scmp.lt.s32.totalorder %s7357_s27, %s5905_s0 }
0x11b6   : > { %p5908_p1 = scmp.lt.s32.totalorder %s5906_s26, %s5900_s4 }
0x11b8   : > { %p5909_p2 = por %p5908_p1, %p5907_p0 }
0x11ba   : > { %p5910_p3 = pnand %p5909_p2, %p5903_p13 }
0x1221   : > { %v5486_v43 = vpop.permute.xlu1 %5485 }
0x1222   : > { %v5488_v44 = vunpack.i.h.bf16 %v5486_v43  ;;  %v5487_v48 = vunpack.i.l.bf16 %v5486_v43 }
0x1224   : > { %v3471_v51 = vsel %vm1437_vm2, %v6955_v39, %v5487_v48  ;;  %v3472_v6 = vsel %vm1437_vm2, %v6957_v42, %v5488_v44  ;;  %v4848_v39 = vld [vmem:[%s7409_s10 + $0x1] ss:$0 sm:$0xff] }
0x1225   : > { %v3467_v55 = vpop.permute.xlu1 %3466  ;;  %v3474_v56 = vpack.c.bf16 %v3472_v6, %v3471_v51 }
0x1226   : > { %v3473_v57 = vsel %vm1437_vm2, %v6953_v10, %v3467_v55 }
0x1227   : > { %v3475_v11 = vpack.c.bf16 %v3473_v57, %v3473_v57  ;;  %5421 = vmatprep.mubr.bf16.mxu0 %v3474_v56 }
0x1229   : > { %5422 = vmatmul.mubr.bf16.vlgmr.msra.gmra.mxu0 %v3475_v11 }
0x122a   : > { %3970 = vmatprep.mubr.bf16.mxu0 %v5964_v34  ;;  %3939 = vmatpush1.bf16.msra.mxu0 %v5699_v1 }
0x122b   : > { %3940 = vmatprep.subr.bf16.mxu0 %v5707_v3 }
0x122e   : > { %3941 = vmatpush1.bf16.msra.mxu0 %v5705_v20 }
0x122f   : > { %3942 = vmatprep.subr.bf16.mxu0 %v5713_v52  ;;  %v4852_v52 = vld [vmem:[%s7411_s12 + $0x1] ss:$0 sm:$0xff] }
0x1232   : > { %3943 = vmatpush1.bf16.msra.mxu0 %v5711_v49 }
0x1233   : > { %3944 = vmatprep.subr.bf16.mxu0 %v5719_v8 }
0x1236   : > { %3945 = vmatpush1.bf16.msra.mxu0 %v5717_v12 }
0x1237   : > { %3946 = vmatprep.subr.bf16.mxu0 %v5725_v41 }
0x123a   : > { %3947 = vmatpush1.bf16.msra.mxu0 %v5723_v18 }
0x123b   : > { %3948 = vmatprep.subr.bf16.mxu0 %v5731_v36  ;;  %v5746_v36 = vld [vmem:[%s7414_s15 + $0x138] sm:$0xff]  }
0x123e   : > { %3949 = vmatpush1.bf16.msra.mxu0 %v5729_v53  ;;  %v5749_v53 = vld [vmem:[%s7414_s15 + $0x1f0] sm:$0xff]  }
0x123f   : > { %3950 = vmatprep.subr.bf16.mxu0 %v5737_v17  ;;  %v5751_v17 = vld [vmem:[%s7414_s15 + $0x1b0] sm:$0xff]  }
0x1242   : > { %3951 = vmatpush1.bf16.msra.mxu0 %v5735_v26  ;;  %v5753_v26 = vld [vmem:[%s7414_s15 + $0x1e8] sm:$0xff]  }
0x1243   : > { %3952 = vmatprep.subr.bf16.mxu0 %v5743_v62  ;;  %v5755_v62 = vld [vmem:[%s7414_s15 + $0x1a8] sm:$0xff]  }
0x1246   : > { %3953 = vmatpush1.bf16.msra.mxu0 %v5741_v32  ;;  %v5757_v32 = vld [vmem:[%s7414_s15 + $0x1e0] sm:$0xff]  }
0x1247   : > { %5233 = vmatprep.subr.bf16.mxu0 %v5745_v54 }
0x12e9   : > { %v5423_v16 = vpop.f32.mrf.mxu0 }
0x12ea   : > { %v3591_v59 = vadd.f32 %v5423_v16, %v6822_v58 }
0x12eb   : > { %v3575_v60 = vpop.f32.mrf.mxu0 }
0x12ec   : > { %v3589_v42 = vadd.f32 %v3575_v60, %v6810_v33  ;;  %v7013_v61 = vadd.f32 %v4848_v39, %v3591_v59 }
0x12ed   : > { %v5424_v35 = vpop.f32.mrf.mxu0 }
0x12ee   : > { %v7011_v7 = vadd.f32 %v4848_v39, %v3589_v42  ;;  %v3619_v38 = vmul.f32 %v7013_v61, %v7013_v61 }
0x12ef   : > { %v3578_v10 = vpop.f32.mrf.mxu0 }
0x12f0   : > { %v3590_v63 = vadd.f32 %v3578_v10, %v6814_v45  ;;  %3607 = vadd.xlane.f32.xlu0 %v7011_v7  ;;  %v3617_v58 = vmul.f32 %v7011_v7, %v7011_v7  ;;  %v3624_v27 = vsel %vm1095_vm1, %v3619_v38, 0.0  ;;  %v3611_v45 = vsel %vm1095_vm1, %v7013_v61, 0.0 }
0x12f2   : > { %v7017_v0 = vadd.f32 %v4848_v39, %v3590_v63 }
0x12f4   : > { %3620 = vadd.xlane.f32.xlu0 %v3617_v58  ;;  %3609 = vadd.xlane.f32.xlu1 %v7017_v0  ;;  %v3618_v33 = vmul.f32 %v7017_v0, %v7017_v0 }
0x12f8   : > { %3625 = vadd.xlane.f32.xlu1 %v3624_v27  ;;  %3622 = vadd.xlane.f32.xlu0 %v3618_v33 }
0x12fc   : > { %3612 = vadd.xlane.f32.xlu0 %v3611_v45 }
0x1379   : > { %v3608_v40 = vpop.xlane.xlu0 %3607 }
0x137a   : > { %v3614_v43 = vmul.f32 0.0078125, %v3608_v40  ;;  %v5758_v40 = vld [vmem:[%s7414_s15 + $0x120] sm:$0xff]  }
0x137c   : > { %v3630_v51 = vmul.f32 %v3614_v43, %v3614_v43  ;;  %v3639_v19 = vsub.f32 %v7011_v7, %v3614_v43  ;;  %v5759_v43 = vld [vmem:[%s7414_s15 + $0x1a0] sm:$0xff]  }
0x137d   : > { %v3621_v44 = vpop.xlane.xlu0 %3620  ;;  %v3610_v48 = vpop.xlane.xlu1 %3609 }
0x137e   : > { %v3627_v6 = vmul.f32 0.0078125, %v3621_v44  ;;  %v3615_v55 = vmul.f32 0.0078125, %v3610_v48  ;;  %v5760_v44 = vld [vmem:[%s7414_s15 + $0x158] sm:$0xff]  }
0x137f   : > { %v5761_v48 = vld [vmem:[%s7414_s15 + $0x1d8] sm:$0xff]  }
0x1380   : > { %v3633_v56 = vsub.f32 %v3627_v6, %v3630_v51  ;;  %v3631_v16 = vmul.f32 %v3615_v55, %v3615_v55  ;;  %v3640_v3 = vsub.f32 %v7017_v0, %v3615_v55  ;;  %v5762_v51 = vld [vmem:[%s7414_s15 + $0x118] sm:$0xff]   ;;  %v5764_v55 = vld [vmem:[%s7414_s15 + $0x150] sm:$0xff]  }
0x1381   : > { %v3623_v57 = vpop.xlane.xlu0 %3622  ;;  %v3626_v42 = vpop.xlane.xlu1 %3625  ;;  %v5763_v6 = vld [vmem:[%s7414_s15 + $0x198] sm:$0xff]  }
0x1382   : > { %v3636_v11 = vmax.f32 %v3633_v56, 0.0  ;;  %v3628_v59 = vmul.f32 0.0078125, %v3623_v57  ;;  %v3629_v58 = vmul.f32 0.0078125, %v3626_v42  ;;  %v5765_v56 = vld [vmem:[%s7414_s15 + $0x1d0] sm:$0xff]   ;;  %v5772_v42 = vld [vmem:[%s7414_s15 + $0x140] sm:$0xff]  }
0x1383   : > { %v5766_v57 = vld [vmem:[%s7414_s15 + $0x110] sm:$0xff]  }
0x1384   : > { %v3642_v60 = vadd.f32 1e-06, %v3636_v11  ;;  %v3634_v39 = vsub.f32 %v3628_v59, %v3631_v16  ;;  %v5767_v11 = vld [vmem:[%s7414_s15 + $0x190] sm:$0xff]   ;;  %v5768_v16 = vld [vmem:[%s7414_s15 + $0x148] sm:$0xff]  }
0x1385   : > { %v3613_v35 = vpop.xlane.xlu0 %3612  ;;  %v5769_v59 = vld [vmem:[%s7414_s15 + $0x1c8] sm:$0xff]  }
0x1386   : > { %5866 = vrsqrt.f32 %v3642_v60  ;;  %v3637_v10 = vmax.f32 %v3634_v39, 0.0  ;;  %v3616_v63 = vmul.f32 0.0078125, %v3613_v35  ;;  %v5770_v60 = vld [vmem:[%s7414_s15 + $0x108] sm:$0xff]   ;;  %v5773_v35 = vld [vmem:[%s7414_s15 + $0x1c0] sm:$0xff]  }
0x1387   : > { %v5771_v39 = vld [vmem:[%s7414_s15 + $0x188] sm:$0xff]  }
0x1388   : > { %v3643_v38 = vadd.f32 1e-06, %v3637_v10  ;;  %v3632_v33 = vmul.f32 %v3616_v63, %v3616_v63  ;;  %v3641_v49 = vsub.f32 %v7013_v61, %v3616_v63  ;;  %v5744_v61 = vld [vmem:[%s7414_s15 + $0x178] sm:$0xff]   ;;  %v5774_v10 = vld [vmem:[%s7414_s15 + $0x100] sm:$0xff]  }
0x1389   : > { %5205 = vmatprep.subr.bf16.mxu1 %v5744_v61  ;;  %v5775_v63 = vld [vmem:[%s7414_s15 + $0x180] sm:$0xff]  }
0x138a   : > { %5868 = vrsqrt.f32 %v3643_v38  ;;  %v3635_v27 = vsub.f32 %v3629_v58, %v3632_v33  ;;  %v4885_v58 = vld [vmem:[%s7413_s14 + $0x4] sm:$0xf] }
0x138b   : > { %v3710_v38 = vrot.slane %v4885_v58, %v6364_v24  ;;  %v7237_v33 = vrot.slane %v4885_v58, %v6376_v37 }
0x138c   : > { %v3638_v45 = vmax.f32 %v3635_v27, 0.0  ;;  %v7240_v27 = vrot.slane %v4885_v58, %v6371_v31 }
0x138e   : > { %v3644_v46 = vadd.f32 1e-06, %v3638_v45  ;;  %v7244_v45 = vrot.slane %v4885_v58, %v2029_v13 }
0x1390   : > { %5870 = vrsqrt.f32 %v3644_v46 }
0x1393   : > { %v5867_v28 = vpop.eup %5866 }
0x1394   : > { %v3648_v1 = vmul.f32 %v5867_v28, %v3639_v19 }
0x1396   : > { %v3657_v50 = vmul.f32 %v4851_v47, %v3648_v1 }
0x1397   : > { %v5869_v4 = vpop.eup %5868 }
0x1398   : > { %v3649_v20 = vmul.f32 %v5869_v4, %v3640_v3  ;;  %v3666_v9 = vadd.f32 %v4852_v52, %v3657_v50 }
0x139a   : > { %v3658_v5 = vmul.f32 %v4851_v47, %v3649_v20 }
0x139c   : > { %v3667_v8 = vadd.f32 %v4852_v52, %v3658_v5 }
0x139d   : > { %v5871_v15 = vpop.eup %5870 }
0x139e   : > { %v3650_v12 = vmul.f32 %v5871_v15, %v3641_v49  ;;  %v3669_v2 = vpack.c.bf16 %v3667_v8, %v3666_v9 }
0x13a0   : > { %3920 = vmatmul.mubr.bf16.vlgmr.msra.gmra.mxu1 %v3669_v2  ;;  %3971 = vmatmul.mubr.bf16.vlgmr.msra.gmra.mxu0 %v3669_v2  ;;  %v3659_v41 = vmul.f32 %v4851_v47, %v3650_v12 }
0x13a1   : > { %3929 = vmatprep.mubr.bf16.mxu1 %v5964_v34  ;;  %3980 = vmatprep.mubr.bf16.mxu0 %v5964_v34  ;;  %v5747_v34 = vld [vmem:[%s7414_s15 + $0x1b8] sm:$0xff]  }
0x13a2   : > { %v3668_v21 = vadd.f32 %v4852_v52, %v3659_v41  ;;  %5206 = vmatpush3.bf16.msra.mxu1 %v5746_v36  ;;  %5234 = vmatpush3.bf16.msra.mxu0 %v5747_v34 }
0x13a3   : > { %5207 = vmatprep.subr.bf16.mxu1 %v5748_v22  ;;  %5235 = vmatprep.subr.bf16.mxu0 %v5749_v53 }
0x13a4   : > { %v3670_v18 = vpack.c.bf16 %v3668_v21, %v3668_v21 }
0x13a6   : > { %5208 = vmatpush3.bf16.msra.mxu1 %v5750_v25  ;;  %5236 = vmatpush3.bf16.msra.mxu0 %v5751_v17 }
0x13a7   : > { %5209 = vmatprep.subr.bf16.mxu1 %v5752_v14  ;;  %5237 = vmatprep.subr.bf16.mxu0 %v5753_v26 }
0x13a8   : > { %3930 = vmatmul.mubr.bf16.gmra.mxu1 %v3670_v18  ;;  %3981 = vmatmul.mubr.bf16.gmra.mxu0 %v3670_v18 }
0x13aa   : > { %5210 = vmatpush3.bf16.msra.mxu1 %v5754_v29  ;;  %5238 = vmatpush3.bf16.msra.mxu0 %v5755_v62 }
0x13ab   : > { %5211 = vmatprep.subr.bf16.mxu1 %v5756_v30  ;;  %5239 = vmatprep.subr.bf16.mxu0 %v5757_v32 }
0x13ae   : > { %5212 = vmatpush3.bf16.msra.mxu1 %v5758_v40  ;;  %5240 = vmatpush3.bf16.msra.mxu0 %v5759_v43 }
0x13af   : > { %5213 = vmatprep.subr.bf16.mxu1 %v5760_v44  ;;  %5241 = vmatprep.subr.bf16.mxu0 %v5761_v48 }
0x13b2   : > { %5214 = vmatpush3.bf16.msra.mxu1 %v5762_v51  ;;  %5242 = vmatpush3.bf16.msra.mxu0 %v5763_v6 }
0x13b3   : > { %5215 = vmatprep.subr.bf16.mxu1 %v5764_v55  ;;  %5243 = vmatprep.subr.bf16.mxu0 %v5765_v56 }
0x13b6   : > { %5216 = vmatpush3.bf16.msra.mxu1 %v5766_v57  ;;  %5244 = vmatpush3.bf16.msra.mxu0 %v5767_v11 }
0x13b7   : > { %5217 = vmatprep.subr.bf16.mxu1 %v5768_v16  ;;  %5245 = vmatprep.subr.bf16.mxu0 %v5769_v59 }
0x13ba   : > { %5218 = vmatpush3.bf16.msra.mxu1 %v5770_v60  ;;  %5246 = vmatpush3.bf16.msra.mxu0 %v5771_v39 }
0x13bb   : > { %5219 = vmatprep.subr.bf16.mxu1 %v5772_v42  ;;  %5247 = vmatprep.subr.bf16.mxu0 %v5773_v35 }
0x13be   : > { %5220 = vmatpush3.bf16.msra.mxu1 %v5774_v10  ;;  %5248 = vmatpush3.bf16.msra.mxu0 %v5775_v63 }
0x1460   : > { %v3921_v46 = vpop.f32.mrf.mxu1  ;;  %v3972_v19 = vpop.f32.mrf.mxu0 }
0x1461   : > { %v7246_v28 = vadd.f32 %v3921_v46, %v3710_v38  ;;  %v7249_v1 = vadd.f32 %v3972_v19, %v7237_v33 }
0x1462   : > { %v3923_v47 = vpop.f32.mrf.mxu1  ;;  %v3974_v3 = vpop.f32.mrf.mxu0 }
0x1463   : > { %v3989_v24 = vmul.f32 %v7246_v28, %v7246_v28  ;;  %v3991_v31 = vmul.f32 %v7249_v1, %v7249_v1  ;;  %v7256_v37 = vadd.f32 %v3923_v47, %v7240_v27  ;;  %v7259_v23 = vadd.f32 %v3974_v3, %v7244_v45 }
0x1464   : > { %v3925_v13 = vpop.f32.mrf.mxu1  ;;  %v3976_v4 = vpop.f32.mrf.mxu0 }
0x1465   : > { %v4001_v20 = vmul.f32 %v3989_v24, %v7246_v28  ;;  %v4003_v50 = vmul.f32 %v3991_v31, %v7249_v1  ;;  %v3990_v52 = vmul.f32 %v7256_v37, %v7256_v37  ;;  %v3992_v5 = vmul.f32 %v7259_v23, %v7259_v23 }
0x1466   : > { %v7267_v49 = vadd.f32 %v3925_v13, %v3710_v38  ;;  %v7270_v9 = vadd.f32 %v3976_v4, %v7237_v33  ;;  %v3927_v8 = vpop.f32.mrf.mxu1  ;;  %v3978_v15 = vpop.f32.mrf.mxu0 }
0x1467   : > { %v4013_v12 = vmul.f32 0.044715, %v4001_v20  ;;  %v4015_v2 = vmul.f32 0.044715, %v4003_v50  ;;  %v4002_v41 = vmul.f32 %v3990_v52, %v7256_v37  ;;  %v4004_v21 = vmul.f32 %v3992_v5, %v7259_v23 }
0x1468   : > { %v3993_v18 = vmul.f32 %v7267_v49, %v7267_v49  ;;  %v3995_v61 = vmul.f32 %v7270_v9, %v7270_v9  ;;  %v7279_v54 = vadd.f32 %v3927_v8, %v7240_v27  ;;  %v7282_v36 = vadd.f32 %v3978_v15, %v7244_v45  ;;  %v3931_v34 = vpop.f32.mrf.mxu1  ;;  %v3982_v22 = vpop.f32.mrf.mxu0 }
0x1469   : > { %v4025_v53 = vadd.f32 %v4013_v12, %v7246_v28  ;;  %v4027_v25 = vadd.f32 %v4015_v2, %v7249_v1  ;;  %v4014_v17 = vmul.f32 0.044715, %v4002_v41  ;;  %v4016_v14 = vmul.f32 0.044715, %v4004_v21 }
0x146a   : > { %v4005_v26 = vmul.f32 %v3993_v18, %v7267_v49  ;;  %v4007_v29 = vmul.f32 %v3995_v61, %v7270_v9  ;;  %v3994_v62 = vmul.f32 %v7279_v54, %v7279_v54  ;;  %v3996_v30 = vmul.f32 %v7282_v36, %v7282_v36  ;;  %v3933_v32 = vpop.f32.mrf.mxu1  ;;  %v3984_v40 = vpop.f32.mrf.mxu0 }
0x146b   : > { %v4037_v43 = vmul.f32 0.7978846, %v4025_v53  ;;  %v4039_v44 = vmul.f32 0.7978846, %v4027_v25  ;;  %v4026_v48 = vadd.f32 %v4014_v17, %v7256_v37  ;;  %v4028_v51 = vadd.f32 %v4016_v14, %v7259_v23 }
0x146c   : > { %v4017_v6 = vmul.f32 0.044715, %v4005_v26  ;;  %v4019_v55 = vmul.f32 0.044715, %v4007_v29  ;;  %v4006_v56 = vmul.f32 %v3994_v62, %v7279_v54  ;;  %v4008_v57 = vmul.f32 %v3996_v30, %v7282_v36  ;;  %v3935_v11 = vpop.f32.mrf.mxu1  ;;  %v3986_v16 = vpop.f32.mrf.mxu0 }
0x146d   : > { %5872 = vtanh.f32 %v4037_v43  ;;  %v4038_v59 = vmul.f32 0.7978846, %v4026_v48  ;;  %v4040_v60 = vmul.f32 0.7978846, %v4028_v51  ;;  %v7296_v39 = vadd.f32 %v3931_v34, %v3710_v38 }
0x146e   : > { %5874 = vtanh.f32 %v4039_v44  ;;  %v4029_v42 = vadd.f32 %v4017_v6, %v7267_v49  ;;  %v4031_v35 = vadd.f32 %v4019_v55, %v7270_v9  ;;  %v4018_v10 = vmul.f32 0.044715, %v4006_v56  ;;  %v3936_v63 = vpop.f32.mrf.mxu1  ;;  %v3987_v58 = vpop.f32.mrf.mxu0 }
0x146f   : > { %5876 = vtanh.f32 %v4038_v59  ;;  %v4020_v46 = vmul.f32 0.044715, %v4008_v57  ;;  %v3997_v19 = vmul.f32 %v7296_v39, %v7296_v39  ;;  %v7303_v47 = vadd.f32 %v3982_v22, %v7237_v33 }
0x1470   : > { %5878 = vtanh.f32 %v4040_v60  ;;  %v4041_v3 = vmul.f32 0.7978846, %v4029_v42  ;;  %v4043_v38 = vmul.f32 0.7978846, %v4031_v35  ;;  %v4030_v24 = vadd.f32 %v4018_v10, %v7279_v54 }
0x1471   : > { %v4032_v31 = vadd.f32 %v4020_v46, %v7282_v36  ;;  %v4009_v13 = vmul.f32 %v3997_v19, %v7296_v39  ;;  %v3999_v4 = vmul.f32 %v7303_v47, %v7303_v47  ;;  %v7311_v20 = vadd.f32 %v3933_v32, %v7240_v27 }
0x1472   : > { %5880 = vtanh.f32 %v4041_v3  ;;  %v4042_v50 = vmul.f32 0.7978846, %v4030_v24  ;;  %v7314_v33 = vadd.f32 %v3984_v40, %v7244_v45 }
0x1473   : > { %5882 = vtanh.f32 %v4043_v38  ;;  %v4044_v52 = vmul.f32 0.7978846, %v4032_v31  ;;  %v4021_v5 = vmul.f32 0.044715, %v4009_v13  ;;  %v4011_v8 = vmul.f32 %v3999_v4, %v7303_v47 }
0x1474   : > { %5884 = vtanh.f32 %v4042_v50  ;;  %v3998_v15 = vmul.f32 %v7311_v20, %v7311_v20  ;;  %v4000_v12 = vmul.f32 %v7314_v33, %v7314_v33 }
0x1475   : > { %5886 = vtanh.f32 %v4044_v52  ;;  %v4033_v27 = vadd.f32 %v4021_v5, %v7296_v39  ;;  %v4023_v2 = vmul.f32 0.044715, %v4011_v8 }
0x1476   : > { %v4010_v41 = vmul.f32 %v3998_v15, %v7311_v20  ;;  %v4012_v45 = vmul.f32 %v4000_v12, %v7314_v33 }
0x1477   : > { %v4045_v21 = vmul.f32 0.7978846, %v4033_v27  ;;  %v4035_v18 = vadd.f32 %v4023_v2, %v7303_v47 }
0x1478   : > { %v4022_v61 = vmul.f32 0.044715, %v4010_v41  ;;  %v4024_v34 = vmul.f32 0.044715, %v4012_v45 }
0x1479   : > { %5888 = vtanh.f32 %v4045_v21  ;;  %v4047_v22 = vmul.f32 0.7978846, %v4035_v18 }
0x147a   : > { %v5873_v53 = vpop.eup %5872  ;;  %v4034_v25 = vadd.f32 %v4022_v61, %v7311_v20  ;;  %v4036_v17 = vadd.f32 %v4024_v34, %v7314_v33 }
0x147b   : > { %v5875_v14 = vpop.eup %5874  ;;  %5890 = vtanh.f32 %v4047_v22  ;;  %v4061_v43 = vadd.f32 1.0, %v5873_v53 }
0x147c   : > { %v5877_v26 = vpop.eup %5876  ;;  %v4046_v29 = vmul.f32 0.7978846, %v4034_v25  ;;  %v4048_v62 = vmul.f32 0.7978846, %v4036_v17  ;;  %v4063_v51 = vadd.f32 1.0, %v5875_v14 }
0x147d   : > { %v5879_v30 = vpop.eup %5878  ;;  %v4062_v32 = vadd.f32 1.0, %v5877_v26  ;;  %v4073_v60 = vmul.f32 0.5, %v4061_v43  ;;  %v5015_v43 = vld [vmem:[%s7415_s16 + $0x1] ss:$0 sm:$0xff] }
0x147e   : > { %5892 = vtanh.f32 %v4046_v29  ;;  %v4064_v44 = vadd.f32 1.0, %v5879_v30  ;;  %v4075_v63 = vmul.f32 0.5, %v4063_v51 }
0x147f   : > { %v5881_v40 = vpop.eup %5880  ;;  %5894 = vtanh.f32 %v4048_v62  ;;  %v4074_v59 = vmul.f32 0.5, %v4062_v32  ;;  %v4085_v13 = vmul.f32 %v4073_v60, %v7246_v28 }
0x1480   : > { %v5883_v48 = vpop.eup %5882  ;;  %v4065_v6 = vadd.f32 1.0, %v5881_v40  ;;  %v4076_v10 = vmul.f32 0.5, %v4064_v44  ;;  %v4087_v8 = vmul.f32 %v4075_v63, %v7249_v1 }
0x1481   : > { %v5885_v55 = vpop.eup %5884  ;;  %v4067_v56 = vadd.f32 1.0, %v5883_v48  ;;  %v4086_v24 = vmul.f32 %v4074_v59, %v7256_v37 }
0x1482   : > { %v5887_v57 = vpop.eup %5886  ;;  %v4077_v11 = vmul.f32 0.5, %v4065_v6  ;;  %v4066_v16 = vadd.f32 1.0, %v5885_v55  ;;  %v4088_v4 = vmul.f32 %v4076_v10, %v7259_v23 }
0x1483   : > { %v4079_v42 = vmul.f32 0.5, %v4067_v56  ;;  %v4068_v35 = vadd.f32 1.0, %v5887_v57 }
0x1484   : > { %v4078_v58 = vmul.f32 0.5, %v4066_v16  ;;  %v4089_v46 = vmul.f32 %v4077_v11, %v7267_v49 }
0x1485   : > { %v4080_v19 = vmul.f32 0.5, %v4068_v35  ;;  %v4091_v38 = vmul.f32 %v4079_v42, %v7270_v9 }
0x1486   : > { %v5889_v3 = vpop.eup %5888  ;;  %v4090_v31 = vmul.f32 %v4078_v58, %v7279_v54  ;;  %v4097_v49 = vpack.c.bf16 %v4089_v46, %v4085_v13 }
0x1487   : > { %v4092_v50 = vmul.f32 %v4080_v19, %v7282_v36  ;;  %v4069_v52 = vadd.f32 1.0, %v5889_v3  ;;  %v4099_v2 = vpack.c.bf16 %v4091_v38, %v4087_v8 }
0x1488   : > { %v5891_v5 = vpop.eup %5890  ;;  %v4098_v15 = vpack.c.bf16 %v4090_v31, %v4086_v24 }
0x1489   : > { %v4100_v12 = vpack.c.bf16 %v4092_v50, %v4088_v4  ;;  %v4071_v27 = vadd.f32 1.0, %v5891_v5  ;;  %v4081_v37 = vmul.f32 0.5, %v4069_v52 }
0x148a   : > { %4394 = vmatprep.mubr.bf16.mxu1 %v4098_v15 }
0x148b   : > { %v5893_v9 = vpop.eup %5892  ;;  %4441 = vmatprep.mubr.bf16.mxu0 %v4100_v12  ;;  %4395 = vmatmul.mubr.bf16.vlgmr.msra.gmra.mxu1 %v4097_v49  ;;  %v4083_v23 = vmul.f32 0.5, %v4071_v27  ;;  %v4093_v21 = vmul.f32 %v4081_v37, %v7296_v39  ;;  %v5017_v37 = vld [vmem:[%s7417_s18] ss:$0 sm:$0xff] }
0x148c   : > { %v5895_v54 = vpop.eup %5894  ;;  %4442 = vmatmul.mubr.bf16.vlgmr.msra.gmra.mxu0 %v4099_v2  ;;  %v4070_v28 = vadd.f32 1.0, %v5893_v9  ;;  %v5016_v2 = vld [vmem:[%s7416_s17] ss:$0 sm:$0xff] }
0x148d   : > { %v4072_v41 = vadd.f32 1.0, %v5895_v54  ;;  %v4095_v18 = vmul.f32 %v4083_v23, %v7303_v47  ;;  %v4101_v53 = vpack.c.bf16 %v4093_v21, %v4093_v21 }
0x148e   : > { %v4082_v36 = vmul.f32 0.5, %v4070_v28 }
0x148f   : > { %v4084_v45 = vmul.f32 0.5, %v4072_v41  ;;  %v4103_v25 = vpack.c.bf16 %v4095_v18, %v4095_v18 }
0x1490   : > { %v4094_v1 = vmul.f32 %v4082_v36, %v7311_v20 }
0x1491   : > { %v4096_v61 = vmul.f32 %v4084_v45, %v7314_v33 }
0x1492   : > { %v4102_v34 = vpack.c.bf16 %v4094_v1, %v4094_v1 }
0x1493   : > { %v4104_v22 = vpack.c.bf16 %v4096_v61, %v4096_v61 }
0x1494   : > { %4402 = vmatprep.mubr.bf16.mxu1 %v4102_v34 }
0x1495   : > { %4449 = vmatprep.mubr.bf16.mxu0 %v4104_v22  ;;  %4403 = vmatmul.mubr.bf16.gmra.mxu1 %v4101_v53 }
0x1496   : > { %4450 = vmatmul.mubr.bf16.gmra.mxu0 %v4103_v25 }
0x154b   : > { %v5221_v17 = vpop.f32.mrf.mxu1 }
0x154c   : > { %v5249_v14 = vpop.f32.mrf.mxu0 }
0x154d   : > { %v5222_v26 = vpop.f32.mrf.mxu1 }
0x154e   : > { %v5223_v29 = vadd.f32 %v5222_v26, %v5221_v17  ;;  %v5250_v62 = vpop.f32.mrf.mxu0 }
0x154f   : > { %v5251_v39 = vadd.f32 %v5250_v62, %v5249_v14  ;;  %v5224_v30 = vpop.f32.mrf.mxu1 }
0x1550   : > { %v5252_v20 = vpop.f32.mrf.mxu0 }
0x1551   : > { %v4444_v32 = vadd.f32 %v5251_v39, %v5223_v29  ;;  %v5225_v47 = vpop.f32.mrf.mxu1 }
0x1552   : > { %v5226_v40 = vadd.f32 %v5225_v47, %v5224_v30  ;;  %v5253_v33 = vpop.f32.mrf.mxu0 }
0x1553   : > { %v4456_v44 = vadd.f32 %v4444_v32, %v7011_v7  ;;  %v5254_v48 = vadd.f32 %v5253_v33, %v5252_v20 }
0x1555   : > { %v4447_v51 = vadd.f32 %v5254_v48, %v5226_v40  ;;  %v5227_v6 = vpop.f32.mrf.mxu1  ;;  %v4466_v55 = vadd.f32 %v5015_v43, %v4456_v44 }
0x1556   : > { %v5255_v56 = vpop.f32.mrf.mxu0 }
0x1557   : > { %v4457_v57 = vadd.f32 %v4447_v51, %v7017_v0  ;;  %v5228_v11 = vpop.f32.mrf.mxu1  ;;  %4470 = vadd.xlane.f32.xlu0 %v4466_v55  ;;  %v4476_v42 = vmul.f32 %v4466_v55, %v4466_v55 }
0x1558   : > { %v5256_v16 = vpop.f32.mrf.mxu0 }
0x1559   : > { %v5230_v59 = vpop.f32.mrf.mxu1  ;;  %v4467_v60 = vadd.f32 %v5015_v43, %v4457_v57 }
0x155a   : > { %v5258_v35 = vpop.f32.mrf.mxu0 }
0x155b   : > { %v5231_v10 = vpop.f32.mrf.mxu1  ;;  %4472 = vadd.xlane.f32.xlu1 %v4467_v60  ;;  %4478 = vadd.xlane.f32.xlu0 %v4476_v42  ;;  %v4477_v58 = vmul.f32 %v4467_v60, %v4467_v60 }
0x155c   : > { %v5259_v63 = vpop.f32.mrf.mxu0 }
0x155f   : > { %4480 = vadd.xlane.f32.xlu1 %v4477_v58 }
0x15e0   : > { %v4471_v7 = vpop.xlane.xlu0 %4470 }
0x15e1   : > { %v4474_v46 = vmul.f32 0.0078125, %v4471_v7 }
0x15e3   : > { %v4484_v38 = vmul.f32 %v4474_v46, %v4474_v46  ;;  %v4490_v12 = vsub.f32 %v4466_v55, %v4474_v46 }
0x15e4   : > { %v4473_v19 = vpop.xlane.xlu1 %4472  ;;  %v4479_v3 = vpop.xlane.xlu0 %4478 }
0x15e5   : > { %v4475_v0 = vmul.f32 0.0078125, %v4473_v19  ;;  %v4482_v24 = vmul.f32 0.0078125, %v4479_v3 }
0x15e7   : > { %v4486_v31 = vsub.f32 %v4482_v24, %v4484_v38  ;;  %v4485_v4 = vmul.f32 %v4475_v0, %v4475_v0  ;;  %v4491_v54 = vsub.f32 %v4467_v60, %v4475_v0 }
0x15e8   : > { %v4481_v13 = vpop.xlane.xlu1 %4480 }
0x15e9   : > { %v4488_v50 = vmax.f32 %v4486_v31, 0.0  ;;  %v4483_v52 = vmul.f32 0.0078125, %v4481_v13 }
0x15eb   : > { %v4492_v5 = vadd.f32 1e-06, %v4488_v50  ;;  %v4487_v8 = vsub.f32 %v4483_v52, %v4485_v4 }
0x15ed   : > { %5896 = vrsqrt.f32 %v4492_v5  ;;  %v4489_v15 = vmax.f32 %v4487_v8, 0.0 }
0x15ef   : > { %v4493_v49 = vadd.f32 1e-06, %v4489_v15 }
0x15f1   : > { %5898 = vrsqrt.f32 %v4493_v49 }
0x15fa   : > { %v5897_v27 = vpop.eup %5896 }
0x15fb   : > { %v4496_v9 = vmul.f32 %v5897_v27, %v4490_v12 }
0x15fd   : > { %v4504_v28 = vmul.f32 %v5016_v2, %v4496_v9 }
0x15fe   : > { %v5899_v23 = vpop.eup %5898 }
0x15ff   : > { %v4497_v41 = vmul.f32 %v5899_v23, %v4491_v54  ;;  %v4512_v36 = vadd.f32 %v5017_v37, %v4504_v28 }
0x1601   : > { %v4505_v45 = vmul.f32 %v5016_v2, %v4497_v41  ;;  %4514 = vst [vmem:[%s595_s24] sm:$0xff] %v4512_v36 }
0x1603   : > { %v4513_v21 = vadd.f32 %v5017_v37, %v4505_v45 }
0x1605   : > { %4515 = vst [vmem:[%s595_s24 + $0x8] sm:$0xff] %v4513_v21 }
0x1606   : > { %5913 = shalt.err (!%p5910_p3)
}
0x1607   : > { %s5914_s21 = scalar_lea.hbm %s7355_s28, 256  ;;  %s5918_s22 = scalar_lea.hbm %s7452_s23, 512 }
0x1608   : > { %p5915_p4 = scmp.ne.s32.totalorder %s7355_s28, %s5914_s21  ;;  %p5919_p9 = scmp.lt.s32.totalorder %s7355_s28, %s7452_s23 }
0x1609   : > { %p5920_p10 = scmp.lt.s32.totalorder %s5918_s22, %s5914_s21 }
0x160a   : > { %p5916_p7 = pnand %p5915_p4, %p6107_p5 }
0x160b   : > { %p5921_p11 = por %p5920_p10, %p5919_p9 }
0x160c   : > { %p5917_p8 = pneg %p5916_p7 }
0x160e   : > { %p5922_p12 = pnand %p5921_p11, %p5917_p8 }
0x1610   : > { %5925 = shalt.err (!%p5922_p12)
}
0x1611   : > { %s5967_s4 = smov 128   ;;  %s5968_s0 = smov 8  }
0x1612   : > { %5434 = dma.vmem_to_hbm [thread:$0]  (%p6107_p5), %s7357_s27, 256, %s7355_s28, %s7359_s2, %s5967_s4, %s5967_s4, %s5968_s0  }
0x1613 PF: > { %s7453_s26 = sld [smem:[#allocation7_spill]] }
0x1614   : > { %s7454_s20 = sld [smem:[#allocation5_spill]] }
0x1619   : > { %p5440_p13 = scmp.ge.s32.totalorder %s7453_s26, 2 }
0x161a   : > { %s4545_s5 = sand.u32 1, %s7454_s20  }
0x161b   : > { %p5437_p0 = pnand %p5440_p13, %p6111_p6  ;;  %s4546_s21 = scalar_lea.sflag [#allocation3], %s4545_s5 }
0x161d   : > { %p5438_p1 = pneg %p5437_p0 }
0x161f   : > { %5943 = dma.done.wait (%p5438_p1), %s4546_s21, 256  }
0x1620   : > { %5945 = vsyncadd (%p5438_p1), %s4546_s21, 4294967040  ;;  %s7456_s21 = sld [smem:[#allocation8_spill]]  ;;  %s7459_s0 = smov %s5952_s30 }
0x1621   : > { %s7457_s22 = sld [smem:[#allocation6_spill]] }
0x1622   : > { %s7458_s20 = sld [smem:[#allocation9_spill]] }
0x1626   : > { %p29_p2 = scmp.ge.s32.totalorder %s7456_s21, 4  }
0x1627   : > { %s7460_s30 = smov %s7457_s22 }
0x1628   :  { %31 = sbr.rel (!%p29_p2) target bundleno = 11 (0xb), region = 143 }
0x162d   :  { %4551 = vsyncpa [#allocation3], 1 }
0x162e   :  { %4553 = vsyncpa [#allocation3 + $0x1], 1 }

</bundles_post_ra>
